<compile_context>
chip_gen: v7x
topology: tpu7x:2x2x1
jax: 0.10.0
libtpu: 0.0.40
codegen_flags: <defaults>
</compile_context>

<pallas_src>
import functools

import jax
import jax.numpy as jnp
from jax.experimental import pallas as pl
from jax.experimental.pallas import tpu as pltpu


def _contrastive_sum_kernel(ti_ref, tj_ref, w_ref, d_row_ref, d_col_ref,
                            out_ref, acc_ref, *, margin: float, block: int):
    """Accumulates sum_{i in tile ti, j in tile tj} relu(|d_i - d_j| - margin),
    weighted by the prefetched symmetry weight, into acc_ref; writes the core's
    total to out_ref on the last step of the reduction axis."""
    c = pl.program_id(0)          # grid row ("core" slice, parallel)
    s = pl.program_id(1)          # tile-pair step (arbitrary / reduction)

    @pl.when(s == 0)
    def _init():
        acc_ref[...] = jnp.zeros_like(acc_ref)

    # Symmetry weight: 1 = diagonal tile, 2 = off-diagonal, 0 = dummy pad tile.
    w = w_ref[c, s].astype(jnp.float32)

    # Row operand: (1, block) lane-major -> hoisted sublane broadcast.
    row = jnp.broadcast_to(d_row_ref[...], (8, block))          # (8, block)
    # Column operand: sublane-dense (8, block//8); cols[:, k] holds the 8
    # consecutive d values of slab k (laid out by the wrapper).
    cols = d_col_ref[...]                                        # (8, block//8)

    # Slab-wise accumulation: intermediates are only ~block/128 vregs each,
    # so everything stays in the register file (no spills, no (T,T) temp).
    partial = jnp.zeros((8, block), dtype=jnp.float32)
    for k in range(block // 8):
        col = cols[:, k:k + 1]                                   # (8, 1)
        partial = partial + jnp.maximum(jnp.abs(col - row) - margin, 0.0)

    acc_ref[...] += w * partial

    @pl.when(s == pl.num_programs(1) - 1)
    def _finalize():
        out_ref[0, 0] = jnp.sum(acc_ref[...])

    del ti_ref, tj_ref  # only used by the index_maps


def _maybe_reduce(pred_score):
    # Mirrors torch: pred_score.mean(dim=1).squeeze(1); torch's squeeze(1) is a
    # silent no-op when the (new) dim 1 is not size 1.
    if pred_score.ndim > 2:
        pred_score = jnp.mean(pred_score, axis=1)
        if pred_score.ndim > 1 and pred_score.shape[1] == 1:
            pred_score = jnp.squeeze(pred_score, axis=1)
    return pred_score


def _round_up(x: int, m: int) -> int:
    return ((x + m - 1) // m) * m


def contrastive_loss(pred_score, gt_score, margin: float = 0.2, *,
                     max_block: int = 1024, min_pallas_b: int = 1024,
                     force_pallas: bool = False):
    pred_score = _maybe_reduce(pred_score)
    pred = jnp.reshape(pred_score, (-1,)).astype(jnp.float32)
    gt = jnp.reshape(gt_score, (-1,)).astype(jnp.float32)
    b = pred.shape[0]

    d = pred - gt                  # (p_i - p_j) - (g_i - g_j) == d_i - d_j

    # Small batches: launch/grid overhead beats the XLA fused elementwise path.
    if b <= min_pallas_b and not force_pallas:
        diff = d[:, None] - d[None, :]
        hinge = jnp.maximum(jnp.abs(diff) - margin, 0.0)
        return jnp.sum(hinge) / (2.0 * b * b)

    assert max_block % 128 == 0 and max_block >= 128

    # Adaptive tiling: block is a multiple of 128, <= max_block, and b_pad is
    # the smallest nt*block covering b (B=600 -> one 640-wide tile).
    b128 = _round_up(b, 128)
    nt = (b128 + max_block - 1) // max_block
    block = _round_up(-(-b // nt), 128)
    b_pad = nt * block
    npad = b_pad - b

    d_pad = jnp.pad(d, (0, npad)) if npad else d
    # Lane-major row view, blocked (1, block) along tj.
    d_row = d_pad.reshape(1, b_pad)
    # Sublane-dense column view: d_col[t, k, s] = d_pad[t*block + 8*s + k].
    # One (8, block//8) tile = the whole ti column operand, contiguous in HBM.
    d_col = d_pad.reshape(nt, block // 8, 8).transpose(0, 2, 1)

    # Upper-triangular tile-pair enumeration with symmetry weights,
    # round-robin split across the (parallel) grid rows; dummies get weight 0.
    tiles = [(i, j, 1 if i == j else 2) for i in range(nt) for j in range(i, nt)]
    m = len(tiles)
    num_rows = 1 if m == 1 else 2
    n_steps = -(-m // num_rows)
    tiles += [(0, 0, 0)] * (num_rows * n_steps - m)
    rows = [tiles[r::num_rows] for r in range(num_rows)]

    ti_map = jnp.asarray([[t[0] for t in r] for r in rows], dtype=jnp.int32)
    tj_map = jnp.asarray([[t[1] for t in r] for r in rows], dtype=jnp.int32)
    w_map = jnp.asarray([[t[2] for t in r] for r in rows], dtype=jnp.int32)

    kernel = functools.partial(_contrastive_sum_kernel,
                               margin=float(margin), block=block)

    out = pl.pallas_call(
        kernel,
        out_shape=jax.ShapeDtypeStruct((num_rows, 1), jnp.float32),
        grid_spec=pltpu.PrefetchScalarGridSpec(
            num_scalar_prefetch=3,
            grid=(num_rows, n_steps),
            in_specs=[
                # row operand: (1, block) lane-major tile at tj
                pl.BlockSpec((1, block),
                             lambda c, s, ti, tj, w: (0, tj[c, s])),
                # column operand: sublane-dense (8, block//8) tile at ti
                pl.BlockSpec((None, 8, block // 8),
                             lambda c, s, ti, tj, w: (ti[c, s], 0, 0)),
            ],
            out_specs=pl.BlockSpec((1, 1),
                                   lambda c, s, ti, tj, w: (c, 0),
                                   memory_space=pltpu.SMEM),
            scratch_shapes=[pltpu.VMEM((8, block), jnp.float32)],
        ),
        compiler_params=pltpu.CompilerParams(
            dimension_semantics=("parallel", "arbitrary")),
    )(ti_map, tj_map, w_map, d_row, d_col)

    total = jnp.sum(out)

    # Analytic padding correction (padded entries are zeros): removes every
    # pair involving a padded index -- no in-kernel masking needed.
    if npad:
        corr = 2.0 * npad * jnp.sum(jnp.maximum(jnp.abs(d) - margin, 0.0))
        corr = corr + float(npad) * float(npad) * max(-float(margin), 0.0)
        total = total - corr

    return total / (2.0 * b * b)


def _contrastive_loss_ref(pred_score, gt_score, margin: float = 0.2):
    # Pure-JAX reference mirroring the PyTorch forward.
    pred_score = _maybe_reduce(pred_score)
    pred = jnp.reshape(pred_score, (-1,)).astype(jnp.float32)
    gt = jnp.reshape(gt_score, (-1,)).astype(jnp.float32)
    gt_diff = gt[:, None] - gt[None, :]
    pred_diff = pred[:, None] - pred[None, :]
    loss = jnp.maximum(jnp.zeros_like(gt_diff),
                       jnp.abs(pred_diff - gt_diff) - margin)
    return jnp.mean(loss) / 2.0


if __name__ == "__main__":
    key = jax.random.PRNGKey(0)
    k1, k2, k3, k4, k5, k6 = jax.random.split(key, 6)

    # Case 1: B not 128-aligned -> single 640-wide tile + padding correction.
    B = 600
    pred_score = jax.random.uniform(k1, (B,), jnp.float32, minval=1.0, maxval=5.0)
    gt_score = jax.random.uniform(k2, (B,), jnp.float32, minval=1.0, maxval=5.0)
    loss = contrastive_loss(pred_score, gt_score, margin=0.2, force_pallas=True)
    jax.block_until_ready(loss)
    ref = _contrastive_loss_ref(pred_score, gt_score, margin=0.2)
    assert jnp.allclose(loss, ref, rtol=1e-4, atol=1e-6), (loss, ref)

    # Case 2: multi-tile (nt=2) + dummy weight-0 grid slot + both grid rows.
    B2 = 1500
    p2 = jax.random.uniform(k3, (B2,), jnp.float32, minval=1.0, maxval=5.0)
    g2 = jax.random.uniform(k4, (B2,), jnp.float32, minval=1.0, maxval=5.0)
    l2 = contrastive_loss(p2, g2, margin=0.2)
    jax.block_until_ready(l2)
    r2 = _contrastive_loss_ref(p2, g2, margin=0.2)
    assert jnp.allclose(l2, r2, rtol=1e-4, atol=1e-6), (l2, r2)

    # Case 3: tiny batch -> fused-XLA fast path, and forced-Pallas corner case
    # (heavy padding to one 128-wide tile).
    B3 = 8
    p3 = jax.random.uniform(k5, (B3,), jnp.float32, minval=1.0, maxval=5.0)
    g3 = jax.random.uniform(k6, (B3,), jnp.float32, minval=1.0, maxval=5.0)
    r3 = _contrastive_loss_ref(p3, g3, margin=0.2)
    l3 = contrastive_loss(p3, g3, margin=0.2)
    assert jnp.allclose(l3, r3, rtol=1e-4, atol=1e-6), (l3, r3)
    l3p = contrastive_loss(p3, g3, margin=0.2, force_pallas=True)
    jax.block_until_ready(l3p)
    assert jnp.allclose(l3p, r3, rtol=2e-4, atol=1e-6), (l3p, r3)

    print("KERNEL_OK")
</pallas_src>

<mosaic_0001>
module attributes {stable_mosaic.version = 11 : i64} {
  func.func @_contrastive_sum_kernel(%arg0: i32, %arg1: i32, %arg2: memref<1x1xi32, #tpu.memory_space<smem>>, %arg3: memref<1x1xi32, #tpu.memory_space<smem>>, %arg4: memref<1x1xi32, #tpu.memory_space<smem>>, %arg5: memref<1x640xf32, #tpu.memory_space<vmem>>, %arg6: memref<1x8x80xf32, #tpu.memory_space<vmem>>, %arg7: memref<1x1xf32, #tpu.memory_space<smem>>, %arg8: memref<8x640xf32, #tpu.memory_space<vmem>>) attributes {dimension_semantics = [#tpu.dimension_semantics<parallel>, #tpu.dimension_semantics<arbitrary>], iteration_bounds = array<i64: 1, 1>, scalar_prefetch = 3 : i64, scratch_operands = 1 : i64, tpu.core_type = #tpu.core_type<tc>, window_params = [{transform_indices = @transform_0, window_bounds = array<i64: 1, 640>}, {transform_indices = @transform_1, window_bounds = array<i64: 1, 8, 80>}, {transform_indices = @transform_2, window_bounds = array<i64: 1, 1>}]} {
    %c0_i32 = arith.constant 0 : i32
    %0 = arith.cmpi eq, %arg1, %c0_i32 : i32
    %1 = arith.extui %0 : i1 to i32
    %c0_i32_0 = arith.constant 0 : i32
    %2 = arith.cmpi ne, %1, %c0_i32_0 : i32
    scf.if %2 {
      %cst_171 = arith.constant 0.000000e+00 : f32
      %741 = vector.broadcast %cst_171 : f32 to vector<8x640xf32>
      %c0_172 = arith.constant 0 : index
      %c0_173 = arith.constant 0 : index
      %742 = vector.load %arg8[%c0_172, %c0_173] : memref<8x640xf32, #tpu.memory_space<vmem>>, vector<8x640xf32>
      tpu.vector_store %arg8[%c0_172, %c0_173], %741 {strides = array<i32>} : memref<8x640xf32, #tpu.memory_space<vmem>>, vector<8x640xf32>,
    } else {
    }
    %3 = arith.index_cast %arg0 : i32 to index
    %4 = arith.index_cast %arg1 : i32 to index
    %5 = memref.load %arg4[%3, %4] : memref<1x1xi32, #tpu.memory_space<smem>>
    %6 = arith.sitofp %5 : i32 to f32
    %c0 = arith.constant 0 : index
    %c0_1 = arith.constant 0 : index
    %7 = vector.load %arg5[%c0, %c0_1] : memref<1x640xf32, #tpu.memory_space<vmem>>, vector<1x640xf32>
    %8 = vector.shape_cast %7 : vector<1x640xf32> to vector<1x640xf32>
    %9 = vector.broadcast %8 : vector<1x640xf32> to vector<8x640xf32>
    %c0_2 = arith.constant 0 : index
    %c0_3 = arith.constant 0 : index
    %c0_4 = arith.constant 0 : index
    %10 = vector.load %arg6[%c0_2, %c0_3, %c0_4] : memref<1x8x80xf32, #tpu.memory_space<vmem>>, vector<1x8x80xf32>
    %11 = vector.shape_cast %10 : vector<1x8x80xf32> to vector<8x80xf32>
    %cst = arith.constant 0.000000e+00 : f32
    %12 = vector.broadcast %cst : f32 to vector<8x640xf32>
    %13 = vector.extract_strided_slice %11 {offsets = [0, 0], sizes = [8, 1], strides = [1, 1]} : vector<8x80xf32> to vector<8x1xf32>
    %14 = vector.broadcast %13 : vector<8x1xf32> to vector<8x640xf32>
    %15 = arith.subf %14, %9 : vector<8x640xf32>
    %16 = math.absf %15 : vector<8x640xf32>
    %cst_5 = arith.constant 2.000000e-01 : f32
    %17 = vector.broadcast %cst_5 : f32 to vector<8x640xf32>
    %18 = arith.subf %16, %17 : vector<8x640xf32>
    %cst_6 = arith.constant 0.000000e+00 : f32
    %19 = vector.broadcast %cst_6 : f32 to vector<8x640xf32>
    %20 = arith.maximumf %18, %19 : vector<8x640xf32>
    %21 = arith.addf %12, %20 : vector<8x640xf32>
    %22 = vector.extract_strided_slice %11 {offsets = [0, 1], sizes = [8, 1], strides = [1, 1]} : vector<8x80xf32> to vector<8x1xf32>
    %23 = vector.broadcast %22 : vector<8x1xf32> to vector<8x640xf32>
    %24 = arith.subf %23, %9 : vector<8x640xf32>
    %25 = math.absf %24 : vector<8x640xf32>
    %cst_7 = arith.constant 2.000000e-01 : f32
    %26 = vector.broadcast %cst_7 : f32 to vector<8x640xf32>
    %27 = arith.subf %25, %26 : vector<8x640xf32>
    %cst_8 = arith.constant 0.000000e+00 : f32
    %28 = vector.broadcast %cst_8 : f32 to vector<8x640xf32>
    %29 = arith.maximumf %27, %28 : vector<8x640xf32>
    %30 = arith.addf %21, %29 : vector<8x640xf32>
    %31 = vector.extract_strided_slice %11 {offsets = [0, 2], sizes = [8, 1], strides = [1, 1]} : vector<8x80xf32> to vector<8x1xf32>
    %32 = vector.broadcast %31 : vector<8x1xf32> to vector<8x640xf32>
    %33 = arith.subf %32, %9 : vector<8x640xf32>
    %34 = math.absf %33 : vector<8x640xf32>
    %cst_9 = arith.constant 2.000000e-01 : f32
    %35 = vector.broadcast %cst_9 : f32 to vector<8x640xf32>
    %36 = arith.subf %34, %35 : vector<8x640xf32>
    %cst_10 = arith.constant 0.000000e+00 : f32
    %37 = vector.broadcast %cst_10 : f32 to vector<8x640xf32>
    %38 = arith.maximumf %36, %37 : vector<8x640xf32>
    %39 = arith.addf %30, %38 : vector<8x640xf32>
    %40 = vector.extract_strided_slice %11 {offsets = [0, 3], sizes = [8, 1], strides = [1, 1]} : vector<8x80xf32> to vector<8x1xf32>
    %41 = vector.broadcast %40 : vector<8x1xf32> to vector<8x640xf32>
    %42 = arith.subf %41, %9 : vector<8x640xf32>
    %43 = math.absf %42 : vector<8x640xf32>
    %cst_11 = arith.constant 2.000000e-01 : f32
    %44 = vector.broadcast %cst_11 : f32 to vector<8x640xf32>
    %45 = arith.subf %43, %44 : vector<8x640xf32>
    %cst_12 = arith.constant 0.000000e+00 : f32
    %46 = vector.broadcast %cst_12 : f32 to vector<8x640xf32>
    %47 = arith.maximumf %45, %46 : vector<8x640xf32>
    %48 = arith.addf %39, %47 : vector<8x640xf32>
    %49 = vector.extract_strided_slice %11 {offsets = [0, 4], sizes = [8, 1], strides = [1, 1]} : vector<8x80xf32> to vector<8x1xf32>
    %50 = vector.broadcast %49 : vector<8x1xf32> to vector<8x640xf32>
    %51 = arith.subf %50, %9 : vector<8x640xf32>
    %52 = math.absf %51 : vector<8x640xf32>
    %cst_13 = arith.constant 2.000000e-01 : f32
    %53 = vector.broadcast %cst_13 : f32 to vector<8x640xf32>
    %54 = arith.subf %52, %53 : vector<8x640xf32>
    %cst_14 = arith.constant 0.000000e+00 : f32
    %55 = vector.broadcast %cst_14 : f32 to vector<8x640xf32>
    %56 = arith.maximumf %54, %55 : vector<8x640xf32>
    %57 = arith.addf %48, %56 : vector<8x640xf32>
    %58 = vector.extract_strided_slice %11 {offsets = [0, 5], sizes = [8, 1], strides = [1, 1]} : vector<8x80xf32> to vector<8x1xf32>
    %59 = vector.broadcast %58 : vector<8x1xf32> to vector<8x640xf32>
    %60 = arith.subf %59, %9 : vector<8x640xf32>
    %61 = math.absf %60 : vector<8x640xf32>
    %cst_15 = arith.constant 2.000000e-01 : f32
    %62 = vector.broadcast %cst_15 : f32 to vector<8x640xf32>
    %63 = arith.subf %61, %62 : vector<8x640xf32>
    %cst_16 = arith.constant 0.000000e+00 : f32
    %64 = vector.broadcast %cst_16 : f32 to vector<8x640xf32>
    %65 = arith.maximumf %63, %64 : vector<8x640xf32>
    %66 = arith.addf %57, %65 : vector<8x640xf32>
    %67 = vector.extract_strided_slice %11 {offsets = [0, 6], sizes = [8, 1], strides = [1, 1]} : vector<8x80xf32> to vector<8x1xf32>
    %68 = vector.broadcast %67 : vector<8x1xf32> to vector<8x640xf32>
    %69 = arith.subf %68, %9 : vector<8x640xf32>
    %70 = math.absf %69 : vector<8x640xf32>
    %cst_17 = arith.constant 2.000000e-01 : f32
    %71 = vector.broadcast %cst_17 : f32 to vector<8x640xf32>
    %72 = arith.subf %70, %71 : vector<8x640xf32>
    %cst_18 = arith.constant 0.000000e+00 : f32
    %73 = vector.broadcast %cst_18 : f32 to vector<8x640xf32>
    %74 = arith.maximumf %72, %73 : vector<8x640xf32>
    %75 = arith.addf %66, %74 : vector<8x640xf32>
    %76 = vector.extract_strided_slice %11 {offsets = [0, 7], sizes = [8, 1], strides = [1, 1]} : vector<8x80xf32> to vector<8x1xf32>
    %77 = vector.broadcast %76 : vector<8x1xf32> to vector<8x640xf32>
    %78 = arith.subf %77, %9 : vector<8x640xf32>
    %79 = math.absf %78 : vector<8x640xf32>
    %cst_19 = arith.constant 2.000000e-01 : f32
    %80 = vector.broadcast %cst_19 : f32 to vector<8x640xf32>
    %81 = arith.subf %79, %80 : vector<8x640xf32>
    %cst_20 = arith.constant 0.000000e+00 : f32
    %82 = vector.broadcast %cst_20 : f32 to vector<8x640xf32>
    %83 = arith.maximumf %81, %82 : vector<8x640xf32>
    %84 = arith.addf %75, %83 : vector<8x640xf32>
    %85 = vector.extract_strided_slice %11 {offsets = [0, 8], sizes = [8, 1], strides = [1, 1]} : vector<8x80xf32> to vector<8x1xf32>
    %86 = vector.broadcast %85 : vector<8x1xf32> to vector<8x640xf32>
    %87 = arith.subf %86, %9 : vector<8x640xf32>
    %88 = math.absf %87 : vector<8x640xf32>
    %cst_21 = arith.constant 2.000000e-01 : f32
    %89 = vector.broadcast %cst_21 : f32 to vector<8x640xf32>
    %90 = arith.subf %88, %89 : vector<8x640xf32>
    %cst_22 = arith.constant 0.000000e+00 : f32
    %91 = vector.broadcast %cst_22 : f32 to vector<8x640xf32>
    %92 = arith.maximumf %90, %91 : vector<8x640xf32>
    %93 = arith.addf %84, %92 : vector<8x640xf32>
    %94 = vector.extract_strided_slice %11 {offsets = [0, 9], sizes = [8, 1], strides = [1, 1]} : vector<8x80xf32> to vector<8x1xf32>
    %95 = vector.broadcast %94 : vector<8x1xf32> to vector<8x640xf32>
    %96 = arith.subf %95, %9 : vector<8x640xf32>
    %97 = math.absf %96 : vector<8x640xf32>
    %cst_23 = arith.constant 2.000000e-01 : f32
    %98 = vector.broadcast %cst_23 : f32 to vector<8x640xf32>
    %99 = arith.subf %97, %98 : vector<8x640xf32>
    %cst_24 = arith.constant 0.000000e+00 : f32
    %100 = vector.broadcast %cst_24 : f32 to vector<8x640xf32>
    %101 = arith.maximumf %99, %100 : vector<8x640xf32>
    %102 = arith.addf %93, %101 : vector<8x640xf32>
    %103 = vector.extract_strided_slice %11 {offsets = [0, 10], sizes = [8, 1], strides = [1, 1]} : vector<8x80xf32> to vector<8x1xf32>
    %104 = vector.broadcast %103 : vector<8x1xf32> to vector<8x640xf32>
    %105 = arith.subf %104, %9 : vector<8x640xf32>
    %106 = math.absf %105 : vector<8x640xf32>
    %cst_25 = arith.constant 2.000000e-01 : f32
    %107 = vector.broadcast %cst_25 : f32 to vector<8x640xf32>
    %108 = arith.subf %106, %107 : vector<8x640xf32>
    %cst_26 = arith.constant 0.000000e+00 : f32
    %109 = vector.broadcast %cst_26 : f32 to vector<8x640xf32>
    %110 = arith.maximumf %108, %109 : vector<8x640xf32>
    %111 = arith.addf %102, %110 : vector<8x640xf32>
    %112 = vector.extract_strided_slice %11 {offsets = [0, 11], sizes = [8, 1], strides = [1, 1]} : vector<8x80xf32> to vector<8x1xf32>
    %113 = vector.broadcast %112 : vector<8x1xf32> to vector<8x640xf32>
    %114 = arith.subf %113, %9 : vector<8x640xf32>
    %115 = math.absf %114 : vector<8x640xf32>
    %cst_27 = arith.constant 2.000000e-01 : f32
    %116 = vector.broadcast %cst_27 : f32 to vector<8x640xf32>
    %117 = arith.subf %115, %116 : vector<8x640xf32>
    %cst_28 = arith.constant 0.000000e+00 : f32
    %118 = vector.broadcast %cst_28 : f32 to vector<8x640xf32>
    %119 = arith.maximumf %117, %118 : vector<8x640xf32>
    %120 = arith.addf %111, %119 : vector<8x640xf32>
    %121 = vector.extract_strided_slice %11 {offsets = [0, 12], sizes = [8, 1], strides = [1, 1]} : vector<8x80xf32> to vector<8x1xf32>
    %122 = vector.broadcast %121 : vector<8x1xf32> to vector<8x640xf32>
    %123 = arith.subf %122, %9 : vector<8x640xf32>
    %124 = math.absf %123 : vector<8x640xf32>
    %cst_29 = arith.constant 2.000000e-01 : f32
    %125 = vector.broadcast %cst_29 : f32 to vector<8x640xf32>
    %126 = arith.subf %124, %125 : vector<8x640xf32>
    %cst_30 = arith.constant 0.000000e+00 : f32
    %127 = vector.broadcast %cst_30 : f32 to vector<8x640xf32>
    %128 = arith.maximumf %126, %127 : vector<8x640xf32>
    %129 = arith.addf %120, %128 : vector<8x640xf32>
    %130 = vector.extract_strided_slice %11 {offsets = [0, 13], sizes = [8, 1], strides = [1, 1]} : vector<8x80xf32> to vector<8x1xf32>
    %131 = vector.broadcast %130 : vector<8x1xf32> to vector<8x640xf32>
    %132 = arith.subf %131, %9 : vector<8x640xf32>
    %133 = math.absf %132 : vector<8x640xf32>
    %cst_31 = arith.constant 2.000000e-01 : f32
    %134 = vector.broadcast %cst_31 : f32 to vector<8x640xf32>
    %135 = arith.subf %133, %134 : vector<8x640xf32>
    %cst_32 = arith.constant 0.000000e+00 : f32
    %136 = vector.broadcast %cst_32 : f32 to vector<8x640xf32>
    %137 = arith.maximumf %135, %136 : vector<8x640xf32>
    %138 = arith.addf %129, %137 : vector<8x640xf32>
    %139 = vector.extract_strided_slice %11 {offsets = [0, 14], sizes = [8, 1], strides = [1, 1]} : vector<8x80xf32> to vector<8x1xf32>
    %140 = vector.broadcast %139 : vector<8x1xf32> to vector<8x640xf32>
    %141 = arith.subf %140, %9 : vector<8x640xf32>
    %142 = math.absf %141 : vector<8x640xf32>
    %cst_33 = arith.constant 2.000000e-01 : f32
    %143 = vector.broadcast %cst_33 : f32 to vector<8x640xf32>
    %144 = arith.subf %142, %143 : vector<8x640xf32>
    %cst_34 = arith.constant 0.000000e+00 : f32
    %145 = vector.broadcast %cst_34 : f32 to vector<8x640xf32>
    %146 = arith.maximumf %144, %145 : vector<8x640xf32>
    %147 = arith.addf %138, %146 : vector<8x640xf32>
    %148 = vector.extract_strided_slice %11 {offsets = [0, 15], sizes = [8, 1], strides = [1, 1]} : vector<8x80xf32> to vector<8x1xf32>
    %149 = vector.broadcast %148 : vector<8x1xf32> to vector<8x640xf32>
    %150 = arith.subf %149, %9 : vector<8x640xf32>
    %151 = math.absf %150 : vector<8x640xf32>
    %cst_35 = arith.constant 2.000000e-01 : f32
    %152 = vector.broadcast %cst_35 : f32 to vector<8x640xf32>
    %153 = arith.subf %151, %152 : vector<8x640xf32>
    %cst_36 = arith.constant 0.000000e+00 : f32
    %154 = vector.broadcast %cst_36 : f32 to vector<8x640xf32>
    %155 = arith.maximumf %153, %154 : vector<8x640xf32>
    %156 = arith.addf %147, %155 : vector<8x640xf32>
    %157 = vector.extract_strided_slice %11 {offsets = [0, 16], sizes = [8, 1], strides = [1, 1]} : vector<8x80xf32> to vector<8x1xf32>
    %158 = vector.broadcast %157 : vector<8x1xf32> to vector<8x640xf32>
    %159 = arith.subf %158, %9 : vector<8x640xf32>
    %160 = math.absf %159 : vector<8x640xf32>
    %cst_37 = arith.constant 2.000000e-01 : f32
    %161 = vector.broadcast %cst_37 : f32 to vector<8x640xf32>
    %162 = arith.subf %160, %161 : vector<8x640xf32>
    %cst_38 = arith.constant 0.000000e+00 : f32
    %163 = vector.broadcast %cst_38 : f32 to vector<8x640xf32>
    %164 = arith.maximumf %162, %163 : vector<8x640xf32>
    %165 = arith.addf %156, %164 : vector<8x640xf32>
    %166 = vector.extract_strided_slice %11 {offsets = [0, 17], sizes = [8, 1], strides = [1, 1]} : vector<8x80xf32> to vector<8x1xf32>
    %167 = vector.broadcast %166 : vector<8x1xf32> to vector<8x640xf32>
    %168 = arith.subf %167, %9 : vector<8x640xf32>
    %169 = math.absf %168 : vector<8x640xf32>
    %cst_39 = arith.constant 2.000000e-01 : f32
    %170 = vector.broadcast %cst_39 : f32 to vector<8x640xf32>
    %171 = arith.subf %169, %170 : vector<8x640xf32>
    %cst_40 = arith.constant 0.000000e+00 : f32
    %172 = vector.broadcast %cst_40 : f32 to vector<8x640xf32>
    %173 = arith.maximumf %171, %172 : vector<8x640xf32>
    %174 = arith.addf %165, %173 : vector<8x640xf32>
    %175 = vector.extract_strided_slice %11 {offsets = [0, 18], sizes = [8, 1], strides = [1, 1]} : vector<8x80xf32> to vector<8x1xf32>
    %176 = vector.broadcast %175 : vector<8x1xf32> to vector<8x640xf32>
    %177 = arith.subf %176, %9 : vector<8x640xf32>
    %178 = math.absf %177 : vector<8x640xf32>
    %cst_41 = arith.constant 2.000000e-01 : f32
    %179 = vector.broadcast %cst_41 : f32 to vector<8x640xf32>
    %180 = arith.subf %178, %179 : vector<8x640xf32>
    %cst_42 = arith.constant 0.000000e+00 : f32
    %181 = vector.broadcast %cst_42 : f32 to vector<8x640xf32>
    %182 = arith.maximumf %180, %181 : vector<8x640xf32>
    %183 = arith.addf %174, %182 : vector<8x640xf32>
    %184 = vector.extract_strided_slice %11 {offsets = [0, 19], sizes = [8, 1], strides = [1, 1]} : vector<8x80xf32> to vector<8x1xf32>
    %185 = vector.broadcast %184 : vector<8x1xf32> to vector<8x640xf32>
    %186 = arith.subf %185, %9 : vector<8x640xf32>
    %187 = math.absf %186 : vector<8x640xf32>
    %cst_43 = arith.constant 2.000000e-01 : f32
    %188 = vector.broadcast %cst_43 : f32 to vector<8x640xf32>
    %189 = arith.subf %187, %188 : vector<8x640xf32>
    %cst_44 = arith.constant 0.000000e+00 : f32
    %190 = vector.broadcast %cst_44 : f32 to vector<8x640xf32>
    %191 = arith.maximumf %189, %190 : vector<8x640xf32>
    %192 = arith.addf %183, %191 : vector<8x640xf32>
    %193 = vector.extract_strided_slice %11 {offsets = [0, 20], sizes = [8, 1], strides = [1, 1]} : vector<8x80xf32> to vector<8x1xf32>
    %194 = vector.broadcast %193 : vector<8x1xf32> to vector<8x640xf32>
    %195 = arith.subf %194, %9 : vector<8x640xf32>
    %196 = math.absf %195 : vector<8x640xf32>
    %cst_45 = arith.constant 2.000000e-01 : f32
    %197 = vector.broadcast %cst_45 : f32 to vector<8x640xf32>
    %198 = arith.subf %196, %197 : vector<8x640xf32>
    %cst_46 = arith.constant 0.000000e+00 : f32
    %199 = vector.broadcast %cst_46 : f32 to vector<8x640xf32>
    %200 = arith.maximumf %198, %199 : vector<8x640xf32>
    %201 = arith.addf %192, %200 : vector<8x640xf32>
    %202 = vector.extract_strided_slice %11 {offsets = [0, 21], sizes = [8, 1], strides = [1, 1]} : vector<8x80xf32> to vector<8x1xf32>
    %203 = vector.broadcast %202 : vector<8x1xf32> to vector<8x640xf32>
    %204 = arith.subf %203, %9 : vector<8x640xf32>
    %205 = math.absf %204 : vector<8x640xf32>
    %cst_47 = arith.constant 2.000000e-01 : f32
    %206 = vector.broadcast %cst_47 : f32 to vector<8x640xf32>
    %207 = arith.subf %205, %206 : vector<8x640xf32>
    %cst_48 = arith.constant 0.000000e+00 : f32
    %208 = vector.broadcast %cst_48 : f32 to vector<8x640xf32>
    %209 = arith.maximumf %207, %208 : vector<8x640xf32>
    %210 = arith.addf %201, %209 : vector<8x640xf32>
    %211 = vector.extract_strided_slice %11 {offsets = [0, 22], sizes = [8, 1], strides = [1, 1]} : vector<8x80xf32> to vector<8x1xf32>
    %212 = vector.broadcast %211 : vector<8x1xf32> to vector<8x640xf32>
    %213 = arith.subf %212, %9 : vector<8x640xf32>
    %214 = math.absf %213 : vector<8x640xf32>
    %cst_49 = arith.constant 2.000000e-01 : f32
    %215 = vector.broadcast %cst_49 : f32 to vector<8x640xf32>
    %216 = arith.subf %214, %215 : vector<8x640xf32>
    %cst_50 = arith.constant 0.000000e+00 : f32
    %217 = vector.broadcast %cst_50 : f32 to vector<8x640xf32>
    %218 = arith.maximumf %216, %217 : vector<8x640xf32>
    %219 = arith.addf %210, %218 : vector<8x640xf32>
    %220 = vector.extract_strided_slice %11 {offsets = [0, 23], sizes = [8, 1], strides = [1, 1]} : vector<8x80xf32> to vector<8x1xf32>
    %221 = vector.broadcast %220 : vector<8x1xf32> to vector<8x640xf32>
    %222 = arith.subf %221, %9 : vector<8x640xf32>
    %223 = math.absf %222 : vector<8x640xf32>
    %cst_51 = arith.constant 2.000000e-01 : f32
    %224 = vector.broadcast %cst_51 : f32 to vector<8x640xf32>
    %225 = arith.subf %223, %224 : vector<8x640xf32>
    %cst_52 = arith.constant 0.000000e+00 : f32
    %226 = vector.broadcast %cst_52 : f32 to vector<8x640xf32>
    %227 = arith.maximumf %225, %226 : vector<8x640xf32>
    %228 = arith.addf %219, %227 : vector<8x640xf32>
    %229 = vector.extract_strided_slice %11 {offsets = [0, 24], sizes = [8, 1], strides = [1, 1]} : vector<8x80xf32> to vector<8x1xf32>
    %230 = vector.broadcast %229 : vector<8x1xf32> to vector<8x640xf32>
    %231 = arith.subf %230, %9 : vector<8x640xf32>
    %232 = math.absf %231 : vector<8x640xf32>
    %cst_53 = arith.constant 2.000000e-01 : f32
    %233 = vector.broadcast %cst_53 : f32 to vector<8x640xf32>
    %234 = arith.subf %232, %233 : vector<8x640xf32>
    %cst_54 = arith.constant 0.000000e+00 : f32
    %235 = vector.broadcast %cst_54 : f32 to vector<8x640xf32>
    %236 = arith.maximumf %234, %235 : vector<8x640xf32>
    %237 = arith.addf %228, %236 : vector<8x640xf32>
    %238 = vector.extract_strided_slice %11 {offsets = [0, 25], sizes = [8, 1], strides = [1, 1]} : vector<8x80xf32> to vector<8x1xf32>
    %239 = vector.broadcast %238 : vector<8x1xf32> to vector<8x640xf32>
    %240 = arith.subf %239, %9 : vector<8x640xf32>
    %241 = math.absf %240 : vector<8x640xf32>
    %cst_55 = arith.constant 2.000000e-01 : f32
    %242 = vector.broadcast %cst_55 : f32 to vector<8x640xf32>
    %243 = arith.subf %241, %242 : vector<8x640xf32>
    %cst_56 = arith.constant 0.000000e+00 : f32
    %244 = vector.broadcast %cst_56 : f32 to vector<8x640xf32>
    %245 = arith.maximumf %243, %244 : vector<8x640xf32>
    %246 = arith.addf %237, %245 : vector<8x640xf32>
    %247 = vector.extract_strided_slice %11 {offsets = [0, 26], sizes = [8, 1], strides = [1, 1]} : vector<8x80xf32> to vector<8x1xf32>
    %248 = vector.broadcast %247 : vector<8x1xf32> to vector<8x640xf32>
    %249 = arith.subf %248, %9 : vector<8x640xf32>
    %250 = math.absf %249 : vector<8x640xf32>
    %cst_57 = arith.constant 2.000000e-01 : f32
    %251 = vector.broadcast %cst_57 : f32 to vector<8x640xf32>
    %252 = arith.subf %250, %251 : vector<8x640xf32>
    %cst_58 = arith.constant 0.000000e+00 : f32
    %253 = vector.broadcast %cst_58 : f32 to vector<8x640xf32>
    %254 = arith.maximumf %252, %253 : vector<8x640xf32>
    %255 = arith.addf %246, %254 : vector<8x640xf32>
    %256 = vector.extract_strided_slice %11 {offsets = [0, 27], sizes = [8, 1], strides = [1, 1]} : vector<8x80xf32> to vector<8x1xf32>
    %257 = vector.broadcast %256 : vector<8x1xf32> to vector<8x640xf32>
    %258 = arith.subf %257, %9 : vector<8x640xf32>
    %259 = math.absf %258 : vector<8x640xf32>
    %cst_59 = arith.constant 2.000000e-01 : f32
    %260 = vector.broadcast %cst_59 : f32 to vector<8x640xf32>
    %261 = arith.subf %259, %260 : vector<8x640xf32>
    %cst_60 = arith.constant 0.000000e+00 : f32
    %262 = vector.broadcast %cst_60 : f32 to vector<8x640xf32>
    %263 = arith.maximumf %261, %262 : vector<8x640xf32>
    %264 = arith.addf %255, %263 : vector<8x640xf32>
    %265 = vector.extract_strided_slice %11 {offsets = [0, 28], sizes = [8, 1], strides = [1, 1]} : vector<8x80xf32> to vector<8x1xf32>
    %266 = vector.broadcast %265 : vector<8x1xf32> to vector<8x640xf32>
    %267 = arith.subf %266, %9 : vector<8x640xf32>
    %268 = math.absf %267 : vector<8x640xf32>
    %cst_61 = arith.constant 2.000000e-01 : f32
    %269 = vector.broadcast %cst_61 : f32 to vector<8x640xf32>
    %270 = arith.subf %268, %269 : vector<8x640xf32>
    %cst_62 = arith.constant 0.000000e+00 : f32
    %271 = vector.broadcast %cst_62 : f32 to vector<8x640xf32>
    %272 = arith.maximumf %270, %271 : vector<8x640xf32>
    %273 = arith.addf %264, %272 : vector<8x640xf32>
    %274 = vector.extract_strided_slice %11 {offsets = [0, 29], sizes = [8, 1], strides = [1, 1]} : vector<8x80xf32> to vector<8x1xf32>
    %275 = vector.broadcast %274 : vector<8x1xf32> to vector<8x640xf32>
    %276 = arith.subf %275, %9 : vector<8x640xf32>
    %277 = math.absf %276 : vector<8x640xf32>
    %cst_63 = arith.constant 2.000000e-01 : f32
    %278 = vector.broadcast %cst_63 : f32 to vector<8x640xf32>
    %279 = arith.subf %277, %278 : vector<8x640xf32>
    %cst_64 = arith.constant 0.000000e+00 : f32
    %280 = vector.broadcast %cst_64 : f32 to vector<8x640xf32>
    %281 = arith.maximumf %279, %280 : vector<8x640xf32>
    %282 = arith.addf %273, %281 : vector<8x640xf32>
    %283 = vector.extract_strided_slice %11 {offsets = [0, 30], sizes = [8, 1], strides = [1, 1]} : vector<8x80xf32> to vector<8x1xf32>
    %284 = vector.broadcast %283 : vector<8x1xf32> to vector<8x640xf32>
    %285 = arith.subf %284, %9 : vector<8x640xf32>
    %286 = math.absf %285 : vector<8x640xf32>
    %cst_65 = arith.constant 2.000000e-01 : f32
    %287 = vector.broadcast %cst_65 : f32 to vector<8x640xf32>
    %288 = arith.subf %286, %287 : vector<8x640xf32>
    %cst_66 = arith.constant 0.000000e+00 : f32
    %289 = vector.broadcast %cst_66 : f32 to vector<8x640xf32>
    %290 = arith.maximumf %288, %289 : vector<8x640xf32>
    %291 = arith.addf %282, %290 : vector<8x640xf32>
    %292 = vector.extract_strided_slice %11 {offsets = [0, 31], sizes = [8, 1], strides = [1, 1]} : vector<8x80xf32> to vector<8x1xf32>
    %293 = vector.broadcast %292 : vector<8x1xf32> to vector<8x640xf32>
    %294 = arith.subf %293, %9 : vector<8x640xf32>
    %295 = math.absf %294 : vector<8x640xf32>
    %cst_67 = arith.constant 2.000000e-01 : f32
    %296 = vector.broadcast %cst_67 : f32 to vector<8x640xf32>
    %297 = arith.subf %295, %296 : vector<8x640xf32>
    %cst_68 = arith.constant 0.000000e+00 : f32
    %298 = vector.broadcast %cst_68 : f32 to vector<8x640xf32>
    %299 = arith.maximumf %297, %298 : vector<8x640xf32>
    %300 = arith.addf %291, %299 : vector<8x640xf32>
    %301 = vector.extract_strided_slice %11 {offsets = [0, 32], sizes = [8, 1], strides = [1, 1]} : vector<8x80xf32> to vector<8x1xf32>
    %302 = vector.broadcast %301 : vector<8x1xf32> to vector<8x640xf32>
    %303 = arith.subf %302, %9 : vector<8x640xf32>
    %304 = math.absf %303 : vector<8x640xf32>
    %cst_69 = arith.constant 2.000000e-01 : f32
    %305 = vector.broadcast %cst_69 : f32 to vector<8x640xf32>
    %306 = arith.subf %304, %305 : vector<8x640xf32>
    %cst_70 = arith.constant 0.000000e+00 : f32
    %307 = vector.broadcast %cst_70 : f32 to vector<8x640xf32>
    %308 = arith.maximumf %306, %307 : vector<8x640xf32>
    %309 = arith.addf %300, %308 : vector<8x640xf32>
    %310 = vector.extract_strided_slice %11 {offsets = [0, 33], sizes = [8, 1], strides = [1, 1]} : vector<8x80xf32> to vector<8x1xf32>
    %311 = vector.broadcast %310 : vector<8x1xf32> to vector<8x640xf32>
    %312 = arith.subf %311, %9 : vector<8x640xf32>
    %313 = math.absf %312 : vector<8x640xf32>
    %cst_71 = arith.constant 2.000000e-01 : f32
    %314 = vector.broadcast %cst_71 : f32 to vector<8x640xf32>
    %315 = arith.subf %313, %314 : vector<8x640xf32>
    %cst_72 = arith.constant 0.000000e+00 : f32
    %316 = vector.broadcast %cst_72 : f32 to vector<8x640xf32>
    %317 = arith.maximumf %315, %316 : vector<8x640xf32>
    %318 = arith.addf %309, %317 : vector<8x640xf32>
    %319 = vector.extract_strided_slice %11 {offsets = [0, 34], sizes = [8, 1], strides = [1, 1]} : vector<8x80xf32> to vector<8x1xf32>
    %320 = vector.broadcast %319 : vector<8x1xf32> to vector<8x640xf32>
    %321 = arith.subf %320, %9 : vector<8x640xf32>
    %322 = math.absf %321 : vector<8x640xf32>
    %cst_73 = arith.constant 2.000000e-01 : f32
    %323 = vector.broadcast %cst_73 : f32 to vector<8x640xf32>
    %324 = arith.subf %322, %323 : vector<8x640xf32>
    %cst_74 = arith.constant 0.000000e+00 : f32
    %325 = vector.broadcast %cst_74 : f32 to vector<8x640xf32>
    %326 = arith.maximumf %324, %325 : vector<8x640xf32>
    %327 = arith.addf %318, %326 : vector<8x640xf32>
    %328 = vector.extract_strided_slice %11 {offsets = [0, 35], sizes = [8, 1], strides = [1, 1]} : vector<8x80xf32> to vector<8x1xf32>
    %329 = vector.broadcast %328 : vector<8x1xf32> to vector<8x640xf32>
    %330 = arith.subf %329, %9 : vector<8x640xf32>
    %331 = math.absf %330 : vector<8x640xf32>
    %cst_75 = arith.constant 2.000000e-01 : f32
    %332 = vector.broadcast %cst_75 : f32 to vector<8x640xf32>
    %333 = arith.subf %331, %332 : vector<8x640xf32>
    %cst_76 = arith.constant 0.000000e+00 : f32
    %334 = vector.broadcast %cst_76 : f32 to vector<8x640xf32>
    %335 = arith.maximumf %333, %334 : vector<8x640xf32>
    %336 = arith.addf %327, %335 : vector<8x640xf32>
    %337 = vector.extract_strided_slice %11 {offsets = [0, 36], sizes = [8, 1], strides = [1, 1]} : vector<8x80xf32> to vector<8x1xf32>
    %338 = vector.broadcast %337 : vector<8x1xf32> to vector<8x640xf32>
    %339 = arith.subf %338, %9 : vector<8x640xf32>
    %340 = math.absf %339 : vector<8x640xf32>
    %cst_77 = arith.constant 2.000000e-01 : f32
    %341 = vector.broadcast %cst_77 : f32 to vector<8x640xf32>
    %342 = arith.subf %340, %341 : vector<8x640xf32>
    %cst_78 = arith.constant 0.000000e+00 : f32
    %343 = vector.broadcast %cst_78 : f32 to vector<8x640xf32>
    %344 = arith.maximumf %342, %343 : vector<8x640xf32>
    %345 = arith.addf %336, %344 : vector<8x640xf32>
    %346 = vector.extract_strided_slice %11 {offsets = [0, 37], sizes = [8, 1], strides = [1, 1]} : vector<8x80xf32> to vector<8x1xf32>
    %347 = vector.broadcast %346 : vector<8x1xf32> to vector<8x640xf32>
    %348 = arith.subf %347, %9 : vector<8x640xf32>
    %349 = math.absf %348 : vector<8x640xf32>
    %cst_79 = arith.constant 2.000000e-01 : f32
    %350 = vector.broadcast %cst_79 : f32 to vector<8x640xf32>
    %351 = arith.subf %349, %350 : vector<8x640xf32>
    %cst_80 = arith.constant 0.000000e+00 : f32
    %352 = vector.broadcast %cst_80 : f32 to vector<8x640xf32>
    %353 = arith.maximumf %351, %352 : vector<8x640xf32>
    %354 = arith.addf %345, %353 : vector<8x640xf32>
    %355 = vector.extract_strided_slice %11 {offsets = [0, 38], sizes = [8, 1], strides = [1, 1]} : vector<8x80xf32> to vector<8x1xf32>
    %356 = vector.broadcast %355 : vector<8x1xf32> to vector<8x640xf32>
    %357 = arith.subf %356, %9 : vector<8x640xf32>
    %358 = math.absf %357 : vector<8x640xf32>
    %cst_81 = arith.constant 2.000000e-01 : f32
    %359 = vector.broadcast %cst_81 : f32 to vector<8x640xf32>
    %360 = arith.subf %358, %359 : vector<8x640xf32>
    %cst_82 = arith.constant 0.000000e+00 : f32
    %361 = vector.broadcast %cst_82 : f32 to vector<8x640xf32>
    %362 = arith.maximumf %360, %361 : vector<8x640xf32>
    %363 = arith.addf %354, %362 : vector<8x640xf32>
    %364 = vector.extract_strided_slice %11 {offsets = [0, 39], sizes = [8, 1], strides = [1, 1]} : vector<8x80xf32> to vector<8x1xf32>
    %365 = vector.broadcast %364 : vector<8x1xf32> to vector<8x640xf32>
    %366 = arith.subf %365, %9 : vector<8x640xf32>
    %367 = math.absf %366 : vector<8x640xf32>
    %cst_83 = arith.constant 2.000000e-01 : f32
    %368 = vector.broadcast %cst_83 : f32 to vector<8x640xf32>
    %369 = arith.subf %367, %368 : vector<8x640xf32>
    %cst_84 = arith.constant 0.000000e+00 : f32
    %370 = vector.broadcast %cst_84 : f32 to vector<8x640xf32>
    %371 = arith.maximumf %369, %370 : vector<8x640xf32>
    %372 = arith.addf %363, %371 : vector<8x640xf32>
    %373 = vector.extract_strided_slice %11 {offsets = [0, 40], sizes = [8, 1], strides = [1, 1]} : vector<8x80xf32> to vector<8x1xf32>
    %374 = vector.broadcast %373 : vector<8x1xf32> to vector<8x640xf32>
    %375 = arith.subf %374, %9 : vector<8x640xf32>
    %376 = math.absf %375 : vector<8x640xf32>
    %cst_85 = arith.constant 2.000000e-01 : f32
    %377 = vector.broadcast %cst_85 : f32 to vector<8x640xf32>
    %378 = arith.subf %376, %377 : vector<8x640xf32>
    %cst_86 = arith.constant 0.000000e+00 : f32
    %379 = vector.broadcast %cst_86 : f32 to vector<8x640xf32>
    %380 = arith.maximumf %378, %379 : vector<8x640xf32>
    %381 = arith.addf %372, %380 : vector<8x640xf32>
    %382 = vector.extract_strided_slice %11 {offsets = [0, 41], sizes = [8, 1], strides = [1, 1]} : vector<8x80xf32> to vector<8x1xf32>
    %383 = vector.broadcast %382 : vector<8x1xf32> to vector<8x640xf32>
    %384 = arith.subf %383, %9 : vector<8x640xf32>
    %385 = math.absf %384 : vector<8x640xf32>
    %cst_87 = arith.constant 2.000000e-01 : f32
    %386 = vector.broadcast %cst_87 : f32 to vector<8x640xf32>
    %387 = arith.subf %385, %386 : vector<8x640xf32>
    %cst_88 = arith.constant 0.000000e+00 : f32
    %388 = vector.broadcast %cst_88 : f32 to vector<8x640xf32>
    %389 = arith.maximumf %387, %388 : vector<8x640xf32>
    %390 = arith.addf %381, %389 : vector<8x640xf32>
    %391 = vector.extract_strided_slice %11 {offsets = [0, 42], sizes = [8, 1], strides = [1, 1]} : vector<8x80xf32> to vector<8x1xf32>
    %392 = vector.broadcast %391 : vector<8x1xf32> to vector<8x640xf32>
    %393 = arith.subf %392, %9 : vector<8x640xf32>
    %394 = math.absf %393 : vector<8x640xf32>
    %cst_89 = arith.constant 2.000000e-01 : f32
    %395 = vector.broadcast %cst_89 : f32 to vector<8x640xf32>
    %396 = arith.subf %394, %395 : vector<8x640xf32>
    %cst_90 = arith.constant 0.000000e+00 : f32
    %397 = vector.broadcast %cst_90 : f32 to vector<8x640xf32>
    %398 = arith.maximumf %396, %397 : vector<8x640xf32>
    %399 = arith.addf %390, %398 : vector<8x640xf32>
    %400 = vector.extract_strided_slice %11 {offsets = [0, 43], sizes = [8, 1], strides = [1, 1]} : vector<8x80xf32> to vector<8x1xf32>
    %401 = vector.broadcast %400 : vector<8x1xf32> to vector<8x640xf32>
    %402 = arith.subf %401, %9 : vector<8x640xf32>
    %403 = math.absf %402 : vector<8x640xf32>
    %cst_91 = arith.constant 2.000000e-01 : f32
    %404 = vector.broadcast %cst_91 : f32 to vector<8x640xf32>
    %405 = arith.subf %403, %404 : vector<8x640xf32>
    %cst_92 = arith.constant 0.000000e+00 : f32
    %406 = vector.broadcast %cst_92 : f32 to vector<8x640xf32>
    %407 = arith.maximumf %405, %406 : vector<8x640xf32>
    %408 = arith.addf %399, %407 : vector<8x640xf32>
    %409 = vector.extract_strided_slice %11 {offsets = [0, 44], sizes = [8, 1], strides = [1, 1]} : vector<8x80xf32> to vector<8x1xf32>
    %410 = vector.broadcast %409 : vector<8x1xf32> to vector<8x640xf32>
    %411 = arith.subf %410, %9 : vector<8x640xf32>
    %412 = math.absf %411 : vector<8x640xf32>
    %cst_93 = arith.constant 2.000000e-01 : f32
    %413 = vector.broadcast %cst_93 : f32 to vector<8x640xf32>
    %414 = arith.subf %412, %413 : vector<8x640xf32>
    %cst_94 = arith.constant 0.000000e+00 : f32
    %415 = vector.broadcast %cst_94 : f32 to vector<8x640xf32>
    %416 = arith.maximumf %414, %415 : vector<8x640xf32>
    %417 = arith.addf %408, %416 : vector<8x640xf32>
    %418 = vector.extract_strided_slice %11 {offsets = [0, 45], sizes = [8, 1], strides = [1, 1]} : vector<8x80xf32> to vector<8x1xf32>
    %419 = vector.broadcast %418 : vector<8x1xf32> to vector<8x640xf32>
    %420 = arith.subf %419, %9 : vector<8x640xf32>
    %421 = math.absf %420 : vector<8x640xf32>
    %cst_95 = arith.constant 2.000000e-01 : f32
    %422 = vector.broadcast %cst_95 : f32 to vector<8x640xf32>
    %423 = arith.subf %421, %422 : vector<8x640xf32>
    %cst_96 = arith.constant 0.000000e+00 : f32
    %424 = vector.broadcast %cst_96 : f32 to vector<8x640xf32>
    %425 = arith.maximumf %423, %424 : vector<8x640xf32>
    %426 = arith.addf %417, %425 : vector<8x640xf32>
    %427 = vector.extract_strided_slice %11 {offsets = [0, 46], sizes = [8, 1], strides = [1, 1]} : vector<8x80xf32> to vector<8x1xf32>
    %428 = vector.broadcast %427 : vector<8x1xf32> to vector<8x640xf32>
    %429 = arith.subf %428, %9 : vector<8x640xf32>
    %430 = math.absf %429 : vector<8x640xf32>
    %cst_97 = arith.constant 2.000000e-01 : f32
    %431 = vector.broadcast %cst_97 : f32 to vector<8x640xf32>
    %432 = arith.subf %430, %431 : vector<8x640xf32>
    %cst_98 = arith.constant 0.000000e+00 : f32
    %433 = vector.broadcast %cst_98 : f32 to vector<8x640xf32>
    %434 = arith.maximumf %432, %433 : vector<8x640xf32>
    %435 = arith.addf %426, %434 : vector<8x640xf32>
    %436 = vector.extract_strided_slice %11 {offsets = [0, 47], sizes = [8, 1], strides = [1, 1]} : vector<8x80xf32> to vector<8x1xf32>
    %437 = vector.broadcast %436 : vector<8x1xf32> to vector<8x640xf32>
    %438 = arith.subf %437, %9 : vector<8x640xf32>
    %439 = math.absf %438 : vector<8x640xf32>
    %cst_99 = arith.constant 2.000000e-01 : f32
    %440 = vector.broadcast %cst_99 : f32 to vector<8x640xf32>
    %441 = arith.subf %439, %440 : vector<8x640xf32>
    %cst_100 = arith.constant 0.000000e+00 : f32
    %442 = vector.broadcast %cst_100 : f32 to vector<8x640xf32>
    %443 = arith.maximumf %441, %442 : vector<8x640xf32>
    %444 = arith.addf %435, %443 : vector<8x640xf32>
    %445 = vector.extract_strided_slice %11 {offsets = [0, 48], sizes = [8, 1], strides = [1, 1]} : vector<8x80xf32> to vector<8x1xf32>
    %446 = vector.broadcast %445 : vector<8x1xf32> to vector<8x640xf32>
    %447 = arith.subf %446, %9 : vector<8x640xf32>
    %448 = math.absf %447 : vector<8x640xf32>
    %cst_101 = arith.constant 2.000000e-01 : f32
    %449 = vector.broadcast %cst_101 : f32 to vector<8x640xf32>
    %450 = arith.subf %448, %449 : vector<8x640xf32>
    %cst_102 = arith.constant 0.000000e+00 : f32
    %451 = vector.broadcast %cst_102 : f32 to vector<8x640xf32>
    %452 = arith.maximumf %450, %451 : vector<8x640xf32>
    %453 = arith.addf %444, %452 : vector<8x640xf32>
    %454 = vector.extract_strided_slice %11 {offsets = [0, 49], sizes = [8, 1], strides = [1, 1]} : vector<8x80xf32> to vector<8x1xf32>
    %455 = vector.broadcast %454 : vector<8x1xf32> to vector<8x640xf32>
    %456 = arith.subf %455, %9 : vector<8x640xf32>
    %457 = math.absf %456 : vector<8x640xf32>
    %cst_103 = arith.constant 2.000000e-01 : f32
    %458 = vector.broadcast %cst_103 : f32 to vector<8x640xf32>
    %459 = arith.subf %457, %458 : vector<8x640xf32>
    %cst_104 = arith.constant 0.000000e+00 : f32
    %460 = vector.broadcast %cst_104 : f32 to vector<8x640xf32>
    %461 = arith.maximumf %459, %460 : vector<8x640xf32>
    %462 = arith.addf %453, %461 : vector<8x640xf32>
    %463 = vector.extract_strided_slice %11 {offsets = [0, 50], sizes = [8, 1], strides = [1, 1]} : vector<8x80xf32> to vector<8x1xf32>
    %464 = vector.broadcast %463 : vector<8x1xf32> to vector<8x640xf32>
    %465 = arith.subf %464, %9 : vector<8x640xf32>
    %466 = math.absf %465 : vector<8x640xf32>
    %cst_105 = arith.constant 2.000000e-01 : f32
    %467 = vector.broadcast %cst_105 : f32 to vector<8x640xf32>
    %468 = arith.subf %466, %467 : vector<8x640xf32>
    %cst_106 = arith.constant 0.000000e+00 : f32
    %469 = vector.broadcast %cst_106 : f32 to vector<8x640xf32>
    %470 = arith.maximumf %468, %469 : vector<8x640xf32>
    %471 = arith.addf %462, %470 : vector<8x640xf32>
    %472 = vector.extract_strided_slice %11 {offsets = [0, 51], sizes = [8, 1], strides = [1, 1]} : vector<8x80xf32> to vector<8x1xf32>
    %473 = vector.broadcast %472 : vector<8x1xf32> to vector<8x640xf32>
    %474 = arith.subf %473, %9 : vector<8x640xf32>
    %475 = math.absf %474 : vector<8x640xf32>
    %cst_107 = arith.constant 2.000000e-01 : f32
    %476 = vector.broadcast %cst_107 : f32 to vector<8x640xf32>
    %477 = arith.subf %475, %476 : vector<8x640xf32>
    %cst_108 = arith.constant 0.000000e+00 : f32
    %478 = vector.broadcast %cst_108 : f32 to vector<8x640xf32>
    %479 = arith.maximumf %477, %478 : vector<8x640xf32>
    %480 = arith.addf %471, %479 : vector<8x640xf32>
    %481 = vector.extract_strided_slice %11 {offsets = [0, 52], sizes = [8, 1], strides = [1, 1]} : vector<8x80xf32> to vector<8x1xf32>
    %482 = vector.broadcast %481 : vector<8x1xf32> to vector<8x640xf32>
    %483 = arith.subf %482, %9 : vector<8x640xf32>
    %484 = math.absf %483 : vector<8x640xf32>
    %cst_109 = arith.constant 2.000000e-01 : f32
    %485 = vector.broadcast %cst_109 : f32 to vector<8x640xf32>
    %486 = arith.subf %484, %485 : vector<8x640xf32>
    %cst_110 = arith.constant 0.000000e+00 : f32
    %487 = vector.broadcast %cst_110 : f32 to vector<8x640xf32>
    %488 = arith.maximumf %486, %487 : vector<8x640xf32>
    %489 = arith.addf %480, %488 : vector<8x640xf32>
    %490 = vector.extract_strided_slice %11 {offsets = [0, 53], sizes = [8, 1], strides = [1, 1]} : vector<8x80xf32> to vector<8x1xf32>
    %491 = vector.broadcast %490 : vector<8x1xf32> to vector<8x640xf32>
    %492 = arith.subf %491, %9 : vector<8x640xf32>
    %493 = math.absf %492 : vector<8x640xf32>
    %cst_111 = arith.constant 2.000000e-01 : f32
    %494 = vector.broadcast %cst_111 : f32 to vector<8x640xf32>
    %495 = arith.subf %493, %494 : vector<8x640xf32>
    %cst_112 = arith.constant 0.000000e+00 : f32
    %496 = vector.broadcast %cst_112 : f32 to vector<8x640xf32>
    %497 = arith.maximumf %495, %496 : vector<8x640xf32>
    %498 = arith.addf %489, %497 : vector<8x640xf32>
    %499 = vector.extract_strided_slice %11 {offsets = [0, 54], sizes = [8, 1], strides = [1, 1]} : vector<8x80xf32> to vector<8x1xf32>
    %500 = vector.broadcast %499 : vector<8x1xf32> to vector<8x640xf32>
    %501 = arith.subf %500, %9 : vector<8x640xf32>
    %502 = math.absf %501 : vector<8x640xf32>
    %cst_113 = arith.constant 2.000000e-01 : f32
    %503 = vector.broadcast %cst_113 : f32 to vector<8x640xf32>
    %504 = arith.subf %502, %503 : vector<8x640xf32>
    %cst_114 = arith.constant 0.000000e+00 : f32
    %505 = vector.broadcast %cst_114 : f32 to vector<8x640xf32>
    %506 = arith.maximumf %504, %505 : vector<8x640xf32>
    %507 = arith.addf %498, %506 : vector<8x640xf32>
    %508 = vector.extract_strided_slice %11 {offsets = [0, 55], sizes = [8, 1], strides = [1, 1]} : vector<8x80xf32> to vector<8x1xf32>
    %509 = vector.broadcast %508 : vector<8x1xf32> to vector<8x640xf32>
    %510 = arith.subf %509, %9 : vector<8x640xf32>
    %511 = math.absf %510 : vector<8x640xf32>
    %cst_115 = arith.constant 2.000000e-01 : f32
    %512 = vector.broadcast %cst_115 : f32 to vector<8x640xf32>
    %513 = arith.subf %511, %512 : vector<8x640xf32>
    %cst_116 = arith.constant 0.000000e+00 : f32
    %514 = vector.broadcast %cst_116 : f32 to vector<8x640xf32>
    %515 = arith.maximumf %513, %514 : vector<8x640xf32>
    %516 = arith.addf %507, %515 : vector<8x640xf32>
    %517 = vector.extract_strided_slice %11 {offsets = [0, 56], sizes = [8, 1], strides = [1, 1]} : vector<8x80xf32> to vector<8x1xf32>
    %518 = vector.broadcast %517 : vector<8x1xf32> to vector<8x640xf32>
    %519 = arith.subf %518, %9 : vector<8x640xf32>
    %520 = math.absf %519 : vector<8x640xf32>
    %cst_117 = arith.constant 2.000000e-01 : f32
    %521 = vector.broadcast %cst_117 : f32 to vector<8x640xf32>
    %522 = arith.subf %520, %521 : vector<8x640xf32>
    %cst_118 = arith.constant 0.000000e+00 : f32
    %523 = vector.broadcast %cst_118 : f32 to vector<8x640xf32>
    %524 = arith.maximumf %522, %523 : vector<8x640xf32>
    %525 = arith.addf %516, %524 : vector<8x640xf32>
    %526 = vector.extract_strided_slice %11 {offsets = [0, 57], sizes = [8, 1], strides = [1, 1]} : vector<8x80xf32> to vector<8x1xf32>
    %527 = vector.broadcast %526 : vector<8x1xf32> to vector<8x640xf32>
    %528 = arith.subf %527, %9 : vector<8x640xf32>
    %529 = math.absf %528 : vector<8x640xf32>
    %cst_119 = arith.constant 2.000000e-01 : f32
    %530 = vector.broadcast %cst_119 : f32 to vector<8x640xf32>
    %531 = arith.subf %529, %530 : vector<8x640xf32>
    %cst_120 = arith.constant 0.000000e+00 : f32
    %532 = vector.broadcast %cst_120 : f32 to vector<8x640xf32>
    %533 = arith.maximumf %531, %532 : vector<8x640xf32>
    %534 = arith.addf %525, %533 : vector<8x640xf32>
    %535 = vector.extract_strided_slice %11 {offsets = [0, 58], sizes = [8, 1], strides = [1, 1]} : vector<8x80xf32> to vector<8x1xf32>
    %536 = vector.broadcast %535 : vector<8x1xf32> to vector<8x640xf32>
    %537 = arith.subf %536, %9 : vector<8x640xf32>
    %538 = math.absf %537 : vector<8x640xf32>
    %cst_121 = arith.constant 2.000000e-01 : f32
    %539 = vector.broadcast %cst_121 : f32 to vector<8x640xf32>
    %540 = arith.subf %538, %539 : vector<8x640xf32>
    %cst_122 = arith.constant 0.000000e+00 : f32
    %541 = vector.broadcast %cst_122 : f32 to vector<8x640xf32>
    %542 = arith.maximumf %540, %541 : vector<8x640xf32>
    %543 = arith.addf %534, %542 : vector<8x640xf32>
    %544 = vector.extract_strided_slice %11 {offsets = [0, 59], sizes = [8, 1], strides = [1, 1]} : vector<8x80xf32> to vector<8x1xf32>
    %545 = vector.broadcast %544 : vector<8x1xf32> to vector<8x640xf32>
    %546 = arith.subf %545, %9 : vector<8x640xf32>
    %547 = math.absf %546 : vector<8x640xf32>
    %cst_123 = arith.constant 2.000000e-01 : f32
    %548 = vector.broadcast %cst_123 : f32 to vector<8x640xf32>
    %549 = arith.subf %547, %548 : vector<8x640xf32>
    %cst_124 = arith.constant 0.000000e+00 : f32
    %550 = vector.broadcast %cst_124 : f32 to vector<8x640xf32>
    %551 = arith.maximumf %549, %550 : vector<8x640xf32>
    %552 = arith.addf %543, %551 : vector<8x640xf32>
    %553 = vector.extract_strided_slice %11 {offsets = [0, 60], sizes = [8, 1], strides = [1, 1]} : vector<8x80xf32> to vector<8x1xf32>
    %554 = vector.broadcast %553 : vector<8x1xf32> to vector<8x640xf32>
    %555 = arith.subf %554, %9 : vector<8x640xf32>
    %556 = math.absf %555 : vector<8x640xf32>
    %cst_125 = arith.constant 2.000000e-01 : f32
    %557 = vector.broadcast %cst_125 : f32 to vector<8x640xf32>
    %558 = arith.subf %556, %557 : vector<8x640xf32>
    %cst_126 = arith.constant 0.000000e+00 : f32
    %559 = vector.broadcast %cst_126 : f32 to vector<8x640xf32>
    %560 = arith.maximumf %558, %559 : vector<8x640xf32>
    %561 = arith.addf %552, %560 : vector<8x640xf32>
    %562 = vector.extract_strided_slice %11 {offsets = [0, 61], sizes = [8, 1], strides = [1, 1]} : vector<8x80xf32> to vector<8x1xf32>
    %563 = vector.broadcast %562 : vector<8x1xf32> to vector<8x640xf32>
    %564 = arith.subf %563, %9 : vector<8x640xf32>
    %565 = math.absf %564 : vector<8x640xf32>
    %cst_127 = arith.constant 2.000000e-01 : f32
    %566 = vector.broadcast %cst_127 : f32 to vector<8x640xf32>
    %567 = arith.subf %565, %566 : vector<8x640xf32>
    %cst_128 = arith.constant 0.000000e+00 : f32
    %568 = vector.broadcast %cst_128 : f32 to vector<8x640xf32>
    %569 = arith.maximumf %567, %568 : vector<8x640xf32>
    %570 = arith.addf %561, %569 : vector<8x640xf32>
    %571 = vector.extract_strided_slice %11 {offsets = [0, 62], sizes = [8, 1], strides = [1, 1]} : vector<8x80xf32> to vector<8x1xf32>
    %572 = vector.broadcast %571 : vector<8x1xf32> to vector<8x640xf32>
    %573 = arith.subf %572, %9 : vector<8x640xf32>
    %574 = math.absf %573 : vector<8x640xf32>
    %cst_129 = arith.constant 2.000000e-01 : f32
    %575 = vector.broadcast %cst_129 : f32 to vector<8x640xf32>
    %576 = arith.subf %574, %575 : vector<8x640xf32>
    %cst_130 = arith.constant 0.000000e+00 : f32
    %577 = vector.broadcast %cst_130 : f32 to vector<8x640xf32>
    %578 = arith.maximumf %576, %577 : vector<8x640xf32>
    %579 = arith.addf %570, %578 : vector<8x640xf32>
    %580 = vector.extract_strided_slice %11 {offsets = [0, 63], sizes = [8, 1], strides = [1, 1]} : vector<8x80xf32> to vector<8x1xf32>
    %581 = vector.broadcast %580 : vector<8x1xf32> to vector<8x640xf32>
    %582 = arith.subf %581, %9 : vector<8x640xf32>
    %583 = math.absf %582 : vector<8x640xf32>
    %cst_131 = arith.constant 2.000000e-01 : f32
    %584 = vector.broadcast %cst_131 : f32 to vector<8x640xf32>
    %585 = arith.subf %583, %584 : vector<8x640xf32>
    %cst_132 = arith.constant 0.000000e+00 : f32
    %586 = vector.broadcast %cst_132 : f32 to vector<8x640xf32>
    %587 = arith.maximumf %585, %586 : vector<8x640xf32>
    %588 = arith.addf %579, %587 : vector<8x640xf32>
    %589 = vector.extract_strided_slice %11 {offsets = [0, 64], sizes = [8, 1], strides = [1, 1]} : vector<8x80xf32> to vector<8x1xf32>
    %590 = vector.broadcast %589 : vector<8x1xf32> to vector<8x640xf32>
    %591 = arith.subf %590, %9 : vector<8x640xf32>
    %592 = math.absf %591 : vector<8x640xf32>
    %cst_133 = arith.constant 2.000000e-01 : f32
    %593 = vector.broadcast %cst_133 : f32 to vector<8x640xf32>
    %594 = arith.subf %592, %593 : vector<8x640xf32>
    %cst_134 = arith.constant 0.000000e+00 : f32
    %595 = vector.broadcast %cst_134 : f32 to vector<8x640xf32>
    %596 = arith.maximumf %594, %595 : vector<8x640xf32>
    %597 = arith.addf %588, %596 : vector<8x640xf32>
    %598 = vector.extract_strided_slice %11 {offsets = [0, 65], sizes = [8, 1], strides = [1, 1]} : vector<8x80xf32> to vector<8x1xf32>
    %599 = vector.broadcast %598 : vector<8x1xf32> to vector<8x640xf32>
    %600 = arith.subf %599, %9 : vector<8x640xf32>
    %601 = math.absf %600 : vector<8x640xf32>
    %cst_135 = arith.constant 2.000000e-01 : f32
    %602 = vector.broadcast %cst_135 : f32 to vector<8x640xf32>
    %603 = arith.subf %601, %602 : vector<8x640xf32>
    %cst_136 = arith.constant 0.000000e+00 : f32
    %604 = vector.broadcast %cst_136 : f32 to vector<8x640xf32>
    %605 = arith.maximumf %603, %604 : vector<8x640xf32>
    %606 = arith.addf %597, %605 : vector<8x640xf32>
    %607 = vector.extract_strided_slice %11 {offsets = [0, 66], sizes = [8, 1], strides = [1, 1]} : vector<8x80xf32> to vector<8x1xf32>
    %608 = vector.broadcast %607 : vector<8x1xf32> to vector<8x640xf32>
    %609 = arith.subf %608, %9 : vector<8x640xf32>
    %610 = math.absf %609 : vector<8x640xf32>
    %cst_137 = arith.constant 2.000000e-01 : f32
    %611 = vector.broadcast %cst_137 : f32 to vector<8x640xf32>
    %612 = arith.subf %610, %611 : vector<8x640xf32>
    %cst_138 = arith.constant 0.000000e+00 : f32
    %613 = vector.broadcast %cst_138 : f32 to vector<8x640xf32>
    %614 = arith.maximumf %612, %613 : vector<8x640xf32>
    %615 = arith.addf %606, %614 : vector<8x640xf32>
    %616 = vector.extract_strided_slice %11 {offsets = [0, 67], sizes = [8, 1], strides = [1, 1]} : vector<8x80xf32> to vector<8x1xf32>
    %617 = vector.broadcast %616 : vector<8x1xf32> to vector<8x640xf32>
    %618 = arith.subf %617, %9 : vector<8x640xf32>
    %619 = math.absf %618 : vector<8x640xf32>
    %cst_139 = arith.constant 2.000000e-01 : f32
    %620 = vector.broadcast %cst_139 : f32 to vector<8x640xf32>
    %621 = arith.subf %619, %620 : vector<8x640xf32>
    %cst_140 = arith.constant 0.000000e+00 : f32
    %622 = vector.broadcast %cst_140 : f32 to vector<8x640xf32>
    %623 = arith.maximumf %621, %622 : vector<8x640xf32>
    %624 = arith.addf %615, %623 : vector<8x640xf32>
    %625 = vector.extract_strided_slice %11 {offsets = [0, 68], sizes = [8, 1], strides = [1, 1]} : vector<8x80xf32> to vector<8x1xf32>
    %626 = vector.broadcast %625 : vector<8x1xf32> to vector<8x640xf32>
    %627 = arith.subf %626, %9 : vector<8x640xf32>
    %628 = math.absf %627 : vector<8x640xf32>
    %cst_141 = arith.constant 2.000000e-01 : f32
    %629 = vector.broadcast %cst_141 : f32 to vector<8x640xf32>
    %630 = arith.subf %628, %629 : vector<8x640xf32>
    %cst_142 = arith.constant 0.000000e+00 : f32
    %631 = vector.broadcast %cst_142 : f32 to vector<8x640xf32>
    %632 = arith.maximumf %630, %631 : vector<8x640xf32>
    %633 = arith.addf %624, %632 : vector<8x640xf32>
    %634 = vector.extract_strided_slice %11 {offsets = [0, 69], sizes = [8, 1], strides = [1, 1]} : vector<8x80xf32> to vector<8x1xf32>
    %635 = vector.broadcast %634 : vector<8x1xf32> to vector<8x640xf32>
    %636 = arith.subf %635, %9 : vector<8x640xf32>
    %637 = math.absf %636 : vector<8x640xf32>
    %cst_143 = arith.constant 2.000000e-01 : f32
    %638 = vector.broadcast %cst_143 : f32 to vector<8x640xf32>
    %639 = arith.subf %637, %638 : vector<8x640xf32>
    %cst_144 = arith.constant 0.000000e+00 : f32
    %640 = vector.broadcast %cst_144 : f32 to vector<8x640xf32>
    %641 = arith.maximumf %639, %640 : vector<8x640xf32>
    %642 = arith.addf %633, %641 : vector<8x640xf32>
    %643 = vector.extract_strided_slice %11 {offsets = [0, 70], sizes = [8, 1], strides = [1, 1]} : vector<8x80xf32> to vector<8x1xf32>
    %644 = vector.broadcast %643 : vector<8x1xf32> to vector<8x640xf32>
    %645 = arith.subf %644, %9 : vector<8x640xf32>
    %646 = math.absf %645 : vector<8x640xf32>
    %cst_145 = arith.constant 2.000000e-01 : f32
    %647 = vector.broadcast %cst_145 : f32 to vector<8x640xf32>
    %648 = arith.subf %646, %647 : vector<8x640xf32>
    %cst_146 = arith.constant 0.000000e+00 : f32
    %649 = vector.broadcast %cst_146 : f32 to vector<8x640xf32>
    %650 = arith.maximumf %648, %649 : vector<8x640xf32>
    %651 = arith.addf %642, %650 : vector<8x640xf32>
    %652 = vector.extract_strided_slice %11 {offsets = [0, 71], sizes = [8, 1], strides = [1, 1]} : vector<8x80xf32> to vector<8x1xf32>
    %653 = vector.broadcast %652 : vector<8x1xf32> to vector<8x640xf32>
    %654 = arith.subf %653, %9 : vector<8x640xf32>
    %655 = math.absf %654 : vector<8x640xf32>
    %cst_147 = arith.constant 2.000000e-01 : f32
    %656 = vector.broadcast %cst_147 : f32 to vector<8x640xf32>
    %657 = arith.subf %655, %656 : vector<8x640xf32>
    %cst_148 = arith.constant 0.000000e+00 : f32
    %658 = vector.broadcast %cst_148 : f32 to vector<8x640xf32>
    %659 = arith.maximumf %657, %658 : vector<8x640xf32>
    %660 = arith.addf %651, %659 : vector<8x640xf32>
    %661 = vector.extract_strided_slice %11 {offsets = [0, 72], sizes = [8, 1], strides = [1, 1]} : vector<8x80xf32> to vector<8x1xf32>
    %662 = vector.broadcast %661 : vector<8x1xf32> to vector<8x640xf32>
    %663 = arith.subf %662, %9 : vector<8x640xf32>
    %664 = math.absf %663 : vector<8x640xf32>
    %cst_149 = arith.constant 2.000000e-01 : f32
    %665 = vector.broadcast %cst_149 : f32 to vector<8x640xf32>
    %666 = arith.subf %664, %665 : vector<8x640xf32>
    %cst_150 = arith.constant 0.000000e+00 : f32
    %667 = vector.broadcast %cst_150 : f32 to vector<8x640xf32>
    %668 = arith.maximumf %666, %667 : vector<8x640xf32>
    %669 = arith.addf %660, %668 : vector<8x640xf32>
    %670 = vector.extract_strided_slice %11 {offsets = [0, 73], sizes = [8, 1], strides = [1, 1]} : vector<8x80xf32> to vector<8x1xf32>
    %671 = vector.broadcast %670 : vector<8x1xf32> to vector<8x640xf32>
    %672 = arith.subf %671, %9 : vector<8x640xf32>
    %673 = math.absf %672 : vector<8x640xf32>
    %cst_151 = arith.constant 2.000000e-01 : f32
    %674 = vector.broadcast %cst_151 : f32 to vector<8x640xf32>
    %675 = arith.subf %673, %674 : vector<8x640xf32>
    %cst_152 = arith.constant 0.000000e+00 : f32
    %676 = vector.broadcast %cst_152 : f32 to vector<8x640xf32>
    %677 = arith.maximumf %675, %676 : vector<8x640xf32>
    %678 = arith.addf %669, %677 : vector<8x640xf32>
    %679 = vector.extract_strided_slice %11 {offsets = [0, 74], sizes = [8, 1], strides = [1, 1]} : vector<8x80xf32> to vector<8x1xf32>
    %680 = vector.broadcast %679 : vector<8x1xf32> to vector<8x640xf32>
    %681 = arith.subf %680, %9 : vector<8x640xf32>
    %682 = math.absf %681 : vector<8x640xf32>
    %cst_153 = arith.constant 2.000000e-01 : f32
    %683 = vector.broadcast %cst_153 : f32 to vector<8x640xf32>
    %684 = arith.subf %682, %683 : vector<8x640xf32>
    %cst_154 = arith.constant 0.000000e+00 : f32
    %685 = vector.broadcast %cst_154 : f32 to vector<8x640xf32>
    %686 = arith.maximumf %684, %685 : vector<8x640xf32>
    %687 = arith.addf %678, %686 : vector<8x640xf32>
    %688 = vector.extract_strided_slice %11 {offsets = [0, 75], sizes = [8, 1], strides = [1, 1]} : vector<8x80xf32> to vector<8x1xf32>
    %689 = vector.broadcast %688 : vector<8x1xf32> to vector<8x640xf32>
    %690 = arith.subf %689, %9 : vector<8x640xf32>
    %691 = math.absf %690 : vector<8x640xf32>
    %cst_155 = arith.constant 2.000000e-01 : f32
    %692 = vector.broadcast %cst_155 : f32 to vector<8x640xf32>
    %693 = arith.subf %691, %692 : vector<8x640xf32>
    %cst_156 = arith.constant 0.000000e+00 : f32
    %694 = vector.broadcast %cst_156 : f32 to vector<8x640xf32>
    %695 = arith.maximumf %693, %694 : vector<8x640xf32>
    %696 = arith.addf %687, %695 : vector<8x640xf32>
    %697 = vector.extract_strided_slice %11 {offsets = [0, 76], sizes = [8, 1], strides = [1, 1]} : vector<8x80xf32> to vector<8x1xf32>
    %698 = vector.broadcast %697 : vector<8x1xf32> to vector<8x640xf32>
    %699 = arith.subf %698, %9 : vector<8x640xf32>
    %700 = math.absf %699 : vector<8x640xf32>
    %cst_157 = arith.constant 2.000000e-01 : f32
    %701 = vector.broadcast %cst_157 : f32 to vector<8x640xf32>
    %702 = arith.subf %700, %701 : vector<8x640xf32>
    %cst_158 = arith.constant 0.000000e+00 : f32
    %703 = vector.broadcast %cst_158 : f32 to vector<8x640xf32>
    %704 = arith.maximumf %702, %703 : vector<8x640xf32>
    %705 = arith.addf %696, %704 : vector<8x640xf32>
    %706 = vector.extract_strided_slice %11 {offsets = [0, 77], sizes = [8, 1], strides = [1, 1]} : vector<8x80xf32> to vector<8x1xf32>
    %707 = vector.broadcast %706 : vector<8x1xf32> to vector<8x640xf32>
    %708 = arith.subf %707, %9 : vector<8x640xf32>
    %709 = math.absf %708 : vector<8x640xf32>
    %cst_159 = arith.constant 2.000000e-01 : f32
    %710 = vector.broadcast %cst_159 : f32 to vector<8x640xf32>
    %711 = arith.subf %709, %710 : vector<8x640xf32>
    %cst_160 = arith.constant 0.000000e+00 : f32
    %712 = vector.broadcast %cst_160 : f32 to vector<8x640xf32>
    %713 = arith.maximumf %711, %712 : vector<8x640xf32>
    %714 = arith.addf %705, %713 : vector<8x640xf32>
    %715 = vector.extract_strided_slice %11 {offsets = [0, 78], sizes = [8, 1], strides = [1, 1]} : vector<8x80xf32> to vector<8x1xf32>
    %716 = vector.broadcast %715 : vector<8x1xf32> to vector<8x640xf32>
    %717 = arith.subf %716, %9 : vector<8x640xf32>
    %718 = math.absf %717 : vector<8x640xf32>
    %cst_161 = arith.constant 2.000000e-01 : f32
    %719 = vector.broadcast %cst_161 : f32 to vector<8x640xf32>
    %720 = arith.subf %718, %719 : vector<8x640xf32>
    %cst_162 = arith.constant 0.000000e+00 : f32
    %721 = vector.broadcast %cst_162 : f32 to vector<8x640xf32>
    %722 = arith.maximumf %720, %721 : vector<8x640xf32>
    %723 = arith.addf %714, %722 : vector<8x640xf32>
    %724 = vector.extract_strided_slice %11 {offsets = [0, 79], sizes = [8, 1], strides = [1, 1]} : vector<8x80xf32> to vector<8x1xf32>
    %725 = vector.broadcast %724 : vector<8x1xf32> to vector<8x640xf32>
    %726 = arith.subf %725, %9 : vector<8x640xf32>
    %727 = math.absf %726 : vector<8x640xf32>
    %cst_163 = arith.constant 2.000000e-01 : f32
    %728 = vector.broadcast %cst_163 : f32 to vector<8x640xf32>
    %729 = arith.subf %727, %728 : vector<8x640xf32>
    %cst_164 = arith.constant 0.000000e+00 : f32
    %730 = vector.broadcast %cst_164 : f32 to vector<8x640xf32>
    %731 = arith.maximumf %729, %730 : vector<8x640xf32>
    %732 = arith.addf %723, %731 : vector<8x640xf32>
    %c0_165 = arith.constant 0 : index
    %c0_166 = arith.constant 0 : index
    %733 = vector.load %arg8[%c0_165, %c0_166] : memref<8x640xf32, #tpu.memory_space<vmem>>, vector<8x640xf32>
    %734 = vector.broadcast %6 : f32 to vector<8x640xf32>
    %735 = arith.mulf %734, %732 : vector<8x640xf32>
    %736 = arith.addf %733, %735 : vector<8x640xf32>
    %c0_167 = arith.constant 0 : index
    %c0_168 = arith.constant 0 : index
    %737 = vector.load %arg8[%c0_167, %c0_168] : memref<8x640xf32, #tpu.memory_space<vmem>>, vector<8x640xf32>
    tpu.vector_store %arg8[%c0_167, %c0_168], %736 {strides = array<i32>} : memref<8x640xf32, #tpu.memory_space<vmem>>, vector<8x640xf32>,
    %c0_i32_169 = arith.constant 0 : i32
    %738 = arith.cmpi eq, %arg1, %c0_i32_169 : i32
    %739 = arith.extui %738 : i1 to i32
    %c0_i32_170 = arith.constant 0 : i32
    %740 = arith.cmpi ne, %739, %c0_i32_170 : i32
    scf.if %740 {
      %c0_171 = arith.constant 0 : index
      %c0_172 = arith.constant 0 : index
      %741 = vector.load %arg8[%c0_171, %c0_172] : memref<8x640xf32, #tpu.memory_space<vmem>>, vector<8x640xf32>
      %742 = vector.shape_cast %741 : vector<8x640xf32> to vector<1x8x640xf32>
      %cst_173 = arith.constant dense<0.000000e+00> : vector<1xf32>
      %743 = vector.multi_reduction <add>, %742, %cst_173 [1, 2] : vector<1x8x640xf32> to vector<1xf32>
      %744 = vector.shape_cast %743 : vector<1xf32> to vector<1x1x1xf32>
      %745 = vector.extract %744[0, 0, 0] : f32 from vector<1x1x1xf32>
      %c0_174 = arith.constant 0 : index
      %c0_175 = arith.constant 0 : index
      %746 = memref.load %arg7[%c0_174, %c0_175] : memref<1x1xf32, #tpu.memory_space<smem>>
      memref.store %745, %arg7[%c0_174, %c0_175] : memref<1x1xf32, #tpu.memory_space<smem>>
    } else {
    }
    return
  }
  func.func @transform_0(%arg0: i32, %arg1: i32, %arg2: memref<1x1xi32, #tpu.memory_space<smem>>, %arg3: memref<1x1xi32, #tpu.memory_space<smem>>, %arg4: memref<1x1xi32, #tpu.memory_space<smem>>) -> (i32, i32) {
    %0 = arith.index_cast %arg0 : i32 to index
    %1 = arith.index_cast %arg1 : i32 to index
    %2 = memref.load %arg3[%0, %1] : memref<1x1xi32, #tpu.memory_space<smem>>
    %c0_i32 = arith.constant 0 : i32
    %c0_i32_0 = arith.constant 0 : i32
    return %c0_i32, %2 : i32, i32
  }
  func.func @transform_1(%arg0: i32, %arg1: i32, %arg2: memref<1x1xi32, #tpu.memory_space<smem>>, %arg3: memref<1x1xi32, #tpu.memory_space<smem>>, %arg4: memref<1x1xi32, #tpu.memory_space<smem>>) -> (i32, i32, i32) {
    %0 = arith.index_cast %arg0 : i32 to index
    %1 = arith.index_cast %arg1 : i32 to index
    %2 = memref.load %arg2[%0, %1] : memref<1x1xi32, #tpu.memory_space<smem>>
    %c0_i32 = arith.constant 0 : i32
    %c0_i32_0 = arith.constant 0 : i32
    %c0_i32_1 = arith.constant 0 : i32
    return %2, %c0_i32, %c0_i32_0 : i32, i32, i32
  }
  func.func @transform_2(%arg0: i32, %arg1: i32, %arg2: memref<1x1xi32, #tpu.memory_space<smem>>, %arg3: memref<1x1xi32, #tpu.memory_space<smem>>, %arg4: memref<1x1xi32, #tpu.memory_space<smem>>) -> (i32, i32) {
    %c0_i32 = arith.constant 0 : i32
    %c0_i32_0 = arith.constant 0 : i32
    return %arg0, %c0_i32 : i32, i32
  }
}

</mosaic_0001>

<bundles_post_ra>
// kernel: tpu_custom_call.1
= control target key start
LH: loop header
LB: loop body
LE: loop exit
PB: predicated region body
PF: predicated region fallthrough
CT: control target
= control target key end

     0   :  { %v3092_v0 = vmov 2   ;;  %v3093_v1 = vmov 0   ;;  %s3785_s0 = inlined_call_operand.<no memory space> [shape: s32[1,1], index: 0, kind: input, shape index: {}]   ;;  %s3786_s1 = inlined_call_operand.<no memory space> [shape: s32[1,1], index: 1, kind: input, shape index: {}]   ;;  %s3787_s2 = inlined_call_operand.<no memory space> [shape: s32[1,1], index: 2, kind: input, shape index: {}]   ;;  %s3788_s3 = inlined_call_operand.vmem [shape: f32[1,640], index: 3, kind: input, shape index: {}]   ;;  %s3789_s4 = inlined_call_operand.vmem [shape: f32[1,8,80], index: 4, kind: input, shape index: {}]   ;;  %s3790_s5 = inlined_call_operand.hbm [shape: f32[1,1], index: 5, kind: output, shape index: {}]  }
   0x1   :  { %p76_p0 = scmp.lt.s32.totalorder %s3785_s0, 0  ;;  %2999 = vset.pattern.permute.xlu1 %v3092_v0  ;;  %2997 = vset.pattern.permute.xlu0 %v3093_v1 }
   0x2   :  { %13 = vsyncpa [#allocation8], 0  ;;  %v3094_v3 = vmov 3   ;;  %v3095_v4 = vmov 1   ;;  %v3096_v5 = vmov 4   ;;  %v3097_v6 = vmov 5   ;;  %s97_s30 = scvt.s32.f32 %s3787_s2 }
   0x3   :  { %s3792_s0 = smov (!%p76_p0, %s3785_s0), 0  ;;  %v3098_v7 = vmov 6   ;;  %v3099_v8 = vmov 8   ;;  %v3100_v9 = vmov 7   ;;  %v3101_v10 = vmov 11   ;;  %s63_s26 = smul.u32 5, %s3786_s1 }
   0x4   :  { %s2513_s22 = sshll.u32 %s3792_s0, 3  ;;  %v3102_v11 = vmov 9   ;;  %v3103_v12 = vmov 14   ;;  %v3104_v13 = vmov 10   ;;  %v3105_v14 = vmov 17   ;;  %s3080_s8 = scalar_lea.hbm %s3790_s5, 16 }
   0x5   :  { %s3212_s25 = scalar_lea.vmem %s3789_s4, %s2513_s22  ;;  %v3106_v15 = vmov 12   ;;  %v3107_v16 = vmov 20   ;;  %v3108_v17 = vmov 13   ;;  %v3109_v18 = vmov 23   ;;  %p64_p1 = scmp.lt.s32.totalorder %s63_s26, 4 }
   0x6   :  { %v3215_v2 = vld [vmem:[%s3212_s25] sm:$0xff]  ;;  %v3110_v19 = vmov 15   ;;  %v3111_v20 = vmov 26   ;;  %v3112_v21 = vmov 16   ;;  %v3113_v22 = vmov 29   ;;  %p3081_p2 = scmp.ne.s32.totalorder %s3790_s5, %s3080_s8  ;;  %p3084_p3 = scmp.lt.u32.totalorder %s3080_s8, %s3790_s5 }
   0x7   :  { %186 = vperm.xlu1 %2999, %v3215_v2   ;;  %128 = vperm.xlu0 %2997, %v3215_v2   ;;  %v3114_v23 = vmov 18   ;;  %v3115_v24 = vmov 32   ;;  %v3116_v25 = vmov 19   ;;  %v3117_v26 = vmov 35   ;;  %s3794_s26 = smov (!%p64_p1, %s63_s26), 4 }
   0x8   :  { %v3118_v27 = vmov 21   ;;  %v3119_v28 = vmov 38   ;;  %v3120_v29 = vmov 22   ;;  %v3121_v30 = vmov 41   ;;  %s66_s1 = scalar_lea.vmem %s3788_s3, %s3794_s26  ;;  %p3086_p4 = pnand %p3084_p3, %p3081_p2 }
   0x9   :  { %v3122_v31 = vmov 24   ;;  %v3123_v32 = vmov 44   ;;  %v3124_v33 = vmov 25   ;;  %v3125_v34 = vmov 47   ;;  %v98_v52 = vld [vmem:[%s66_s1] sm:$0x1f] }
   0xa   :  { %v3126_v35 = vmov 27   ;;  %v3127_v36 = vmov 50   ;;  %v3128_v37 = vmov 28   ;;  %v3129_v38 = vmov 53  }
   0xb   :  { %3000 = vset.pattern.permute.xlu1 %v3094_v3  ;;  %2998 = vset.pattern.permute.xlu0 %v3095_v4  ;;  %v3130_v39 = vmov 30   ;;  %v3131_v40 = vmov 31   ;;  %v3132_v41 = vmov 33   ;;  %v3133_v42 = vmov 56  }
   0xc   :  { %215 = vperm.xlu1 %3000, %v3215_v2   ;;  %157 = vperm.xlu0 %2998, %v3215_v2   ;;  %v3134_v43 = vmov 34   ;;  %v100_v44 = vlaneseq  ;;  %v3135_v45 = vmov 36   ;;  %v3136_v47 = vmov 37  }
   0xd   :  { %v3137_v55 = vmov 39   ;;  %v3138_v60 = vmov 59  }
   0xe   :  { %v101_v46 = vshrl.u32 %v100_v44, 7 }
  0x10   :  { %3001 = vset.pattern.permute.xlu1 %v3096_v5  ;;  %3002 = vset.pattern.permute.xlu0 %v3097_v6  ;;  %v102_v48 = vsub.s32 0, %v101_v46  ;;  %v106_v49 = vsub.s32 1, %v101_v46  ;;  %v110_v50 = vsub.s32 2, %v101_v46  ;;  %v114_v51 = vsub.s32 3, %v101_v46 }
  0x11   :  { %244 = vperm.xlu1 %3001, %v3215_v2   ;;  %273 = vperm.xlu0 %3002, %v3215_v2   ;;  %v118_v53 = vsub.s32 4, %v101_v46 }
  0x12   :  { %v3268_v54 = vrot.slane %v98_v52, %v102_v48  ;;  %v3270_v56 = vrot.slane %v98_v52, %v106_v49  ;;  %v3272_v57 = vrot.slane %v98_v52, %v110_v50  ;;  %v3274_v58 = vrot.slane %v98_v52, %v114_v51 }
  0x13   :  { %v3277_v59 = vrot.slane %v98_v52, %v118_v53  ;;  %v3141_v51 = vmov 43  }
  0x15   :  { %3003 = vset.pattern.permute.xlu1 %v3098_v7  ;;  %3005 = vset.pattern.permute.xlu0 %v3099_v8  ;;  %v3139_v8 = vmov 40  }
  0x16   :  { %302 = vperm.xlu1 %3003, %v3215_v2   ;;  %360 = vperm.xlu0 %3005, %v3215_v2  }
  0x1a   :  { %3004 = vset.pattern.permute.xlu1 %v3100_v9  ;;  %3008 = vset.pattern.permute.xlu0 %v3101_v10 }
  0x1b   :  { %331 = vperm.xlu1 %3004, %v3215_v2   ;;  %447 = vperm.xlu0 %3008, %v3215_v2  }
  0x1f   :  { %3006 = vset.pattern.permute.xlu1 %v3102_v11  ;;  %3011 = vset.pattern.permute.xlu0 %v3103_v12 }
  0x20   :  { %389 = vperm.xlu1 %3006, %v3215_v2   ;;  %534 = vperm.xlu0 %3011, %v3215_v2  }
  0x24   :  { %3007 = vset.pattern.permute.xlu1 %v3104_v13  ;;  %3014 = vset.pattern.permute.xlu0 %v3105_v14 }
  0x25   :  { %418 = vperm.xlu1 %3007, %v3215_v2   ;;  %621 = vperm.xlu0 %3014, %v3215_v2  }
  0x29   :  { %3009 = vset.pattern.permute.xlu1 %v3106_v15  ;;  %3017 = vset.pattern.permute.xlu0 %v3107_v16 }
  0x2a   :  { %476 = vperm.xlu1 %3009, %v3215_v2   ;;  %708 = vperm.xlu0 %3017, %v3215_v2  }
  0x2e   :  { %3010 = vset.pattern.permute.xlu1 %v3108_v17  ;;  %3020 = vset.pattern.permute.xlu0 %v3109_v18 }
  0x2f   :  { %505 = vperm.xlu1 %3010, %v3215_v2   ;;  %795 = vperm.xlu0 %3020, %v3215_v2  }
  0x33   :  { %3012 = vset.pattern.permute.xlu1 %v3110_v19  ;;  %3023 = vset.pattern.permute.xlu0 %v3111_v20 }
  0x34   :  { %563 = vperm.xlu1 %3012, %v3215_v2   ;;  %882 = vperm.xlu0 %3023, %v3215_v2  }
  0x38   :  { %3013 = vset.pattern.permute.xlu1 %v3112_v21  ;;  %3026 = vset.pattern.permute.xlu0 %v3113_v22 }
  0x39   :  { %592 = vperm.xlu1 %3013, %v3215_v2   ;;  %969 = vperm.xlu0 %3026, %v3215_v2  }
  0x3d   :  { %3015 = vset.pattern.permute.xlu1 %v3114_v23  ;;  %3029 = vset.pattern.permute.xlu0 %v3115_v24 }
  0x3e   :  { %650 = vperm.xlu1 %3015, %v3215_v2   ;;  %1056 = vperm.xlu0 %3029, %v3215_v2  }
  0x42   :  { %3016 = vset.pattern.permute.xlu1 %v3116_v25  ;;  %3032 = vset.pattern.permute.xlu0 %v3117_v26 }
  0x43   :  { %679 = vperm.xlu1 %3016, %v3215_v2   ;;  %1143 = vperm.xlu0 %3032, %v3215_v2  }
  0x47   :  { %3018 = vset.pattern.permute.xlu1 %v3118_v27  ;;  %3035 = vset.pattern.permute.xlu0 %v3119_v28 }
  0x48   :  { %737 = vperm.xlu1 %3018, %v3215_v2   ;;  %1230 = vperm.xlu0 %3035, %v3215_v2  }
  0x4c   :  { %3019 = vset.pattern.permute.xlu1 %v3120_v29  ;;  %3038 = vset.pattern.permute.xlu0 %v3121_v30  ;;  %v3140_v29 = vmov 42  }
  0x4d   :  { %766 = vperm.xlu1 %3019, %v3215_v2   ;;  %1317 = vperm.xlu0 %3038, %v3215_v2  }
  0x51   :  { %3021 = vset.pattern.permute.xlu1 %v3122_v31  ;;  %3041 = vset.pattern.permute.xlu0 %v3123_v32 }
  0x52   :  { %824 = vperm.xlu1 %3021, %v3215_v2   ;;  %1404 = vperm.xlu0 %3041, %v3215_v2  }
  0x56   :  { %3022 = vset.pattern.permute.xlu1 %v3124_v33  ;;  %3044 = vset.pattern.permute.xlu0 %v3125_v34 }
  0x57   :  { %853 = vperm.xlu1 %3022, %v3215_v2   ;;  %1491 = vperm.xlu0 %3044, %v3215_v2  }
  0x5b   :  { %3024 = vset.pattern.permute.xlu1 %v3126_v35  ;;  %3047 = vset.pattern.permute.xlu0 %v3127_v36 }
  0x5c   :  { %911 = vperm.xlu1 %3024, %v3215_v2   ;;  %1578 = vperm.xlu0 %3047, %v3215_v2  }
  0x60   :  { %3025 = vset.pattern.permute.xlu1 %v3128_v37  ;;  %3050 = vset.pattern.permute.xlu0 %v3129_v38 }
  0x61   :  { %940 = vperm.xlu1 %3025, %v3215_v2   ;;  %1665 = vperm.xlu0 %3050, %v3215_v2  }
  0x65   :  { %3027 = vset.pattern.permute.xlu1 %v3130_v39  ;;  %3053 = vset.pattern.permute.xlu0 %v3133_v42 }
  0x66   :  { %998 = vperm.xlu1 %3027, %v3215_v2   ;;  %1752 = vperm.xlu0 %3053, %v3215_v2  }
  0x6a   :  { %3028 = vset.pattern.permute.xlu1 %v3131_v40  ;;  %3056 = vset.pattern.permute.xlu0 %v3138_v60 }
  0x6b   :  { %1027 = vperm.xlu1 %3028, %v3215_v2   ;;  %1839 = vperm.xlu0 %3056, %v3215_v2  }
  0x6f   :  { %3030 = vset.pattern.permute.xlu1 %v3132_v41 }
  0x70   :  { %1085 = vperm.xlu1 %3030, %v3215_v2  }
  0x74   :  { %3031 = vset.pattern.permute.xlu1 %v3134_v43 }
  0x75   :  { %1114 = vperm.xlu1 %3031, %v3215_v2  }
  0x79   :  { %3033 = vset.pattern.permute.xlu1 %v3135_v45 }
  0x7a   :  { %1172 = vperm.xlu1 %3033, %v3215_v2  }
  0x7e   :  { %3034 = vset.pattern.permute.xlu1 %v3136_v47 }
  0x7f   :  { %1201 = vperm.xlu1 %3034, %v3215_v2  }
  0x83   :  { %3036 = vset.pattern.permute.xlu1 %v3137_v55 }
  0x84   :  { %1259 = vperm.xlu1 %3036, %v3215_v2  }
  0x86   :  { %v187_v61 = vpop.permute.xlu1 %186  ;;  %v129_v3 = vpop.permute.xlu0 %128 }
  0x87   :  { %v189_v62 = vsub.f32 %v187_v61, %v3268_v54  ;;  %v190_v63 = vsub.f32 %v187_v61, %v3270_v56  ;;  %v191_v0 = vsub.f32 %v187_v61, %v3272_v57  ;;  %v192_v1 = vsub.f32 %v187_v61, %v3274_v58 }
  0x88   :  { %v193_v4 = vsub.f32 %v187_v61, %v3277_v59  ;;  %v131_v5 = vsub.f32 %v129_v3, %v3268_v54  ;;  %v132_v6 = vsub.f32 %v129_v3, %v3270_v56  ;;  %v133_v7 = vsub.f32 %v129_v3, %v3272_v57  ;;  %3037 = vset.pattern.permute.xlu1 %v3139_v8 }
  0x89   :  { %v194_v9 = vand.u32 2147483647, %v189_v62  ;;  %v195_v10 = vand.u32 2147483647, %v190_v63  ;;  %v196_v11 = vand.u32 2147483647, %v191_v0  ;;  %v134_v12 = vsub.f32 %v129_v3, %v3274_v58  ;;  %1288 = vperm.xlu1 %3037, %v3215_v2  }
  0x8a   :  { %v197_v13 = vand.u32 2147483647, %v192_v1  ;;  %v198_v14 = vand.u32 2147483647, %v193_v4  ;;  %v135_v15 = vsub.f32 %v129_v3, %v3277_v59  ;;  %v136_v16 = vand.u32 2147483647, %v131_v5 }
  0x8b   :  { %v3291_v17 = vadd.f32 -0.2, %v194_v9  ;;  %v3293_v18 = vadd.f32 -0.2, %v195_v10  ;;  %v3295_v19 = vadd.f32 -0.2, %v196_v11  ;;  %v216_v20 = vpop.permute.xlu1 %215  ;;  %v158_v42 = vpop.permute.xlu0 %157 }
  0x8c   :  { %v3297_v21 = vadd.f32 -0.2, %v197_v13  ;;  %v3299_v22 = vadd.f32 -0.2, %v198_v14  ;;  %v137_v23 = vand.u32 2147483647, %v132_v6  ;;  %v218_v24 = vsub.f32 %v216_v20, %v3268_v54 }
  0x8d   :  { %v204_v25 = vmax.f32 %v3291_v17, 0.0  ;;  %v205_v26 = vmax.f32 %v3293_v18, 0.0  ;;  %v206_v27 = vmax.f32 %v3295_v19, 0.0  ;;  %v138_v28 = vand.u32 2147483647, %v133_v7  ;;  %3039 = vset.pattern.permute.xlu1 %v3140_v29 }
  0x8e   :  { %v207_v30 = vmax.f32 %v3297_v21, 0.0  ;;  %v208_v31 = vmax.f32 %v3299_v22, 0.0  ;;  %v139_v32 = vand.u32 2147483647, %v134_v12  ;;  %v140_v33 = vand.u32 2147483647, %v135_v15  ;;  %1346 = vperm.xlu1 %3039, %v3215_v2  }
  0x8f   :  { %v3308_v34 = vadd.f32 -0.2, %v136_v16  ;;  %v3310_v35 = vadd.f32 -0.2, %v137_v23  ;;  %v3312_v36 = vadd.f32 -0.2, %v138_v28  ;;  %v219_v37 = vsub.f32 %v216_v20, %v3270_v56 }
  0x90   :  { %v3315_v38 = vadd.f32 -0.2, %v139_v32  ;;  %v3317_v39 = vadd.f32 -0.2, %v140_v33  ;;  %v220_v40 = vsub.f32 %v216_v20, %v3272_v57  ;;  %v221_v41 = vsub.f32 %v216_v20, %v3274_v58  ;;  %v245_v6 = vpop.permute.xlu1 %244 }
  0x91   :  { %v146_v43 = vmax.f32 %v3308_v34, 0.0  ;;  %v147_v44 = vmax.f32 %v3310_v35, 0.0  ;;  %v148_v45 = vmax.f32 %v3312_v36, 0.0  ;;  %v222_v46 = vsub.f32 %v216_v20, %v3277_v59 }
  0x92   :  { %v149_v47 = vmax.f32 %v3315_v38, 0.0  ;;  %v150_v48 = vmax.f32 %v3317_v39, 0.0  ;;  %v223_v49 = vand.u32 2147483647, %v218_v24  ;;  %v224_v50 = vand.u32 2147483647, %v219_v37  ;;  %3040 = vset.pattern.permute.xlu1 %v3141_v51 }
  0x93   :  { %v225_v52 = vand.u32 2147483647, %v220_v40  ;;  %v226_v53 = vand.u32 2147483647, %v221_v41  ;;  %v227_v55 = vand.u32 2147483647, %v222_v46  ;;  %v160_v60 = vsub.f32 %v158_v42, %v3268_v54  ;;  %1375 = vperm.xlu1 %3040, %v3215_v2  }
  0x94   :  { %v2529_v61 = vadd.f32 -0.2, %v223_v49  ;;  %v2530_v62 = vadd.f32 -0.2, %v224_v50  ;;  %v161_v63 = vsub.f32 %v158_v42, %v3270_v56  ;;  %v162_v0 = vsub.f32 %v158_v42, %v3272_v57 }
  0x95   :  { %v3331_v1 = vadd.f32 -0.2, %v225_v52  ;;  %v3333_v3 = vadd.f32 -0.2, %v226_v53  ;;  %v3335_v4 = vadd.f32 -0.2, %v227_v55  ;;  %v163_v5 = vsub.f32 %v158_v42, %v3274_v58 }
  0x96   :  { %v233_v7 = vmax.f32 %v2529_v61, 0.0  ;;  %v234_v8 = vmax.f32 %v2530_v62, 0.0  ;;  %v164_v9 = vsub.f32 %v158_v42, %v3277_v59  ;;  %v165_v10 = vand.u32 2147483647, %v160_v60 }
  0x97   :  { %v235_v11 = vmax.f32 %v3331_v1, 0.0  ;;  %v236_v12 = vmax.f32 %v3333_v3, 0.0  ;;  %v237_v13 = vmax.f32 %v3335_v4, 0.0  ;;  %v166_v14 = vand.u32 2147483647, %v161_v63 }
  0x98   :  { %v3142_v15 = vmov 45   ;;  %v167_v16 = vand.u32 2147483647, %v162_v0  ;;  %v168_v20 = vand.u32 2147483647, %v163_v5  ;;  %v247_v24 = vsub.f32 %v245_v6, %v3268_v54 }
  0x99   :  { %3042 = vset.pattern.permute.xlu1 %v3142_v15  ;;  %v169_v23 = vand.u32 2147483647, %v164_v9  ;;  %v2519_v28 = vadd.f32 -0.2, %v165_v10  ;;  %v2520_v29 = vadd.f32 -0.2, %v166_v14  ;;  %v248_v32 = vsub.f32 %v245_v6, %v3270_v56  ;;  %v303_v15 = vpop.permute.xlu1 %302 }
  0x9a   :  { %1433 = vperm.xlu1 %3042, %v3215_v2   ;;  %v249_v33 = vsub.f32 %v245_v6, %v3272_v57  ;;  %v2521_v34 = vadd.f32 -0.2, %v167_v16  ;;  %v2522_v35 = vadd.f32 -0.2, %v168_v20  ;;  %v250_v37 = vsub.f32 %v245_v6, %v3274_v58 }
  0x9b   :  { %v2523_v36 = vadd.f32 -0.2, %v169_v23  ;;  %v175_v38 = vmax.f32 %v2519_v28, 0.0  ;;  %v176_v39 = vmax.f32 %v2520_v29, 0.0  ;;  %v251_v40 = vsub.f32 %v245_v6, %v3277_v59 }
  0x9c   :  { %v252_v41 = vand.u32 2147483647, %v247_v24  ;;  %v177_v42 = vmax.f32 %v2521_v34, 0.0  ;;  %v178_v46 = vmax.f32 %v2522_v35, 0.0  ;;  %v253_v50 = vand.u32 2147483647, %v248_v32 }
  0x9d   :  { %v179_v49 = vmax.f32 %v2523_v36, 0.0  ;;  %v3143_v51 = vmov 46   ;;  %v180_v52 = vadd.f32 %v175_v38, %v146_v43  ;;  %v181_v53 = vadd.f32 %v176_v39, %v147_v44 }
  0x9e   :  { %3043 = vset.pattern.permute.xlu1 %v3143_v51  ;;  %v254_v55 = vand.u32 2147483647, %v249_v33  ;;  %v255_v60 = vand.u32 2147483647, %v250_v37  ;;  %v182_v61 = vadd.f32 %v177_v42, %v148_v45  ;;  %v183_v62 = vadd.f32 %v178_v46, %v149_v47 }
  0x9f   :  { %1462 = vperm.xlu1 %3043, %v3215_v2   ;;  %v184_v63 = vadd.f32 %v179_v49, %v150_v48  ;;  %v256_v0 = vand.u32 2147483647, %v251_v40  ;;  %v209_v1 = vadd.f32 %v204_v25, %v180_v52  ;;  %v210_v3 = vadd.f32 %v205_v26, %v181_v53  ;;  %v274_v25 = vpop.permute.xlu0 %273  ;;  %v332_v49 = vpop.permute.xlu1 %331 }
  0xa0   :  { %v2534_v4 = vadd.f32 -0.2, %v252_v41  ;;  %v2535_v5 = vadd.f32 -0.2, %v253_v50  ;;  %v211_v43 = vadd.f32 %v206_v27, %v182_v61  ;;  %v212_v44 = vadd.f32 %v207_v30, %v183_v62 }
  0xa1   :  { %v213_v45 = vadd.f32 %v208_v31, %v184_v63  ;;  %v2536_v47 = vadd.f32 -0.2, %v254_v55  ;;  %v238_v48 = vadd.f32 %v233_v7, %v209_v1  ;;  %v239_v6 = vadd.f32 %v234_v8, %v210_v3 }
  0xa2   :  { %v2537_v9 = vadd.f32 -0.2, %v255_v60  ;;  %v2538_v17 = vadd.f32 -0.2, %v256_v0  ;;  %v3144_v10 = vmov 48   ;;  %v240_v18 = vadd.f32 %v235_v11, %v211_v43 }
  0xa3   :  { %3045 = vset.pattern.permute.xlu1 %v3144_v10  ;;  %v241_v26 = vadd.f32 %v236_v12, %v212_v44  ;;  %v262_v14 = vmax.f32 %v2534_v4, 0.0  ;;  %v242_v19 = vadd.f32 %v237_v13, %v213_v45  ;;  %v263_v27 = vmax.f32 %v2535_v5, 0.0 }
  0xa4   :  { %1520 = vperm.xlu1 %3045, %v3215_v2   ;;  %v264_v21 = vmax.f32 %v2536_v47, 0.0  ;;  %v265_v30 = vmax.f32 %v2537_v9, 0.0  ;;  %v266_v22 = vmax.f32 %v2538_v17, 0.0  ;;  %v276_v31 = vsub.f32 %v274_v25, %v3268_v54 }
  0xa5   :  { %v277_v7 = vsub.f32 %v274_v25, %v3270_v56  ;;  %v278_v8 = vsub.f32 %v274_v25, %v3272_v57  ;;  %v267_v16 = vadd.f32 %v262_v14, %v238_v48  ;;  %v268_v20 = vadd.f32 %v263_v27, %v239_v6 }
  0xa6   :  { %v269_v23 = vadd.f32 %v264_v21, %v240_v18  ;;  %v270_v11 = vadd.f32 %v265_v30, %v241_v26  ;;  %v279_v12 = vsub.f32 %v274_v25, %v3274_v58  ;;  %v280_v24 = vsub.f32 %v274_v25, %v3277_v59 }
  0xa7   :  { %v281_v13 = vand.u32 2147483647, %v276_v31  ;;  %v282_v28 = vand.u32 2147483647, %v277_v7  ;;  %v3145_v29 = vmov 49   ;;  %v305_v33 = vsub.f32 %v303_v15, %v3268_v54  ;;  %v361_v7 = vpop.permute.xlu0 %360 }
  0xa8   :  { %3046 = vset.pattern.permute.xlu1 %v3145_v29  ;;  %v283_v32 = vand.u32 2147483647, %v278_v8  ;;  %v306_v34 = vsub.f32 %v303_v15, %v3270_v56  ;;  %v307_v35 = vsub.f32 %v303_v15, %v3272_v57  ;;  %v284_v36 = vand.u32 2147483647, %v279_v12 }
  0xa9   :  { %1549 = vperm.xlu1 %3046, %v3215_v2   ;;  %v285_v37 = vand.u32 2147483647, %v280_v24  ;;  %v2539_v38 = vadd.f32 -0.2, %v281_v13  ;;  %v308_v39 = vsub.f32 %v303_v15, %v3274_v58  ;;  %v2540_v40 = vadd.f32 -0.2, %v282_v28 }
  0xaa   :  { %v2541_v41 = vadd.f32 -0.2, %v283_v32  ;;  %v309_v42 = vsub.f32 %v303_v15, %v3277_v59  ;;  %v310_v46 = vand.u32 2147483647, %v305_v33  ;;  %v271_v50 = vadd.f32 %v266_v22, %v242_v19 }
  0xab   :  { %v2542_v51 = vadd.f32 -0.2, %v284_v36  ;;  %v2543_v52 = vadd.f32 -0.2, %v285_v37  ;;  %v291_v53 = vmax.f32 %v2539_v38, 0.0  ;;  %v292_v55 = vmax.f32 %v2540_v40, 0.0 }
  0xac   :  { %v293_v60 = vmax.f32 %v2541_v41, 0.0  ;;  %v311_v61 = vand.u32 2147483647, %v306_v34  ;;  %v312_v62 = vand.u32 2147483647, %v307_v35  ;;  %v3146_v63 = vmov 51  }
  0xad   :  { %3048 = vset.pattern.permute.xlu1 %v3146_v63  ;;  %v294_v0 = vmax.f32 %v2542_v51, 0.0  ;;  %v295_v1 = vmax.f32 %v2543_v52, 0.0  ;;  %v313_v3 = vand.u32 2147483647, %v308_v39  ;;  %v334_v4 = vsub.f32 %v332_v49, %v3268_v54 }
  0xae   :  { %1607 = vperm.xlu1 %3048, %v3215_v2   ;;  %v296_v5 = vadd.f32 %v291_v53, %v267_v16  ;;  %v297_v43 = vadd.f32 %v292_v55, %v268_v20  ;;  %v314_v44 = vand.u32 2147483647, %v309_v42  ;;  %v2544_v45 = vadd.f32 -0.2, %v310_v46 }
  0xaf   :  { %v298_v47 = vadd.f32 %v293_v60, %v269_v23  ;;  %v299_v48 = vadd.f32 %v294_v0, %v270_v11  ;;  %v2545_v6 = vadd.f32 -0.2, %v311_v61  ;;  %v2546_v9 = vadd.f32 -0.2, %v312_v62  ;;  %v390_v61 = vpop.permute.xlu1 %389 }
  0xb0   :  { %v2547_v17 = vadd.f32 -0.2, %v313_v3  ;;  %v2548_v25 = vadd.f32 -0.2, %v314_v44  ;;  %v320_v10 = vmax.f32 %v2544_v45, 0.0  ;;  %v335_v18 = vsub.f32 %v332_v49, %v3270_v56 }
  0xb1   :  { %v321_v26 = vmax.f32 %v2545_v6, 0.0  ;;  %v322_v14 = vmax.f32 %v2546_v9, 0.0  ;;  %v336_v19 = vsub.f32 %v332_v49, %v3272_v57  ;;  %v337_v27 = vsub.f32 %v332_v49, %v3274_v58 }
  0xb2   :  { %v3147_v21 = vmov 52   ;;  %v300_v30 = vadd.f32 %v295_v1, %v271_v50  ;;  %v323_v15 = vmax.f32 %v2547_v17, 0.0  ;;  %v324_v22 = vmax.f32 %v2548_v25, 0.0 }
  0xb3   :  { %3049 = vset.pattern.permute.xlu1 %v3147_v21  ;;  %v338_v31 = vsub.f32 %v332_v49, %v3277_v59  ;;  %v325_v8 = vadd.f32 %v320_v10, %v296_v5  ;;  %v326_v16 = vadd.f32 %v321_v26, %v297_v43  ;;  %v339_v20 = vand.u32 2147483647, %v334_v4 }
  0xb4   :  { %1636 = vperm.xlu1 %3049, %v3215_v2   ;;  %v340_v23 = vand.u32 2147483647, %v335_v18  ;;  %v327_v11 = vadd.f32 %v322_v14, %v298_v47  ;;  %v328_v12 = vadd.f32 %v323_v15, %v299_v48  ;;  %v341_v24 = vand.u32 2147483647, %v336_v19 }
  0xb5   :  { %v342_v13 = vand.u32 2147483647, %v337_v27  ;;  %v343_v28 = vand.u32 2147483647, %v338_v31  ;;  %v2549_v29 = vadd.f32 -0.2, %v339_v20  ;;  %v363_v33 = vsub.f32 %v361_v7, %v3268_v54 }
  0xb6   :  { %v2550_v32 = vadd.f32 -0.2, %v340_v23  ;;  %v2551_v34 = vadd.f32 -0.2, %v341_v24  ;;  %v364_v36 = vsub.f32 %v361_v7, %v3270_v56  ;;  %v365_v37 = vsub.f32 %v361_v7, %v3272_v57 }
  0xb7   :  { %v2552_v35 = vadd.f32 -0.2, %v342_v13  ;;  %v3148_v38 = vmov 54   ;;  %v2553_v39 = vadd.f32 -0.2, %v343_v28  ;;  %v349_v40 = vmax.f32 %v2549_v29, 0.0 }
  0xb8   :  { %3051 = vset.pattern.permute.xlu1 %v3148_v38  ;;  %v350_v41 = vmax.f32 %v2550_v32, 0.0  ;;  %v366_v42 = vsub.f32 %v361_v7, %v3274_v58  ;;  %v351_v46 = vmax.f32 %v2551_v34, 0.0  ;;  %v367_v50 = vsub.f32 %v361_v7, %v3277_v59 }
  0xb9   :  { %1694 = vperm.xlu1 %3051, %v3215_v2   ;;  %v352_v49 = vmax.f32 %v2552_v35, 0.0  ;;  %v368_v51 = vand.u32 2147483647, %v363_v33  ;;  %v329_v52 = vadd.f32 %v324_v22, %v300_v30  ;;  %v353_v53 = vmax.f32 %v2553_v39, 0.0  ;;  %v419_v22 = vpop.permute.xlu1 %418 }
  0xba   :  { %v354_v55 = vadd.f32 %v349_v40, %v325_v8  ;;  %v369_v60 = vand.u32 2147483647, %v364_v36  ;;  %v355_v62 = vadd.f32 %v350_v41, %v326_v16  ;;  %v356_v63 = vadd.f32 %v351_v46, %v327_v11 }
  0xbb   :  { %v370_v0 = vand.u32 2147483647, %v365_v37  ;;  %v371_v1 = vand.u32 2147483647, %v366_v42  ;;  %v357_v3 = vadd.f32 %v352_v49, %v328_v12  ;;  %v372_v4 = vand.u32 2147483647, %v367_v50  ;;  %v448_v50 = vpop.permute.xlu0 %447 }
  0xbc   :  { %v2554_v5 = vadd.f32 -0.2, %v368_v51  ;;  %v2555_v43 = vadd.f32 -0.2, %v369_v60  ;;  %v3149_v44 = vmov 55   ;;  %v392_v48 = vsub.f32 %v390_v61, %v3268_v54 }
  0xbd   :  { %3052 = vset.pattern.permute.xlu1 %v3149_v44  ;;  %v2556_v45 = vadd.f32 -0.2, %v370_v0  ;;  %v2557_v47 = vadd.f32 -0.2, %v371_v1  ;;  %v393_v6 = vsub.f32 %v390_v61, %v3270_v56  ;;  %v2558_v9 = vadd.f32 -0.2, %v372_v4 }
  0xbe   :  { %1723 = vperm.xlu1 %3052, %v3215_v2   ;;  %v378_v17 = vmax.f32 %v2554_v5, 0.0  ;;  %v379_v25 = vmax.f32 %v2555_v43, 0.0  ;;  %v394_v10 = vsub.f32 %v390_v61, %v3272_v57  ;;  %v395_v14 = vsub.f32 %v390_v61, %v3274_v58 }
  0xbf   :  { %v380_v18 = vmax.f32 %v2556_v45, 0.0  ;;  %v381_v26 = vmax.f32 %v2557_v47, 0.0  ;;  %v396_v19 = vsub.f32 %v390_v61, %v3277_v59  ;;  %v358_v27 = vadd.f32 %v353_v53, %v329_v52 }
  0xc0   :  { %v382_v21 = vmax.f32 %v2558_v9, 0.0  ;;  %v383_v30 = vadd.f32 %v378_v17, %v354_v55  ;;  %v397_v15 = vand.u32 2147483647, %v392_v48  ;;  %v384_v31 = vadd.f32 %v379_v25, %v355_v62 }
  0xc1   :  { %v385_v7 = vadd.f32 %v380_v18, %v356_v63  ;;  %v398_v8 = vand.u32 2147483647, %v393_v6  ;;  %v399_v16 = vand.u32 2147483647, %v394_v10  ;;  %v3150_v20 = vmov 57  }
  0xc2   :  { %3054 = vset.pattern.permute.xlu1 %v3150_v20  ;;  %v386_v23 = vadd.f32 %v381_v26, %v357_v3  ;;  %v400_v11 = vand.u32 2147483647, %v395_v14  ;;  %v401_v12 = vand.u32 2147483647, %v396_v19  ;;  %v2559_v24 = vadd.f32 -0.2, %v397_v15  ;;  %v477_v26 = vpop.permute.xlu1 %476 }
  0xc3   :  { %1781 = vperm.xlu1 %3054, %v3215_v2   ;;  %v2560_v13 = vadd.f32 -0.2, %v398_v8  ;;  %v2561_v28 = vadd.f32 -0.2, %v399_v16  ;;  %v421_v29 = vsub.f32 %v419_v22, %v3268_v54  ;;  %v422_v32 = vsub.f32 %v419_v22, %v3270_v56 }
  0xc4   :  { %v2562_v33 = vadd.f32 -0.2, %v400_v11  ;;  %v2563_v34 = vadd.f32 -0.2, %v401_v12  ;;  %v407_v35 = vmax.f32 %v2559_v24, 0.0  ;;  %v423_v36 = vsub.f32 %v419_v22, %v3272_v57 }
  0xc5   :  { %v408_v37 = vmax.f32 %v2560_v13, 0.0  ;;  %v409_v38 = vmax.f32 %v2561_v28, 0.0  ;;  %v424_v39 = vsub.f32 %v419_v22, %v3274_v58  ;;  %v425_v40 = vsub.f32 %v419_v22, %v3277_v59 }
  0xc6   :  { %v387_v41 = vadd.f32 %v382_v21, %v358_v27  ;;  %v410_v42 = vmax.f32 %v2562_v33, 0.0  ;;  %v411_v46 = vmax.f32 %v2563_v34, 0.0  ;;  %v426_v49 = vand.u32 2147483647, %v421_v29 }
  0xc7   :  { %v3151_v51 = vmov 58   ;;  %v412_v52 = vadd.f32 %v407_v35, %v383_v30  ;;  %v413_v53 = vadd.f32 %v408_v37, %v384_v31  ;;  %v427_v55 = vand.u32 2147483647, %v422_v32 }
  0xc8   :  { %3055 = vset.pattern.permute.xlu1 %v3151_v51  ;;  %v428_v60 = vand.u32 2147483647, %v423_v36  ;;  %v414_v61 = vadd.f32 %v409_v38, %v385_v7  ;;  %v415_v62 = vadd.f32 %v410_v42, %v386_v23  ;;  %v429_v63 = vand.u32 2147483647, %v424_v39 }
  0xc9   :  { %1810 = vperm.xlu1 %3055, %v3215_v2   ;;  %v430_v0 = vand.u32 2147483647, %v425_v40  ;;  %v2564_v1 = vadd.f32 -0.2, %v426_v49  ;;  %v2565_v3 = vadd.f32 -0.2, %v427_v55  ;;  %v450_v5 = vsub.f32 %v448_v50, %v3268_v54 }
  0xca   :  { %v2566_v4 = vadd.f32 -0.2, %v428_v60  ;;  %v2567_v43 = vadd.f32 -0.2, %v429_v63  ;;  %v451_v45 = vsub.f32 %v448_v50, %v3270_v56  ;;  %v452_v47 = vsub.f32 %v448_v50, %v3272_v57 }
  0xcb   :  { %v2568_v44 = vadd.f32 -0.2, %v430_v0  ;;  %v436_v48 = vmax.f32 %v2564_v1, 0.0  ;;  %v437_v6 = vmax.f32 %v2565_v3, 0.0  ;;  %v453_v2 = vsub.f32 %v448_v50, %v3274_v58 }
  0xcc   :  { %v438_v9 = vmax.f32 %v2566_v4, 0.0  ;;  %v416_v17 = vadd.f32 %v411_v46, %v387_v41  ;;  %v439_v25 = vmax.f32 %v2567_v43, 0.0  ;;  %v454_v10 = vsub.f32 %v448_v50, %v3277_v59  ;;  %v506_v41 = vpop.permute.xlu1 %505 }
  0xcd   :  { %v455_v18 = vand.u32 2147483647, %v450_v5  ;;  %v440_v14 = vmax.f32 %v2568_v44, 0.0  ;;  %v441_v19 = vadd.f32 %v436_v48, %v412_v52  ;;  %v442_v27 = vadd.f32 %v437_v6, %v413_v53 }
  0xce   :  { %v456_v21 = vand.u32 2147483647, %v451_v45  ;;  %v443_v30 = vadd.f32 %v438_v9, %v414_v61  ;;  %v444_v15 = vadd.f32 %v439_v25, %v415_v62  ;;  %v457_v22 = vand.u32 2147483647, %v452_v47 }
  0xcf   :  { %v458_v31 = vand.u32 2147483647, %v453_v2  ;;  %v459_v7 = vand.u32 2147483647, %v454_v10  ;;  %v2569_v8 = vadd.f32 -0.2, %v455_v18  ;;  %v479_v20 = vsub.f32 %v477_v26, %v3268_v54  ;;  %v535_v2 = vpop.permute.xlu0 %534 }
  0xd0   :  { %v2570_v16 = vadd.f32 -0.2, %v456_v21  ;;  %v2571_v23 = vadd.f32 -0.2, %v457_v22  ;;  %v480_v12 = vsub.f32 %v477_v26, %v3270_v56  ;;  %v481_v24 = vsub.f32 %v477_v26, %v3272_v57 }
  0xd1   :  { %v2572_v11 = vadd.f32 -0.2, %v458_v31  ;;  %v2573_v13 = vadd.f32 -0.2, %v459_v7  ;;  %v465_v28 = vmax.f32 %v2569_v8, 0.0  ;;  %v482_v32 = vsub.f32 %v477_v26, %v3274_v58 }
  0xd2   :  { %v466_v29 = vmax.f32 %v2570_v16, 0.0  ;;  %v467_v33 = vmax.f32 %v2571_v23, 0.0  ;;  %v483_v35 = vsub.f32 %v477_v26, %v3277_v59  ;;  %v484_v36 = vand.u32 2147483647, %v479_v20 }
  0xd3   :  { %v468_v34 = vmax.f32 %v2572_v11, 0.0  ;;  %v445_v37 = vadd.f32 %v440_v14, %v416_v17  ;;  %v469_v38 = vmax.f32 %v2573_v13, 0.0  ;;  %v470_v39 = vadd.f32 %v465_v28, %v441_v19 }
  0xd4   :  { %v485_v40 = vand.u32 2147483647, %v480_v12  ;;  %v471_v42 = vadd.f32 %v466_v29, %v442_v27  ;;  %v472_v46 = vadd.f32 %v467_v33, %v443_v30  ;;  %v486_v49 = vand.u32 2147483647, %v481_v24 }
  0xd5   :  { %v487_v50 = vand.u32 2147483647, %v482_v32  ;;  %v473_v51 = vadd.f32 %v468_v34, %v444_v15  ;;  %v488_v52 = vand.u32 2147483647, %v483_v35  ;;  %v2574_v53 = vadd.f32 -0.2, %v484_v36  ;;  %v564_v32 = vpop.permute.xlu1 %563 }
  0xd6   :  { %v2575_v55 = vadd.f32 -0.2, %v485_v40  ;;  %v2576_v60 = vadd.f32 -0.2, %v486_v49  ;;  %v508_v62 = vsub.f32 %v506_v41, %v3268_v54  ;;  %v509_v63 = vsub.f32 %v506_v41, %v3270_v56 }
  0xd7   :  { %v2577_v61 = vadd.f32 -0.2, %v487_v50  ;;  %v2578_v0 = vadd.f32 -0.2, %v488_v52  ;;  %v494_v1 = vmax.f32 %v2574_v53, 0.0  ;;  %v510_v4 = vsub.f32 %v506_v41, %v3272_v57 }
  0xd8   :  { %v495_v3 = vmax.f32 %v2575_v55, 0.0  ;;  %v496_v5 = vmax.f32 %v2576_v60, 0.0  ;;  %v511_v44 = vsub.f32 %v506_v41, %v3274_v58  ;;  %v512_v45 = vsub.f32 %v506_v41, %v3277_v59 }
  0xd9   :  { %v497_v43 = vmax.f32 %v2577_v61, 0.0  ;;  %v474_v47 = vadd.f32 %v469_v38, %v445_v37  ;;  %v498_v48 = vmax.f32 %v2578_v0, 0.0  ;;  %v499_v6 = vadd.f32 %v494_v1, %v470_v39 }
  0xda   :  { %v513_v9 = vand.u32 2147483647, %v508_v62  ;;  %v500_v17 = vadd.f32 %v495_v3, %v471_v42  ;;  %v501_v25 = vadd.f32 %v496_v5, %v472_v46  ;;  %v514_v10 = vand.u32 2147483647, %v509_v63 }
  0xdb   :  { %v515_v18 = vand.u32 2147483647, %v510_v4  ;;  %v502_v26 = vadd.f32 %v497_v43, %v473_v51  ;;  %v516_v14 = vand.u32 2147483647, %v511_v44  ;;  %v517_v19 = vand.u32 2147483647, %v512_v45  ;;  %v593_v4 = vpop.permute.xlu1 %592 }
  0xdc   :  { %v2579_v27 = vadd.f32 -0.2, %v513_v9  ;;  %v2580_v21 = vadd.f32 -0.2, %v514_v10  ;;  %v537_v15 = vsub.f32 %v535_v2, %v3268_v54  ;;  %v538_v22 = vsub.f32 %v535_v2, %v3270_v56 }
  0xdd   :  { %v2581_v30 = vadd.f32 -0.2, %v515_v18  ;;  %v2582_v31 = vadd.f32 -0.2, %v516_v14  ;;  %v2583_v7 = vadd.f32 -0.2, %v517_v19  ;;  %v539_v16 = vsub.f32 %v535_v2, %v3272_v57 }
  0xde   :  { %v523_v8 = vmax.f32 %v2579_v27, 0.0  ;;  %v524_v20 = vmax.f32 %v2580_v21, 0.0  ;;  %v540_v11 = vsub.f32 %v535_v2, %v3274_v58  ;;  %v541_v12 = vsub.f32 %v535_v2, %v3277_v59 }
  0xdf   :  { %v525_v23 = vmax.f32 %v2581_v30, 0.0  ;;  %v503_v24 = vadd.f32 %v498_v48, %v474_v47  ;;  %v526_v13 = vmax.f32 %v2582_v31, 0.0  ;;  %v527_v28 = vmax.f32 %v2583_v7, 0.0 }
  0xe0   :  { %v542_v29 = vand.u32 2147483647, %v537_v15  ;;  %v528_v33 = vadd.f32 %v523_v8, %v499_v6  ;;  %v529_v34 = vadd.f32 %v524_v20, %v500_v17  ;;  %v543_v35 = vand.u32 2147483647, %v538_v22 }
  0xe1   :  { %v544_v36 = vand.u32 2147483647, %v539_v16  ;;  %v530_v37 = vadd.f32 %v525_v23, %v501_v25  ;;  %v531_v38 = vadd.f32 %v526_v13, %v502_v26  ;;  %v545_v39 = vand.u32 2147483647, %v540_v11 }
  0xe2   :  { %v546_v40 = vand.u32 2147483647, %v541_v12  ;;  %v2584_v41 = vadd.f32 -0.2, %v542_v29  ;;  %v2585_v42 = vadd.f32 -0.2, %v543_v35  ;;  %v566_v49 = vsub.f32 %v564_v32, %v3268_v54  ;;  %v622_v12 = vpop.permute.xlu0 %621 }
  0xe3   :  { %v2586_v46 = vadd.f32 -0.2, %v544_v36  ;;  %v2587_v50 = vadd.f32 -0.2, %v545_v39  ;;  %v567_v52 = vsub.f32 %v564_v32, %v3270_v56  ;;  %v568_v53 = vsub.f32 %v564_v32, %v3272_v57 }
  0xe4   :  { %v2588_v51 = vadd.f32 -0.2, %v546_v40  ;;  %v552_v55 = vmax.f32 %v2584_v41, 0.0  ;;  %v553_v60 = vmax.f32 %v2585_v42, 0.0  ;;  %v569_v62 = vsub.f32 %v564_v32, %v3274_v58 }
  0xe5   :  { %v554_v61 = vmax.f32 %v2586_v46, 0.0  ;;  %v532_v63 = vadd.f32 %v527_v28, %v503_v24  ;;  %v555_v0 = vmax.f32 %v2587_v50, 0.0  ;;  %v570_v1 = vsub.f32 %v564_v32, %v3277_v59 }
  0xe6   :  { %v571_v3 = vand.u32 2147483647, %v566_v49  ;;  %v556_v5 = vmax.f32 %v2588_v51, 0.0  ;;  %v557_v43 = vadd.f32 %v552_v55, %v528_v33  ;;  %v558_v44 = vadd.f32 %v553_v60, %v529_v34 }
  0xe7   :  { %v572_v45 = vand.u32 2147483647, %v567_v52  ;;  %v559_v47 = vadd.f32 %v554_v61, %v530_v37  ;;  %v560_v48 = vadd.f32 %v555_v0, %v531_v38  ;;  %v573_v6 = vand.u32 2147483647, %v568_v53 }
  0xe8   :  { %v574_v9 = vand.u32 2147483647, %v569_v62  ;;  %v575_v2 = vand.u32 2147483647, %v570_v1  ;;  %v2589_v17 = vadd.f32 -0.2, %v571_v3  ;;  %v595_v10 = vsub.f32 %v593_v4, %v3268_v54  ;;  %v651_v62 = vpop.permute.xlu1 %650 }
  0xe9   :  { %v2590_v25 = vadd.f32 -0.2, %v572_v45  ;;  %v2591_v18 = vadd.f32 -0.2, %v573_v6  ;;  %v596_v14 = vsub.f32 %v593_v4, %v3270_v56  ;;  %v597_v19 = vsub.f32 %v593_v4, %v3272_v57 }
  0xea   :  { %v2592_v26 = vadd.f32 -0.2, %v574_v9  ;;  %v2593_v27 = vadd.f32 -0.2, %v575_v2  ;;  %v581_v21 = vmax.f32 %v2589_v17, 0.0  ;;  %v598_v15 = vsub.f32 %v593_v4, %v3274_v58 }
  0xeb   :  { %v582_v30 = vmax.f32 %v2590_v25, 0.0  ;;  %v583_v22 = vmax.f32 %v2591_v18, 0.0  ;;  %v599_v7 = vsub.f32 %v593_v4, %v3277_v59  ;;  %v600_v8 = vand.u32 2147483647, %v595_v10 }
  0xec   :  { %v584_v31 = vmax.f32 %v2592_v26, 0.0  ;;  %v561_v16 = vadd.f32 %v556_v5, %v532_v63  ;;  %v585_v20 = vmax.f32 %v2593_v27, 0.0  ;;  %v586_v23 = vadd.f32 %v581_v21, %v557_v43 }
  0xed   :  { %v601_v11 = vand.u32 2147483647, %v596_v14  ;;  %v587_v24 = vadd.f32 %v582_v30, %v558_v44  ;;  %v588_v13 = vadd.f32 %v583_v22, %v559_v47  ;;  %v602_v28 = vand.u32 2147483647, %v597_v19 }
  0xee   :  { %v603_v29 = vand.u32 2147483647, %v598_v15  ;;  %v589_v32 = vadd.f32 %v584_v31, %v560_v48  ;;  %v604_v33 = vand.u32 2147483647, %v599_v7  ;;  %v2594_v34 = vadd.f32 -0.2, %v600_v8  ;;  %v680_v15 = vpop.permute.xlu1 %679 }
  0xef   :  { %v2595_v35 = vadd.f32 -0.2, %v601_v11  ;;  %v2596_v36 = vadd.f32 -0.2, %v602_v28  ;;  %v624_v38 = vsub.f32 %v622_v12, %v3268_v54  ;;  %v625_v39 = vsub.f32 %v622_v12, %v3270_v56 }
  0xf0   :  { %v2597_v37 = vadd.f32 -0.2, %v603_v29  ;;  %v2598_v40 = vadd.f32 -0.2, %v604_v33  ;;  %v610_v41 = vmax.f32 %v2594_v34, 0.0  ;;  %v626_v46 = vsub.f32 %v622_v12, %v3272_v57 }
  0xf1   :  { %v611_v42 = vmax.f32 %v2595_v35, 0.0  ;;  %v612_v49 = vmax.f32 %v2596_v36, 0.0  ;;  %v627_v51 = vsub.f32 %v622_v12, %v3274_v58  ;;  %v628_v52 = vsub.f32 %v622_v12, %v3277_v59 }
  0xf2   :  { %v613_v50 = vmax.f32 %v2597_v37, 0.0  ;;  %v590_v53 = vadd.f32 %v585_v20, %v561_v16  ;;  %v614_v55 = vmax.f32 %v2598_v40, 0.0  ;;  %v615_v60 = vadd.f32 %v610_v41, %v586_v23 }
  0xf3   :  { %v629_v61 = vand.u32 2147483647, %v624_v38  ;;  %v616_v63 = vadd.f32 %v611_v42, %v587_v24  ;;  %v617_v0 = vadd.f32 %v612_v49, %v588_v13  ;;  %v630_v1 = vand.u32 2147483647, %v625_v39 }
  0xf4   :  { %v631_v3 = vand.u32 2147483647, %v626_v46  ;;  %v618_v4 = vadd.f32 %v613_v50, %v589_v32  ;;  %v632_v5 = vand.u32 2147483647, %v627_v51  ;;  %v633_v43 = vand.u32 2147483647, %v628_v52  ;;  %v709_v46 = vpop.permute.xlu0 %708 }
  0xf5   :  { %v2599_v44 = vadd.f32 -0.2, %v629_v61  ;;  %v2600_v45 = vadd.f32 -0.2, %v630_v1  ;;  %v653_v48 = vsub.f32 %v651_v62, %v3268_v54  ;;  %v654_v6 = vsub.f32 %v651_v62, %v3270_v56 }
  0xf6   :  { %v2601_v47 = vadd.f32 -0.2, %v631_v3  ;;  %v2602_v9 = vadd.f32 -0.2, %v632_v5  ;;  %v2603_v2 = vadd.f32 -0.2, %v633_v43  ;;  %v655_v25 = vsub.f32 %v651_v62, %v3272_v57 }
  0xf7   :  { %v639_v17 = vmax.f32 %v2599_v44, 0.0  ;;  %v640_v10 = vmax.f32 %v2600_v45, 0.0  ;;  %v656_v26 = vsub.f32 %v651_v62, %v3274_v58  ;;  %v657_v14 = vsub.f32 %v651_v62, %v3277_v59 }
  0xf8   :  { %v641_v18 = vmax.f32 %v2601_v47, 0.0  ;;  %v619_v19 = vadd.f32 %v614_v55, %v590_v53  ;;  %v642_v27 = vmax.f32 %v2602_v9, 0.0  ;;  %v643_v21 = vmax.f32 %v2603_v2, 0.0 }
  0xf9   :  { %v658_v30 = vand.u32 2147483647, %v653_v48  ;;  %v644_v22 = vadd.f32 %v639_v17, %v615_v60  ;;  %v645_v31 = vadd.f32 %v640_v10, %v616_v63  ;;  %v659_v7 = vand.u32 2147483647, %v654_v6 }
  0xfa   :  { %v660_v8 = vand.u32 2147483647, %v655_v25  ;;  %v646_v16 = vadd.f32 %v641_v18, %v617_v0  ;;  %v647_v20 = vadd.f32 %v642_v27, %v618_v4  ;;  %v661_v23 = vand.u32 2147483647, %v656_v26 }
  0xfb   :  { %v662_v11 = vand.u32 2147483647, %v657_v14  ;;  %v2604_v12 = vadd.f32 -0.2, %v658_v30  ;;  %v2605_v24 = vadd.f32 -0.2, %v659_v7  ;;  %v682_v28 = vsub.f32 %v680_v15, %v3268_v54  ;;  %v738_v14 = vpop.permute.xlu1 %737 }
  0xfc   :  { %v2606_v13 = vadd.f32 -0.2, %v660_v8  ;;  %v2607_v29 = vadd.f32 -0.2, %v661_v23  ;;  %v683_v33 = vsub.f32 %v680_v15, %v3270_v56  ;;  %v684_v34 = vsub.f32 %v680_v15, %v3272_v57 }
  0xfd   :  { %v2608_v32 = vadd.f32 -0.2, %v662_v11  ;;  %v668_v35 = vmax.f32 %v2604_v12, 0.0  ;;  %v669_v36 = vmax.f32 %v2605_v24, 0.0  ;;  %v685_v38 = vsub.f32 %v680_v15, %v3274_v58 }
  0xfe   :  { %v670_v37 = vmax.f32 %v2606_v13, 0.0  ;;  %v648_v39 = vadd.f32 %v643_v21, %v619_v19  ;;  %v671_v40 = vmax.f32 %v2607_v29, 0.0  ;;  %v686_v41 = vsub.f32 %v680_v15, %v3277_v59 }
  0xff   :  { %v687_v42 = vand.u32 2147483647, %v682_v28  ;;  %v672_v49 = vmax.f32 %v2608_v32, 0.0  ;;  %v673_v50 = vadd.f32 %v668_v35, %v644_v22  ;;  %v674_v51 = vadd.f32 %v669_v36, %v645_v31 }
 0x100   :  { %v688_v52 = vand.u32 2147483647, %v683_v33  ;;  %v675_v53 = vadd.f32 %v670_v37, %v646_v16  ;;  %v676_v55 = vadd.f32 %v671_v40, %v647_v20  ;;  %v689_v60 = vand.u32 2147483647, %v684_v34 }
 0x101   :  { %v690_v61 = vand.u32 2147483647, %v685_v38  ;;  %v691_v62 = vand.u32 2147483647, %v686_v41  ;;  %v2609_v63 = vadd.f32 -0.2, %v687_v42  ;;  %v711_v1 = vsub.f32 %v709_v46, %v3268_v54  ;;  %v767_v38 = vpop.permute.xlu1 %766 }
 0x102   :  { %v2610_v0 = vadd.f32 -0.2, %v688_v52  ;;  %v2611_v3 = vadd.f32 -0.2, %v689_v60  ;;  %v712_v5 = vsub.f32 %v709_v46, %v3270_v56  ;;  %v713_v43 = vsub.f32 %v709_v46, %v3272_v57 }
 0x103   :  { %v2612_v4 = vadd.f32 -0.2, %v690_v61  ;;  %v2613_v44 = vadd.f32 -0.2, %v691_v62  ;;  %v697_v45 = vmax.f32 %v2609_v63, 0.0  ;;  %v714_v48 = vsub.f32 %v709_v46, %v3274_v58 }
 0x104   :  { %v698_v47 = vmax.f32 %v2610_v0, 0.0  ;;  %v699_v6 = vmax.f32 %v2611_v3, 0.0  ;;  %v715_v2 = vsub.f32 %v709_v46, %v3277_v59  ;;  %v716_v17 = vand.u32 2147483647, %v711_v1 }
 0x105   :  { %v700_v9 = vmax.f32 %v2612_v4, 0.0  ;;  %v677_v25 = vadd.f32 %v672_v49, %v648_v39  ;;  %v701_v10 = vmax.f32 %v2613_v44, 0.0  ;;  %v702_v18 = vadd.f32 %v697_v45, %v673_v50  ;;  %v3455_v4 = vld [vmem:[%s3212_s25] sm:$0xff] }
 0x106   :  { %v717_v26 = vand.u32 2147483647, %v712_v5  ;;  %v703_v19 = vadd.f32 %v698_v47, %v674_v51  ;;  %v704_v27 = vadd.f32 %v699_v6, %v675_v53  ;;  %v718_v21 = vand.u32 2147483647, %v713_v43  ;;  %v796_v6 = vpop.permute.xlu0 %795 }
 0x107   :  { %v719_v30 = vand.u32 2147483647, %v714_v48  ;;  %v705_v15 = vadd.f32 %v700_v9, %v676_v55  ;;  %v720_v22 = vand.u32 2147483647, %v715_v2  ;;  %v2614_v31 = vadd.f32 -0.2, %v716_v17 }
 0x108   :  { %v2615_v7 = vadd.f32 -0.2, %v717_v26  ;;  %v2616_v8 = vadd.f32 -0.2, %v718_v21  ;;  %v740_v20 = vsub.f32 %v738_v14, %v3268_v54  ;;  %v741_v23 = vsub.f32 %v738_v14, %v3270_v56 }
 0x109   :  { %v2617_v16 = vadd.f32 -0.2, %v719_v30  ;;  %v2618_v11 = vadd.f32 -0.2, %v720_v22  ;;  %v726_v12 = vmax.f32 %v2614_v31, 0.0  ;;  %v742_v13 = vsub.f32 %v738_v14, %v3272_v57 }
 0x10a   :  { %v727_v24 = vmax.f32 %v2615_v7, 0.0  ;;  %v728_v28 = vmax.f32 %v2616_v8, 0.0  ;;  %v743_v32 = vsub.f32 %v738_v14, %v3274_v58  ;;  %v744_v33 = vsub.f32 %v738_v14, %v3277_v59 }
 0x10b   :  { %v729_v29 = vmax.f32 %v2617_v16, 0.0  ;;  %v706_v34 = vadd.f32 %v701_v10, %v677_v25  ;;  %v730_v35 = vmax.f32 %v2618_v11, 0.0  ;;  %v731_v36 = vadd.f32 %v726_v12, %v702_v18 }
 0x10c   :  { %v745_v37 = vand.u32 2147483647, %v740_v20  ;;  %v732_v39 = vadd.f32 %v727_v24, %v703_v19  ;;  %v733_v40 = vadd.f32 %v728_v28, %v704_v27  ;;  %v746_v41 = vand.u32 2147483647, %v741_v23 }
 0x10d   :  { %v747_v42 = vand.u32 2147483647, %v742_v13  ;;  %v734_v46 = vadd.f32 %v729_v29, %v705_v15  ;;  %v748_v49 = vand.u32 2147483647, %v743_v32  ;;  %v749_v50 = vand.u32 2147483647, %v744_v33 }
 0x10e   :  { %v2619_v51 = vadd.f32 -0.2, %v745_v37  ;;  %v2620_v52 = vadd.f32 -0.2, %v746_v41  ;;  %v769_v55 = vsub.f32 %v767_v38, %v3268_v54  ;;  %v3152_v63 = vmov 60  }
 0x10f   :  { %v2621_v53 = vadd.f32 -0.2, %v747_v42  ;;  %v2622_v60 = vadd.f32 -0.2, %v748_v49  ;;  %v2623_v61 = vadd.f32 -0.2, %v749_v50  ;;  %3057 = vset.pattern.permute.xlu1 %v3152_v63  ;;  %v770_v0 = vsub.f32 %v767_v38, %v3270_v56 }
 0x110   :  { %v755_v62 = vmax.f32 %v2619_v51, 0.0  ;;  %v756_v1 = vmax.f32 %v2620_v52, 0.0  ;;  %1868 = vperm.xlu1 %3057, %v3455_v4   ;;  %v771_v5 = vsub.f32 %v767_v38, %v3272_v57  ;;  %v772_v43 = vsub.f32 %v767_v38, %v3274_v58 }
 0x111   :  { %v757_v3 = vmax.f32 %v2621_v53, 0.0  ;;  %v735_v44 = vadd.f32 %v730_v35, %v706_v34  ;;  %v758_v45 = vmax.f32 %v2622_v60, 0.0  ;;  %v759_v47 = vmax.f32 %v2623_v61, 0.0  ;;  %v825_v34 = vpop.permute.xlu1 %824 }
 0x112   :  { %v773_v48 = vsub.f32 %v767_v38, %v3277_v59  ;;  %v760_v9 = vadd.f32 %v755_v62, %v731_v36  ;;  %v761_v2 = vadd.f32 %v756_v1, %v732_v39  ;;  %v774_v17 = vand.u32 2147483647, %v769_v55 }
 0x113   :  { %v775_v25 = vand.u32 2147483647, %v770_v0  ;;  %v762_v10 = vadd.f32 %v757_v3, %v733_v40  ;;  %v763_v18 = vadd.f32 %v758_v45, %v734_v46  ;;  %v776_v26 = vand.u32 2147483647, %v771_v5 }
 0x114   :  { %v777_v14 = vand.u32 2147483647, %v772_v43  ;;  %v778_v19 = vand.u32 2147483647, %v773_v48  ;;  %v2624_v27 = vadd.f32 -0.2, %v774_v17  ;;  %v798_v30 = vsub.f32 %v796_v6, %v3268_v54 }
 0x115   :  { %v2625_v21 = vadd.f32 -0.2, %v775_v25  ;;  %v2626_v15 = vadd.f32 -0.2, %v776_v26  ;;  %v799_v31 = vsub.f32 %v796_v6, %v3270_v56  ;;  %v3153_v20 = vmov 61  }
 0x116   :  { %v2627_v22 = vadd.f32 -0.2, %v777_v14  ;;  %v2628_v7 = vadd.f32 -0.2, %v778_v19  ;;  %v784_v8 = vmax.f32 %v2624_v27, 0.0  ;;  %3058 = vset.pattern.permute.xlu1 %v3153_v20  ;;  %v800_v23 = vsub.f32 %v796_v6, %v3272_v57 }
 0x117   :  { %v785_v16 = vmax.f32 %v2625_v21, 0.0  ;;  %v786_v11 = vmax.f32 %v2626_v15, 0.0  ;;  %v801_v24 = vsub.f32 %v796_v6, %v3274_v58  ;;  %v802_v13 = vsub.f32 %v796_v6, %v3277_v59  ;;  %1897 = vperm.xlu1 %3058, %v3455_v4  }
 0x118   :  { %v787_v12 = vmax.f32 %v2627_v22, 0.0  ;;  %v764_v28 = vadd.f32 %v759_v47, %v735_v44  ;;  %v788_v29 = vmax.f32 %v2628_v7, 0.0  ;;  %v789_v32 = vadd.f32 %v784_v8, %v760_v9  ;;  %v854_v44 = vpop.permute.xlu1 %853 }
 0x119   :  { %v803_v33 = vand.u32 2147483647, %v798_v30  ;;  %v790_v35 = vadd.f32 %v785_v16, %v761_v2  ;;  %v791_v36 = vadd.f32 %v786_v11, %v762_v10  ;;  %v804_v37 = vand.u32 2147483647, %v799_v31 }
 0x11a   :  { %v805_v38 = vand.u32 2147483647, %v800_v23  ;;  %v792_v39 = vadd.f32 %v787_v12, %v763_v18  ;;  %v806_v40 = vand.u32 2147483647, %v801_v24  ;;  %v807_v41 = vand.u32 2147483647, %v802_v13 }
 0x11b   :  { %v2629_v42 = vadd.f32 -0.2, %v803_v33  ;;  %v2630_v46 = vadd.f32 -0.2, %v804_v37  ;;  %v827_v50 = vsub.f32 %v825_v34, %v3268_v54  ;;  %v3154_v55 = vmov 62  }
 0x11c   :  { %v2631_v49 = vadd.f32 -0.2, %v805_v38  ;;  %v2632_v51 = vadd.f32 -0.2, %v806_v40  ;;  %v2633_v52 = vadd.f32 -0.2, %v807_v41  ;;  %3059 = vset.pattern.permute.xlu0 %v3154_v55  ;;  %v828_v60 = vsub.f32 %v825_v34, %v3270_v56 }
 0x11d   :  { %v813_v53 = vmax.f32 %v2629_v42, 0.0  ;;  %v814_v61 = vmax.f32 %v2630_v46, 0.0  ;;  %v829_v63 = vsub.f32 %v825_v34, %v3272_v57  ;;  %v830_v0 = vsub.f32 %v825_v34, %v3274_v58  ;;  %1926 = vperm.xlu0 %3059, %v3455_v4  }
 0x11e   :  { %v815_v62 = vmax.f32 %v2631_v49, 0.0  ;;  %v793_v1 = vadd.f32 %v788_v29, %v764_v28  ;;  %v816_v3 = vmax.f32 %v2632_v51, 0.0  ;;  %v817_v5 = vmax.f32 %v2633_v52, 0.0  ;;  %v883_v28 = vpop.permute.xlu0 %882 }
 0x11f   :  { %v831_v43 = vsub.f32 %v825_v34, %v3277_v59  ;;  %v818_v45 = vadd.f32 %v813_v53, %v789_v32  ;;  %v819_v47 = vadd.f32 %v814_v61, %v790_v35  ;;  %v832_v48 = vand.u32 2147483647, %v827_v50 }
 0x120   :  { %v833_v6 = vand.u32 2147483647, %v828_v60  ;;  %v820_v9 = vadd.f32 %v815_v62, %v791_v36  ;;  %v821_v2 = vadd.f32 %v816_v3, %v792_v39  ;;  %v834_v17 = vand.u32 2147483647, %v829_v63 }
 0x121   :  { %v835_v25 = vand.u32 2147483647, %v830_v0  ;;  %v836_v10 = vand.u32 2147483647, %v831_v43  ;;  %v2634_v18 = vadd.f32 -0.2, %v832_v48  ;;  %v856_v14 = vsub.f32 %v854_v44, %v3268_v54 }
 0x122   :  { %v2635_v26 = vadd.f32 -0.2, %v833_v6  ;;  %v2636_v19 = vadd.f32 -0.2, %v834_v17  ;;  %v857_v21 = vsub.f32 %v854_v44, %v3270_v56  ;;  %v3155_v31 = vmov 63  }
 0x123   :  { %v2637_v27 = vadd.f32 -0.2, %v835_v25  ;;  %v2638_v30 = vadd.f32 -0.2, %v836_v10  ;;  %v842_v15 = vmax.f32 %v2634_v18, 0.0  ;;  %3060 = vset.pattern.permute.xlu1 %v3155_v31  ;;  %v858_v7 = vsub.f32 %v854_v44, %v3272_v57 }
 0x124   :  { %v843_v22 = vmax.f32 %v2635_v26, 0.0  ;;  %v844_v8 = vmax.f32 %v2636_v19, 0.0  ;;  %1955 = vperm.xlu1 %3060, %v3455_v4   ;;  %v859_v20 = vsub.f32 %v854_v44, %v3274_v58  ;;  %v860_v23 = vsub.f32 %v854_v44, %v3277_v59 }
 0x125   :  { %v845_v16 = vmax.f32 %v2637_v27, 0.0  ;;  %v822_v11 = vadd.f32 %v817_v5, %v793_v1  ;;  %v846_v12 = vmax.f32 %v2638_v30, 0.0  ;;  %v847_v24 = vadd.f32 %v842_v15, %v818_v45  ;;  %v912_v1 = vpop.permute.xlu1 %911 }
 0x126   :  { %v861_v13 = vand.u32 2147483647, %v856_v14  ;;  %v848_v29 = vadd.f32 %v843_v22, %v819_v47  ;;  %v849_v32 = vadd.f32 %v844_v8, %v820_v9  ;;  %v862_v33 = vand.u32 2147483647, %v857_v21 }
 0x127   :  { %v863_v34 = vand.u32 2147483647, %v858_v7  ;;  %v850_v35 = vadd.f32 %v845_v16, %v821_v2  ;;  %v864_v36 = vand.u32 2147483647, %v859_v20  ;;  %v865_v37 = vand.u32 2147483647, %v860_v23 }
 0x128   :  { %v2639_v38 = vadd.f32 -0.2, %v861_v13  ;;  %v2640_v39 = vadd.f32 -0.2, %v862_v33  ;;  %v885_v41 = vsub.f32 %v883_v28, %v3268_v54  ;;  %v3156_v50 = vmov 64  }
 0x129   :  { %v2641_v40 = vadd.f32 -0.2, %v863_v34  ;;  %v2642_v42 = vadd.f32 -0.2, %v864_v36  ;;  %v2643_v46 = vadd.f32 -0.2, %v865_v37  ;;  %3061 = vset.pattern.permute.xlu1 %v3156_v50  ;;  %v886_v51 = vsub.f32 %v883_v28, %v3270_v56 }
 0x12a   :  { %v871_v49 = vmax.f32 %v2639_v38, 0.0  ;;  %v872_v52 = vmax.f32 %v2640_v39, 0.0  ;;  %v887_v55 = vsub.f32 %v883_v28, %v3272_v57  ;;  %v888_v60 = vsub.f32 %v883_v28, %v3274_v58  ;;  %1984 = vperm.xlu1 %3061, %v3455_v4  }
 0x12b   :  { %v873_v53 = vmax.f32 %v2641_v40, 0.0  ;;  %v851_v61 = vadd.f32 %v846_v12, %v822_v11  ;;  %v874_v62 = vmax.f32 %v2642_v42, 0.0  ;;  %v875_v63 = vmax.f32 %v2643_v46, 0.0  ;;  %v941_v11 = vpop.permute.xlu1 %940 }
 0x12c   :  { %v889_v0 = vsub.f32 %v883_v28, %v3277_v59  ;;  %v876_v3 = vadd.f32 %v871_v49, %v847_v24  ;;  %v877_v5 = vadd.f32 %v872_v52, %v848_v29  ;;  %v890_v43 = vand.u32 2147483647, %v885_v41 }
 0x12d   :  { %v891_v44 = vand.u32 2147483647, %v886_v51  ;;  %v878_v45 = vadd.f32 %v873_v53, %v849_v32  ;;  %v879_v47 = vadd.f32 %v874_v62, %v850_v35  ;;  %v892_v48 = vand.u32 2147483647, %v887_v55 }
 0x12e   :  { %v893_v6 = vand.u32 2147483647, %v888_v60  ;;  %v894_v9 = vand.u32 2147483647, %v889_v0  ;;  %v2644_v2 = vadd.f32 -0.2, %v890_v43  ;;  %v914_v25 = vsub.f32 %v912_v1, %v3268_v54 }
 0x12f   :  { %v2645_v17 = vadd.f32 -0.2, %v891_v44  ;;  %v2646_v10 = vadd.f32 -0.2, %v892_v48  ;;  %v915_v26 = vsub.f32 %v912_v1, %v3270_v56  ;;  %v3157_v21 = vmov 65  }
 0x130   :  { %v2647_v18 = vadd.f32 -0.2, %v893_v6  ;;  %v2648_v14 = vadd.f32 -0.2, %v894_v9  ;;  %v900_v19 = vmax.f32 %v2644_v2, 0.0  ;;  %3062 = vset.pattern.permute.xlu0 %v3157_v21  ;;  %v916_v30 = vsub.f32 %v912_v1, %v3272_v57 }
 0x131   :  { %v901_v27 = vmax.f32 %v2645_v17, 0.0  ;;  %v902_v15 = vmax.f32 %v2646_v10, 0.0  ;;  %v917_v31 = vsub.f32 %v912_v1, %v3274_v58  ;;  %v918_v7 = vsub.f32 %v912_v1, %v3277_v59  ;;  %2013 = vperm.xlu0 %3062, %v3455_v4  }
 0x132   :  { %v903_v22 = vmax.f32 %v2647_v18, 0.0  ;;  %v880_v8 = vadd.f32 %v875_v63, %v851_v61  ;;  %v904_v16 = vmax.f32 %v2648_v14, 0.0  ;;  %v905_v20 = vadd.f32 %v900_v19, %v876_v3  ;;  %v970_v61 = vpop.permute.xlu0 %969 }
 0x133   :  { %v919_v23 = vand.u32 2147483647, %v914_v25  ;;  %v906_v12 = vadd.f32 %v901_v27, %v877_v5  ;;  %v907_v24 = vadd.f32 %v902_v15, %v878_v45  ;;  %v920_v13 = vand.u32 2147483647, %v915_v26 }
 0x134   :  { %v921_v28 = vand.u32 2147483647, %v916_v30  ;;  %v908_v29 = vadd.f32 %v903_v22, %v879_v47  ;;  %v922_v32 = vand.u32 2147483647, %v917_v31  ;;  %v923_v33 = vand.u32 2147483647, %v918_v7 }
 0x135   :  { %v2649_v34 = vadd.f32 -0.2, %v919_v23  ;;  %v2650_v35 = vadd.f32 -0.2, %v920_v13  ;;  %v943_v37 = vsub.f32 %v941_v11, %v3268_v54  ;;  %v3158_v41 = vmov 66  }
 0x136   :  { %v2651_v36 = vadd.f32 -0.2, %v921_v28  ;;  %v2652_v38 = vadd.f32 -0.2, %v922_v32  ;;  %v2653_v39 = vadd.f32 -0.2, %v923_v33  ;;  %3063 = vset.pattern.permute.xlu1 %v3158_v41  ;;  %v944_v42 = vsub.f32 %v941_v11, %v3270_v56 }
 0x137   :  { %v929_v40 = vmax.f32 %v2649_v34, 0.0  ;;  %v930_v46 = vmax.f32 %v2650_v35, 0.0  ;;  %2042 = vperm.xlu1 %3063, %v3455_v4   ;;  %v945_v50 = vsub.f32 %v941_v11, %v3272_v57  ;;  %v946_v51 = vsub.f32 %v941_v11, %v3274_v58 }
 0x138   :  { %v931_v49 = vmax.f32 %v2651_v36, 0.0  ;;  %v909_v52 = vadd.f32 %v904_v16, %v880_v8  ;;  %v932_v53 = vmax.f32 %v2652_v38, 0.0  ;;  %v933_v55 = vmax.f32 %v2653_v39, 0.0  ;;  %v999_v8 = vpop.permute.xlu1 %998 }
 0x139   :  { %v947_v60 = vsub.f32 %v941_v11, %v3277_v59  ;;  %v934_v62 = vadd.f32 %v929_v40, %v905_v20  ;;  %v935_v63 = vadd.f32 %v930_v46, %v906_v12  ;;  %v948_v0 = vand.u32 2147483647, %v943_v37 }
 0x13a   :  { %v949_v1 = vand.u32 2147483647, %v944_v42  ;;  %v936_v3 = vadd.f32 %v931_v49, %v907_v24  ;;  %v937_v5 = vadd.f32 %v932_v53, %v908_v29  ;;  %v950_v43 = vand.u32 2147483647, %v945_v50 }
 0x13b   :  { %v951_v44 = vand.u32 2147483647, %v946_v51  ;;  %v952_v45 = vand.u32 2147483647, %v947_v60  ;;  %v2654_v47 = vadd.f32 -0.2, %v948_v0  ;;  %v972_v6 = vsub.f32 %v970_v61, %v3268_v54 }
 0x13c   :  { %v2655_v48 = vadd.f32 -0.2, %v949_v1  ;;  %v2656_v9 = vadd.f32 -0.2, %v950_v43  ;;  %v973_v17 = vsub.f32 %v970_v61, %v3270_v56  ;;  %v3159_v26 = vmov 67  }
 0x13d   :  { %v2657_v2 = vadd.f32 -0.2, %v951_v44  ;;  %v2658_v25 = vadd.f32 -0.2, %v952_v45  ;;  %v958_v10 = vmax.f32 %v2654_v47, 0.0  ;;  %3064 = vset.pattern.permute.xlu1 %v3159_v26  ;;  %v974_v14 = vsub.f32 %v970_v61, %v3272_v57 }
 0x13e   :  { %v959_v18 = vmax.f32 %v2655_v48, 0.0  ;;  %v960_v19 = vmax.f32 %v2656_v9, 0.0  ;;  %v975_v21 = vsub.f32 %v970_v61, %v3274_v58  ;;  %v976_v30 = vsub.f32 %v970_v61, %v3277_v59  ;;  %2071 = vperm.xlu1 %3064, %v3455_v4  }
 0x13f   :  { %v961_v27 = vmax.f32 %v2657_v2, 0.0  ;;  %v938_v15 = vadd.f32 %v933_v55, %v909_v52  ;;  %v962_v22 = vmax.f32 %v2658_v25, 0.0  ;;  %v963_v31 = vadd.f32 %v958_v10, %v934_v62  ;;  %v1028_v52 = vpop.permute.xlu1 %1027 }
 0x140   :  { %v977_v7 = vand.u32 2147483647, %v972_v6  ;;  %v964_v16 = vadd.f32 %v959_v18, %v935_v63  ;;  %v965_v20 = vadd.f32 %v960_v19, %v936_v3  ;;  %v978_v23 = vand.u32 2147483647, %v973_v17 }
 0x141   :  { %v979_v11 = vand.u32 2147483647, %v974_v14  ;;  %v966_v12 = vadd.f32 %v961_v27, %v937_v5  ;;  %v980_v24 = vand.u32 2147483647, %v975_v21  ;;  %v981_v13 = vand.u32 2147483647, %v976_v30 }
 0x142   :  { %v2659_v28 = vadd.f32 -0.2, %v977_v7  ;;  %v2660_v29 = vadd.f32 -0.2, %v978_v23  ;;  %v1001_v33 = vsub.f32 %v999_v8, %v3268_v54  ;;  %v3160_v37 = vmov 68  }
 0x143   :  { %v2661_v32 = vadd.f32 -0.2, %v979_v11  ;;  %v2662_v34 = vadd.f32 -0.2, %v980_v24  ;;  %v2663_v35 = vadd.f32 -0.2, %v981_v13  ;;  %3065 = vset.pattern.permute.xlu0 %v3160_v37  ;;  %v1002_v38 = vsub.f32 %v999_v8, %v3270_v56 }
 0x144   :  { %v987_v36 = vmax.f32 %v2659_v28, 0.0  ;;  %v988_v39 = vmax.f32 %v2660_v29, 0.0  ;;  %v1003_v41 = vsub.f32 %v999_v8, %v3272_v57  ;;  %v1004_v42 = vsub.f32 %v999_v8, %v3274_v58  ;;  %2100 = vperm.xlu0 %3065, %v3455_v4  }
 0x145   :  { %v989_v40 = vmax.f32 %v2661_v32, 0.0  ;;  %v967_v46 = vadd.f32 %v962_v22, %v938_v15  ;;  %v990_v49 = vmax.f32 %v2662_v34, 0.0  ;;  %v991_v50 = vmax.f32 %v2663_v35, 0.0  ;;  %v1057_v15 = vpop.permute.xlu0 %1056 }
 0x146   :  { %v1005_v51 = vsub.f32 %v999_v8, %v3277_v59  ;;  %v992_v53 = vadd.f32 %v987_v36, %v963_v31  ;;  %v993_v55 = vadd.f32 %v988_v39, %v964_v16  ;;  %v1006_v60 = vand.u32 2147483647, %v1001_v33 }
 0x147   :  { %v1007_v61 = vand.u32 2147483647, %v1002_v38  ;;  %v994_v62 = vadd.f32 %v989_v40, %v965_v20  ;;  %v995_v63 = vadd.f32 %v990_v49, %v966_v12  ;;  %v1008_v0 = vand.u32 2147483647, %v1003_v41 }
 0x148   :  { %v1009_v1 = vand.u32 2147483647, %v1004_v42  ;;  %v1010_v3 = vand.u32 2147483647, %v1005_v51  ;;  %v2664_v5 = vadd.f32 -0.2, %v1006_v60  ;;  %v1030_v44 = vsub.f32 %v1028_v52, %v3268_v54 }
 0x149   :  { %v2665_v43 = vadd.f32 -0.2, %v1007_v61  ;;  %v2666_v45 = vadd.f32 -0.2, %v1008_v0  ;;  %v1031_v48 = vsub.f32 %v1028_v52, %v3270_v56  ;;  %v3161_v17 = vmov 69  }
 0x14a   :  { %v2667_v47 = vadd.f32 -0.2, %v1009_v1  ;;  %v2668_v6 = vadd.f32 -0.2, %v1010_v3  ;;  %v1016_v9 = vmax.f32 %v2664_v5, 0.0  ;;  %3066 = vset.pattern.permute.xlu1 %v3161_v17  ;;  %v1032_v25 = vsub.f32 %v1028_v52, %v3272_v57 }
 0x14b   :  { %v1017_v2 = vmax.f32 %v2665_v43, 0.0  ;;  %v1018_v10 = vmax.f32 %v2666_v45, 0.0  ;;  %2129 = vperm.xlu1 %3066, %v3455_v4   ;;  %v1033_v26 = vsub.f32 %v1028_v52, %v3274_v58  ;;  %v1034_v14 = vsub.f32 %v1028_v52, %v3277_v59 }
 0x14c   :  { %v1019_v18 = vmax.f32 %v2667_v47, 0.0  ;;  %v996_v19 = vadd.f32 %v991_v50, %v967_v46  ;;  %v1020_v27 = vmax.f32 %v2668_v6, 0.0  ;;  %v1021_v21 = vadd.f32 %v1016_v9, %v992_v53  ;;  %v1086_v46 = vpop.permute.xlu1 %1085 }
 0x14d   :  { %v1035_v30 = vand.u32 2147483647, %v1030_v44  ;;  %v1022_v22 = vadd.f32 %v1017_v2, %v993_v55  ;;  %v1023_v31 = vadd.f32 %v1018_v10, %v994_v62  ;;  %v1036_v7 = vand.u32 2147483647, %v1031_v48 }
 0x14e   :  { %v1037_v8 = vand.u32 2147483647, %v1032_v25  ;;  %v1024_v16 = vadd.f32 %v1019_v18, %v995_v63  ;;  %v1038_v20 = vand.u32 2147483647, %v1033_v26  ;;  %v1039_v23 = vand.u32 2147483647, %v1034_v14 }
 0x14f   :  { %v2669_v11 = vadd.f32 -0.2, %v1035_v30  ;;  %v2670_v12 = vadd.f32 -0.2, %v1036_v7  ;;  %v1059_v13 = vsub.f32 %v1057_v15, %v3268_v54  ;;  %v3162_v33 = vmov 70  }
 0x150   :  { %v2671_v24 = vadd.f32 -0.2, %v1037_v8  ;;  %v2672_v28 = vadd.f32 -0.2, %v1038_v20  ;;  %v2673_v29 = vadd.f32 -0.2, %v1039_v23  ;;  %3067 = vset.pattern.permute.xlu1 %v3162_v33  ;;  %v1060_v34 = vsub.f32 %v1057_v15, %v3270_v56 }
 0x151   :  { %v1045_v32 = vmax.f32 %v2669_v11, 0.0  ;;  %v1046_v35 = vmax.f32 %v2670_v12, 0.0  ;;  %v1061_v37 = vsub.f32 %v1057_v15, %v3272_v57  ;;  %v1062_v38 = vsub.f32 %v1057_v15, %v3274_v58  ;;  %2158 = vperm.xlu1 %3067, %v3455_v4  }
 0x152   :  { %v1047_v36 = vmax.f32 %v2671_v24, 0.0  ;;  %v1025_v39 = vadd.f32 %v1020_v27, %v996_v19  ;;  %v1048_v40 = vmax.f32 %v2672_v28, 0.0  ;;  %v1049_v41 = vmax.f32 %v2673_v29, 0.0  ;;  %v1115_v19 = vpop.permute.xlu1 %1114 }
 0x153   :  { %v1063_v42 = vsub.f32 %v1057_v15, %v3277_v59  ;;  %v1050_v49 = vadd.f32 %v1045_v32, %v1021_v21  ;;  %v1051_v50 = vadd.f32 %v1046_v35, %v1022_v22  ;;  %v1064_v51 = vand.u32 2147483647, %v1059_v13 }
 0x154   :  { %v1065_v52 = vand.u32 2147483647, %v1060_v34  ;;  %v1052_v53 = vadd.f32 %v1047_v36, %v1023_v31  ;;  %v1053_v55 = vadd.f32 %v1048_v40, %v1024_v16  ;;  %v1066_v60 = vand.u32 2147483647, %v1061_v37 }
 0x155   :  { %v1067_v61 = vand.u32 2147483647, %v1062_v38  ;;  %v1068_v62 = vand.u32 2147483647, %v1063_v42  ;;  %v2674_v63 = vadd.f32 -0.2, %v1064_v51  ;;  %v1088_v1 = vsub.f32 %v1086_v46, %v3268_v54 }
 0x156   :  { %v2675_v0 = vadd.f32 -0.2, %v1065_v52  ;;  %v2676_v3 = vadd.f32 -0.2, %v1066_v60  ;;  %v1089_v43 = vsub.f32 %v1086_v46, %v3270_v56  ;;  %v3163_v48 = vmov 71  }
 0x157   :  { %v2677_v5 = vadd.f32 -0.2, %v1067_v61  ;;  %v2678_v44 = vadd.f32 -0.2, %v1068_v62  ;;  %v1074_v45 = vmax.f32 %v2674_v63, 0.0  ;;  %3068 = vset.pattern.permute.xlu0 %v3163_v48  ;;  %v1090_v6 = vsub.f32 %v1086_v46, %v3272_v57 }
 0x158   :  { %v1075_v47 = vmax.f32 %v2675_v0, 0.0  ;;  %v1076_v9 = vmax.f32 %v2676_v3, 0.0  ;;  %v1091_v17 = vsub.f32 %v1086_v46, %v3274_v58  ;;  %v1092_v25 = vsub.f32 %v1086_v46, %v3277_v59  ;;  %2187 = vperm.xlu0 %3068, %v3455_v4  }
 0x159   :  { %v1077_v2 = vmax.f32 %v2677_v5, 0.0  ;;  %v1054_v10 = vadd.f32 %v1049_v41, %v1025_v39  ;;  %v1078_v18 = vmax.f32 %v2678_v44, 0.0  ;;  %v1079_v26 = vadd.f32 %v1074_v45, %v1050_v49  ;;  %v1144_v39 = vpop.permute.xlu0 %1143 }
 0x15a   :  { %v1093_v14 = vand.u32 2147483647, %v1088_v1  ;;  %v1080_v27 = vadd.f32 %v1075_v47, %v1051_v50  ;;  %v1081_v21 = vadd.f32 %v1076_v9, %v1052_v53  ;;  %v1094_v30 = vand.u32 2147483647, %v1089_v43 }
 0x15b   :  { %v1095_v15 = vand.u32 2147483647, %v1090_v6  ;;  %v1082_v22 = vadd.f32 %v1077_v2, %v1053_v55  ;;  %v1096_v31 = vand.u32 2147483647, %v1091_v17  ;;  %v1097_v7 = vand.u32 2147483647, %v1092_v25 }
 0x15c   :  { %v2679_v8 = vadd.f32 -0.2, %v1093_v14  ;;  %v2680_v16 = vadd.f32 -0.2, %v1094_v30  ;;  %v1117_v23 = vsub.f32 %v1115_v19, %v3268_v54  ;;  %v3164_v13 = vmov 72  }
 0x15d   :  { %v2681_v20 = vadd.f32 -0.2, %v1095_v15  ;;  %v2682_v11 = vadd.f32 -0.2, %v1096_v31  ;;  %v2683_v12 = vadd.f32 -0.2, %v1097_v7  ;;  %3069 = vset.pattern.permute.xlu1 %v3164_v13  ;;  %v1118_v28 = vsub.f32 %v1115_v19, %v3270_v56 }
 0x15e   :  { %v1103_v24 = vmax.f32 %v2679_v8, 0.0  ;;  %v1104_v29 = vmax.f32 %v2680_v16, 0.0  ;;  %2216 = vperm.xlu1 %3069, %v3455_v4   ;;  %v1119_v33 = vsub.f32 %v1115_v19, %v3272_v57  ;;  %v1120_v34 = vsub.f32 %v1115_v19, %v3274_v58 }
 0x15f   :  { %v1105_v32 = vmax.f32 %v2681_v20, 0.0  ;;  %v1083_v35 = vadd.f32 %v1078_v18, %v1054_v10  ;;  %v1106_v36 = vmax.f32 %v2682_v11, 0.0  ;;  %v1107_v37 = vmax.f32 %v2683_v12, 0.0  ;;  %v1173_v10 = vpop.permute.xlu1 %1172 }
 0x160   :  { %v1121_v38 = vsub.f32 %v1115_v19, %v3277_v59  ;;  %v1108_v40 = vadd.f32 %v1103_v24, %v1079_v26  ;;  %v1109_v41 = vadd.f32 %v1104_v29, %v1080_v27  ;;  %v1122_v42 = vand.u32 2147483647, %v1117_v23 }
 0x161   :  { %v1123_v46 = vand.u32 2147483647, %v1118_v28  ;;  %v1110_v49 = vadd.f32 %v1105_v32, %v1081_v21  ;;  %v1111_v50 = vadd.f32 %v1106_v36, %v1082_v22  ;;  %v1124_v51 = vand.u32 2147483647, %v1119_v33 }
 0x162   :  { %v1125_v52 = vand.u32 2147483647, %v1120_v34  ;;  %v1126_v53 = vand.u32 2147483647, %v1121_v38  ;;  %v2684_v55 = vadd.f32 -0.2, %v1122_v42  ;;  %v1146_v61 = vsub.f32 %v1144_v39, %v3268_v54 }
 0x163   :  { %v2685_v60 = vadd.f32 -0.2, %v1123_v46  ;;  %v2686_v62 = vadd.f32 -0.2, %v1124_v51  ;;  %v1147_v0 = vsub.f32 %v1144_v39, %v3270_v56  ;;  %v3165_v43 = vmov 73  }
 0x164   :  { %v2687_v63 = vadd.f32 -0.2, %v1125_v52  ;;  %v2688_v1 = vadd.f32 -0.2, %v1126_v53  ;;  %v1132_v3 = vmax.f32 %v2684_v55, 0.0  ;;  %3070 = vset.pattern.permute.xlu1 %v3165_v43  ;;  %v1148_v44 = vsub.f32 %v1144_v39, %v3272_v57 }
 0x165   :  { %v1133_v5 = vmax.f32 %v2685_v60, 0.0  ;;  %v1134_v45 = vmax.f32 %v2686_v62, 0.0  ;;  %v1149_v48 = vsub.f32 %v1144_v39, %v3274_v58  ;;  %v1150_v6 = vsub.f32 %v1144_v39, %v3277_v59  ;;  %2245 = vperm.xlu1 %3070, %v3455_v4  }
 0x166   :  { %v1135_v47 = vmax.f32 %v2687_v63, 0.0  ;;  %v1112_v9 = vadd.f32 %v1107_v37, %v1083_v35  ;;  %v1136_v2 = vmax.f32 %v2688_v1, 0.0  ;;  %v1137_v17 = vadd.f32 %v1132_v3, %v1108_v40  ;;  %v1202_v35 = vpop.permute.xlu1 %1201 }
 0x167   :  { %v1151_v25 = vand.u32 2147483647, %v1146_v61  ;;  %v1138_v18 = vadd.f32 %v1133_v5, %v1109_v41  ;;  %v1139_v26 = vadd.f32 %v1134_v45, %v1110_v49  ;;  %v1152_v14 = vand.u32 2147483647, %v1147_v0 }
 0x168   :  { %v1153_v19 = vand.u32 2147483647, %v1148_v44  ;;  %v1140_v27 = vadd.f32 %v1135_v47, %v1111_v50  ;;  %v1154_v21 = vand.u32 2147483647, %v1149_v48  ;;  %v1155_v30 = vand.u32 2147483647, %v1150_v6 }
 0x169   :  { %v2689_v15 = vadd.f32 -0.2, %v1151_v25  ;;  %v2690_v22 = vadd.f32 -0.2, %v1152_v14  ;;  %v1175_v7 = vsub.f32 %v1173_v10, %v3268_v54  ;;  %v3166_v23 = vmov 74  }
 0x16a   :  { %v2691_v31 = vadd.f32 -0.2, %v1153_v19  ;;  %v2692_v8 = vadd.f32 -0.2, %v1154_v21  ;;  %v2693_v16 = vadd.f32 -0.2, %v1155_v30  ;;  %3071 = vset.pattern.permute.xlu0 %v3166_v23  ;;  %v1176_v11 = vsub.f32 %v1173_v10, %v3270_v56 }
 0x16b   :  { %v1161_v20 = vmax.f32 %v2689_v15, 0.0  ;;  %v1162_v12 = vmax.f32 %v2690_v22, 0.0  ;;  %v1177_v13 = vsub.f32 %v1173_v10, %v3272_v57  ;;  %v1178_v28 = vsub.f32 %v1173_v10, %v3274_v58  ;;  %2274 = vperm.xlu0 %3071, %v3455_v4  }
 0x16c   :  { %v1163_v24 = vmax.f32 %v2691_v31, 0.0  ;;  %v1141_v29 = vadd.f32 %v1136_v2, %v1112_v9  ;;  %v1164_v32 = vmax.f32 %v2692_v8, 0.0  ;;  %v1165_v33 = vmax.f32 %v2693_v16, 0.0  ;;  %v1231_v9 = vpop.permute.xlu0 %1230 }
 0x16d   :  { %v1179_v34 = vsub.f32 %v1173_v10, %v3277_v59  ;;  %v1166_v36 = vadd.f32 %v1161_v20, %v1137_v17  ;;  %v1167_v37 = vadd.f32 %v1162_v12, %v1138_v18  ;;  %v1180_v38 = vand.u32 2147483647, %v1175_v7 }
 0x16e   :  { %v1181_v39 = vand.u32 2147483647, %v1176_v11  ;;  %v1168_v40 = vadd.f32 %v1163_v24, %v1139_v26  ;;  %v1169_v41 = vadd.f32 %v1164_v32, %v1140_v27  ;;  %v1182_v42 = vand.u32 2147483647, %v1177_v13 }
 0x16f   :  { %v1183_v46 = vand.u32 2147483647, %v1178_v28  ;;  %v1184_v49 = vand.u32 2147483647, %v1179_v34  ;;  %v2694_v50 = vadd.f32 -0.2, %v1180_v38  ;;  %v1204_v52 = vsub.f32 %v1202_v35, %v3268_v54 }
 0x170   :  { %v2695_v51 = vadd.f32 -0.2, %v1181_v39  ;;  %v2696_v53 = vadd.f32 -0.2, %v1182_v42  ;;  %v1205_v60 = vsub.f32 %v1202_v35, %v3270_v56  ;;  %v3167_v0 = vmov 75  }
 0x171   :  { %v2697_v55 = vadd.f32 -0.2, %v1183_v46  ;;  %v2698_v61 = vadd.f32 -0.2, %v1184_v49  ;;  %v1190_v62 = vmax.f32 %v2694_v50, 0.0  ;;  %3072 = vset.pattern.permute.xlu1 %v3167_v0  ;;  %v1206_v1 = vsub.f32 %v1202_v35, %v3272_v57 }
 0x172   :  { %v1191_v63 = vmax.f32 %v2695_v51, 0.0  ;;  %v1192_v3 = vmax.f32 %v2696_v53, 0.0  ;;  %2303 = vperm.xlu1 %3072, %v3455_v4   ;;  %v1207_v43 = vsub.f32 %v1202_v35, %v3274_v58  ;;  %v1208_v44 = vsub.f32 %v1202_v35, %v3277_v59 }
 0x173   :  { %v1193_v5 = vmax.f32 %v2697_v55, 0.0  ;;  %v1170_v45 = vadd.f32 %v1165_v33, %v1141_v29  ;;  %v1194_v47 = vmax.f32 %v2698_v61, 0.0  ;;  %v1195_v48 = vadd.f32 %v1190_v62, %v1166_v36  ;;  %v1260_v29 = vpop.permute.xlu1 %1259 }
 0x174   :  { %v1209_v6 = vand.u32 2147483647, %v1204_v52  ;;  %v1196_v2 = vadd.f32 %v1191_v63, %v1167_v37  ;;  %v1197_v17 = vadd.f32 %v1192_v3, %v1168_v40  ;;  %v1210_v25 = vand.u32 2147483647, %v1205_v60 }
 0x175   :  { %v1211_v10 = vand.u32 2147483647, %v1206_v1  ;;  %v1198_v18 = vadd.f32 %v1193_v5, %v1169_v41  ;;  %v1212_v26 = vand.u32 2147483647, %v1207_v43  ;;  %v1213_v14 = vand.u32 2147483647, %v1208_v44 }
 0x176   :  { %v2699_v19 = vadd.f32 -0.2, %v1209_v6  ;;  %v2700_v27 = vadd.f32 -0.2, %v1210_v25  ;;  %v1233_v30 = vsub.f32 %v1231_v9, %v3268_v54  ;;  %v3168_v7 = vmov 76  }
 0x177   :  { %v2701_v21 = vadd.f32 -0.2, %v1211_v10  ;;  %v2702_v15 = vadd.f32 -0.2, %v1212_v26  ;;  %v2703_v22 = vadd.f32 -0.2, %v1213_v14  ;;  %3073 = vset.pattern.permute.xlu1 %v3168_v7  ;;  %v1234_v8 = vsub.f32 %v1231_v9, %v3270_v56 }
 0x178   :  { %v1219_v31 = vmax.f32 %v2699_v19, 0.0  ;;  %v1220_v16 = vmax.f32 %v2700_v27, 0.0  ;;  %v1235_v23 = vsub.f32 %v1231_v9, %v3272_v57  ;;  %v1236_v11 = vsub.f32 %v1231_v9, %v3274_v58  ;;  %2332 = vperm.xlu1 %3073, %v3455_v4  }
 0x179   :  { %v1221_v20 = vmax.f32 %v2701_v21, 0.0  ;;  %v1199_v12 = vadd.f32 %v1194_v47, %v1170_v45  ;;  %v1222_v24 = vmax.f32 %v2702_v15, 0.0  ;;  %v1223_v13 = vmax.f32 %v2703_v22, 0.0  ;;  %v1289_v45 = vpop.permute.xlu1 %1288 }
 0x17a   :  { %v1237_v28 = vsub.f32 %v1231_v9, %v3277_v59  ;;  %v1224_v32 = vadd.f32 %v1219_v31, %v1195_v48  ;;  %v1225_v33 = vadd.f32 %v1220_v16, %v1196_v2  ;;  %v1238_v34 = vand.u32 2147483647, %v1233_v30  ;;  %v3079_v31 = vld [vmem:[%s3212_s25] sm:$0xff] }
 0x17b   :  { %v1239_v35 = vand.u32 2147483647, %v1234_v8  ;;  %v1226_v36 = vadd.f32 %v1221_v20, %v1197_v17  ;;  %v1227_v37 = vadd.f32 %v1222_v24, %v1198_v18  ;;  %v1240_v38 = vand.u32 2147483647, %v1235_v23 }
 0x17c   :  { %v1241_v39 = vand.u32 2147483647, %v1236_v11  ;;  %v1242_v40 = vand.u32 2147483647, %v1237_v28  ;;  %v2704_v41 = vadd.f32 -0.2, %v1238_v34  ;;  %v1262_v46 = vsub.f32 %v1260_v29, %v3268_v54 }
 0x17d   :  { %v2705_v42 = vadd.f32 -0.2, %v1239_v35  ;;  %v2706_v49 = vadd.f32 -0.2, %v1240_v38  ;;  %v1263_v51 = vsub.f32 %v1260_v29, %v3270_v56  ;;  %v3169_v60 = vmov 77  }
 0x17e   :  { %v2707_v50 = vadd.f32 -0.2, %v1241_v39  ;;  %v2708_v52 = vadd.f32 -0.2, %v1242_v40  ;;  %v1248_v53 = vmax.f32 %v2704_v41, 0.0  ;;  %3074 = vset.pattern.permute.xlu0 %v3169_v60  ;;  %v1264_v61 = vsub.f32 %v1260_v29, %v3272_v57 }
 0x17f   :  { %v1249_v55 = vmax.f32 %v2705_v42, 0.0  ;;  %v1250_v62 = vmax.f32 %v2706_v49, 0.0  ;;  %v1265_v0 = vsub.f32 %v1260_v29, %v3274_v58  ;;  %v1266_v1 = vsub.f32 %v1260_v29, %v3277_v59  ;;  %2361 = vperm.xlu0 %3074, %v3455_v4  }
 0x180   :  { %v1251_v63 = vmax.f32 %v2707_v50, 0.0  ;;  %v1228_v3 = vadd.f32 %v1223_v13, %v1199_v12  ;;  %v1252_v5 = vmax.f32 %v2708_v52, 0.0  ;;  %v1253_v43 = vadd.f32 %v1248_v53, %v1224_v32  ;;  %v1318_v12 = vpop.permute.xlu0 %1317 }
 0x181   :  { %v1267_v44 = vand.u32 2147483647, %v1262_v46  ;;  %v1254_v47 = vadd.f32 %v1249_v55, %v1225_v33  ;;  %v1255_v48 = vadd.f32 %v1250_v62, %v1226_v36  ;;  %v1268_v6 = vand.u32 2147483647, %v1263_v51 }
 0x182   :  { %v1269_v9 = vand.u32 2147483647, %v1264_v61  ;;  %v1256_v2 = vadd.f32 %v1251_v63, %v1227_v37  ;;  %v1270_v17 = vand.u32 2147483647, %v1265_v0  ;;  %v1271_v25 = vand.u32 2147483647, %v1266_v1 }
 0x183   :  { %v2709_v10 = vadd.f32 -0.2, %v1267_v44  ;;  %v2710_v18 = vadd.f32 -0.2, %v1268_v6  ;;  %v1291_v14 = vsub.f32 %v1289_v45, %v3268_v54  ;;  %v3170_v21 = vmov 78  }
 0x184   :  { %v2711_v26 = vadd.f32 -0.2, %v1269_v9  ;;  %v2712_v19 = vadd.f32 -0.2, %v1270_v17  ;;  %v2713_v4 = vadd.f32 -0.2, %v1271_v25  ;;  %3075 = vset.pattern.permute.xlu1 %v3170_v21  ;;  %v1292_v30 = vsub.f32 %v1289_v45, %v3270_v56 }
 0x185   :  { %v1277_v27 = vmax.f32 %v2709_v10, 0.0  ;;  %v1278_v15 = vmax.f32 %v2710_v18, 0.0  ;;  %2390 = vperm.xlu1 %3075, %v3079_v31   ;;  %v1293_v7 = vsub.f32 %v1289_v45, %v3272_v57  ;;  %v1294_v8 = vsub.f32 %v1289_v45, %v3274_v58 }
 0x186   :  { %v1279_v22 = vmax.f32 %v2711_v26, 0.0  ;;  %v1257_v16 = vadd.f32 %v1252_v5, %v1228_v3  ;;  %v1280_v20 = vmax.f32 %v2712_v19, 0.0  ;;  %v1281_v23 = vmax.f32 %v2713_v4, 0.0  ;;  %v1347_v3 = vpop.permute.xlu1 %1346 }
 0x187   :  { %v1295_v11 = vsub.f32 %v1289_v45, %v3277_v59  ;;  %v1282_v24 = vadd.f32 %v1277_v27, %v1253_v43  ;;  %v1283_v13 = vadd.f32 %v1278_v15, %v1254_v47  ;;  %v1296_v28 = vand.u32 2147483647, %v1291_v14 }
 0x188   :  { %v1297_v29 = vand.u32 2147483647, %v1292_v30  ;;  %v1284_v32 = vadd.f32 %v1279_v22, %v1255_v48  ;;  %v1285_v33 = vadd.f32 %v1280_v20, %v1256_v2  ;;  %v1298_v34 = vand.u32 2147483647, %v1293_v7 }
 0x189   :  { %v1299_v35 = vand.u32 2147483647, %v1294_v8  ;;  %v1300_v36 = vand.u32 2147483647, %v1295_v11  ;;  %v2714_v37 = vadd.f32 -0.2, %v1296_v28  ;;  %v1320_v39 = vsub.f32 %v1318_v12, %v3268_v54 }
 0x18a   :  { %v2715_v38 = vadd.f32 -0.2, %v1297_v29  ;;  %v2716_v40 = vadd.f32 -0.2, %v1298_v34  ;;  %v1321_v42 = vsub.f32 %v1318_v12, %v3270_v56  ;;  %v3171_v51 = vmov 79   ;;  %v1376_v8 = vpop.permute.xlu1 %1375 }
 0x18b   :  { %v2717_v41 = vadd.f32 -0.2, %v1299_v35  ;;  %v2718_v46 = vadd.f32 -0.2, %v1300_v36  ;;  %v1306_v49 = vmax.f32 %v2714_v37, 0.0  ;;  %3076 = vset.pattern.permute.xlu1 %v3171_v51  ;;  %v1322_v52 = vsub.f32 %v1318_v12, %v3272_v57  ;;  %3077 = vset.pattern.permute.xlu0 %v3171_v51 }
 0x18c   :  { %v1307_v50 = vmax.f32 %v2715_v38, 0.0  ;;  %v1308_v53 = vmax.f32 %v2716_v40, 0.0  ;;  %v1323_v60 = vsub.f32 %v1318_v12, %v3274_v58  ;;  %v1324_v61 = vsub.f32 %v1318_v12, %v3277_v59  ;;  %2419 = vperm.xlu1 %3076, %v3079_v31  }
 0x18d   :  { %v1309_v55 = vmax.f32 %v2717_v41, 0.0  ;;  %v1286_v62 = vadd.f32 %v1281_v23, %v1257_v16  ;;  %v1310_v63 = vmax.f32 %v2718_v46, 0.0  ;;  %v1311_v0 = vadd.f32 %v1306_v49, %v1282_v24 }
 0x18e   :  { %v1325_v1 = vand.u32 2147483647, %v1320_v39  ;;  %v1312_v5 = vadd.f32 %v1307_v50, %v1283_v13  ;;  %v1313_v43 = vadd.f32 %v1308_v53, %v1284_v32  ;;  %v1326_v44 = vand.u32 2147483647, %v1321_v42 }
 0x18f   :  { %v1327_v45 = vand.u32 2147483647, %v1322_v52  ;;  %v1314_v47 = vadd.f32 %v1309_v55, %v1285_v33  ;;  %v1328_v48 = vand.u32 2147483647, %v1323_v60  ;;  %v1329_v6 = vand.u32 2147483647, %v1324_v61  ;;  %v1405_v52 = vpop.permute.xlu0 %1404 }
 0x190   :  { %v2719_v9 = vadd.f32 -0.2, %v1325_v1  ;;  %v2720_v2 = vadd.f32 -0.2, %v1326_v44  ;;  %v1349_v25 = vsub.f32 %v1347_v3, %v3268_v54  ;;  %v1350_v10 = vsub.f32 %v1347_v3, %v3270_v56 }
 0x191   :  { %v2721_v17 = vadd.f32 -0.2, %v1327_v45  ;;  %v2722_v18 = vadd.f32 -0.2, %v1328_v48  ;;  %v2723_v26 = vadd.f32 -0.2, %v1329_v6  ;;  %v1351_v19 = vsub.f32 %v1347_v3, %v3272_v57 }
 0x192   :  { %v1335_v14 = vmax.f32 %v2719_v9, 0.0  ;;  %v1336_v4 = vmax.f32 %v2720_v2, 0.0  ;;  %v1352_v21 = vsub.f32 %v1347_v3, %v3274_v58  ;;  %v1353_v30 = vsub.f32 %v1347_v3, %v3277_v59 }
 0x193   :  { %v1337_v27 = vmax.f32 %v2721_v17, 0.0  ;;  %v1315_v15 = vadd.f32 %v1310_v63, %v1286_v62  ;;  %v1338_v22 = vmax.f32 %v2722_v18, 0.0  ;;  %v1339_v31 = vmax.f32 %v2723_v26, 0.0 }
 0x194   :  { %v1354_v7 = vand.u32 2147483647, %v1349_v25  ;;  %v1340_v16 = vadd.f32 %v1335_v14, %v1311_v0  ;;  %v1341_v20 = vadd.f32 %v1336_v4, %v1312_v5  ;;  %v1355_v23 = vand.u32 2147483647, %v1350_v10 }
 0x195   :  { %v1356_v11 = vand.u32 2147483647, %v1351_v19  ;;  %v1342_v12 = vadd.f32 %v1337_v27, %v1313_v43  ;;  %v1343_v24 = vadd.f32 %v1338_v22, %v1314_v47  ;;  %v1357_v13 = vand.u32 2147483647, %v1352_v21 }
 0x196   :  { %v1358_v28 = vand.u32 2147483647, %v1353_v30  ;;  %v2724_v29 = vadd.f32 -0.2, %v1354_v7  ;;  %v2725_v32 = vadd.f32 -0.2, %v1355_v23  ;;  %v1378_v34 = vsub.f32 %v1376_v8, %v3268_v54  ;;  %v1434_v30 = vpop.permute.xlu1 %1433 }
 0x197   :  { %v2726_v33 = vadd.f32 -0.2, %v1356_v11  ;;  %v2727_v35 = vadd.f32 -0.2, %v1357_v13  ;;  %v1379_v37 = vsub.f32 %v1376_v8, %v3270_v56  ;;  %v1380_v38 = vsub.f32 %v1376_v8, %v3272_v57 }
 0x198   :  { %v2728_v36 = vadd.f32 -0.2, %v1358_v28  ;;  %v1364_v39 = vmax.f32 %v2724_v29, 0.0  ;;  %v1365_v40 = vmax.f32 %v2725_v32, 0.0  ;;  %v1381_v42 = vsub.f32 %v1376_v8, %v3274_v58 }
 0x199   :  { %v1366_v41 = vmax.f32 %v2726_v33, 0.0  ;;  %v1344_v46 = vadd.f32 %v1339_v31, %v1315_v15  ;;  %v1367_v49 = vmax.f32 %v2727_v35, 0.0  ;;  %v1382_v50 = vsub.f32 %v1376_v8, %v3277_v59 }
 0x19a   :  { %v1383_v51 = vand.u32 2147483647, %v1378_v34  ;;  %v1368_v53 = vmax.f32 %v2728_v36, 0.0  ;;  %v1369_v55 = vadd.f32 %v1364_v39, %v1340_v16  ;;  %v1370_v60 = vadd.f32 %v1365_v40, %v1341_v20 }
 0x19b   :  { %v1384_v61 = vand.u32 2147483647, %v1379_v37  ;;  %v1371_v62 = vadd.f32 %v1366_v41, %v1342_v12  ;;  %v1372_v63 = vadd.f32 %v1367_v49, %v1343_v24  ;;  %v1385_v0 = vand.u32 2147483647, %v1380_v38 }
 0x19c   :  { %v1386_v1 = vand.u32 2147483647, %v1381_v42  ;;  %v1387_v3 = vand.u32 2147483647, %v1382_v50  ;;  %v2729_v5 = vadd.f32 -0.2, %v1383_v51  ;;  %v1407_v44 = vsub.f32 %v1405_v52, %v3268_v54  ;;  %v1463_v42 = vpop.permute.xlu1 %1462 }
 0x19d   :  { %v2730_v43 = vadd.f32 -0.2, %v1384_v61  ;;  %v2731_v45 = vadd.f32 -0.2, %v1385_v0  ;;  %v1408_v48 = vsub.f32 %v1405_v52, %v3270_v56  ;;  %v1409_v6 = vsub.f32 %v1405_v52, %v3272_v57 }
 0x19e   :  { %v2732_v47 = vadd.f32 -0.2, %v1386_v1  ;;  %v2733_v9 = vadd.f32 -0.2, %v1387_v3  ;;  %v1393_v2 = vmax.f32 %v2729_v5, 0.0  ;;  %v1410_v25 = vsub.f32 %v1405_v52, %v3274_v58 }
 0x19f   :  { %v1394_v17 = vmax.f32 %v2730_v43, 0.0  ;;  %v1395_v10 = vmax.f32 %v2731_v45, 0.0  ;;  %v1411_v26 = vsub.f32 %v1405_v52, %v3277_v59  ;;  %v1412_v14 = vand.u32 2147483647, %v1407_v44 }
 0x1a0   :  { %v1396_v18 = vmax.f32 %v2732_v47, 0.0  ;;  %v1373_v19 = vadd.f32 %v1368_v53, %v1344_v46  ;;  %v1397_v4 = vmax.f32 %v2733_v9, 0.0  ;;  %v1398_v27 = vadd.f32 %v1393_v2, %v1369_v55 }
 0x1a1   :  { %v1413_v21 = vand.u32 2147483647, %v1408_v48  ;;  %v1399_v15 = vadd.f32 %v1394_v17, %v1370_v60  ;;  %v1400_v22 = vadd.f32 %v1395_v10, %v1371_v62  ;;  %v1414_v31 = vand.u32 2147483647, %v1409_v6 }
 0x1a2   :  { %v1415_v7 = vand.u32 2147483647, %v1410_v25  ;;  %v1401_v8 = vadd.f32 %v1396_v18, %v1372_v63  ;;  %v1416_v16 = vand.u32 2147483647, %v1411_v26  ;;  %v2734_v20 = vadd.f32 -0.2, %v1412_v14  ;;  %v1492_v25 = vpop.permute.xlu0 %1491 }
 0x1a3   :  { %v2735_v23 = vadd.f32 -0.2, %v1413_v21  ;;  %v2736_v11 = vadd.f32 -0.2, %v1414_v31  ;;  %v1436_v24 = vsub.f32 %v1434_v30, %v3268_v54  ;;  %v1437_v13 = vsub.f32 %v1434_v30, %v3270_v56 }
 0x1a4   :  { %v2737_v12 = vadd.f32 -0.2, %v1415_v7  ;;  %v2738_v28 = vadd.f32 -0.2, %v1416_v16  ;;  %v1422_v29 = vmax.f32 %v2734_v20, 0.0  ;;  %v1438_v33 = vsub.f32 %v1434_v30, %v3272_v57 }
 0x1a5   :  { %v1423_v32 = vmax.f32 %v2735_v23, 0.0  ;;  %v1424_v34 = vmax.f32 %v2736_v11, 0.0  ;;  %v1439_v36 = vsub.f32 %v1434_v30, %v3274_v58  ;;  %v1440_v37 = vsub.f32 %v1434_v30, %v3277_v59 }
 0x1a6   :  { %v1425_v35 = vmax.f32 %v2737_v12, 0.0  ;;  %v1402_v38 = vadd.f32 %v1397_v4, %v1373_v19  ;;  %v1426_v39 = vmax.f32 %v2738_v28, 0.0  ;;  %v1427_v40 = vadd.f32 %v1422_v29, %v1398_v27 }
 0x1a7   :  { %v1441_v41 = vand.u32 2147483647, %v1436_v24  ;;  %v1428_v46 = vadd.f32 %v1423_v32, %v1399_v15  ;;  %v1429_v49 = vadd.f32 %v1424_v34, %v1400_v22  ;;  %v1442_v50 = vand.u32 2147483647, %v1437_v13 }
 0x1a8   :  { %v1443_v51 = vand.u32 2147483647, %v1438_v33  ;;  %v1430_v52 = vadd.f32 %v1425_v35, %v1401_v8  ;;  %v1444_v53 = vand.u32 2147483647, %v1439_v36  ;;  %v1445_v55 = vand.u32 2147483647, %v1440_v37  ;;  %v1521_v33 = vpop.permute.xlu1 %1520 }
 0x1a9   :  { %v2739_v60 = vadd.f32 -0.2, %v1441_v41  ;;  %v2740_v61 = vadd.f32 -0.2, %v1442_v50  ;;  %v1465_v63 = vsub.f32 %v1463_v42, %v3268_v54  ;;  %v1466_v0 = vsub.f32 %v1463_v42, %v3270_v56 }
 0x1aa   :  { %v2741_v62 = vadd.f32 -0.2, %v1443_v51  ;;  %v2742_v1 = vadd.f32 -0.2, %v1444_v53  ;;  %v2743_v3 = vadd.f32 -0.2, %v1445_v55  ;;  %v1467_v43 = vsub.f32 %v1463_v42, %v3272_v57 }
 0x1ab   :  { %v1451_v5 = vmax.f32 %v2739_v60, 0.0  ;;  %v1452_v44 = vmax.f32 %v2740_v61, 0.0  ;;  %v1468_v47 = vsub.f32 %v1463_v42, %v3274_v58  ;;  %v1469_v48 = vsub.f32 %v1463_v42, %v3277_v59 }
 0x1ac   :  { %v1453_v45 = vmax.f32 %v2741_v62, 0.0  ;;  %v1431_v6 = vadd.f32 %v1426_v39, %v1402_v38  ;;  %v1454_v9 = vmax.f32 %v2742_v1, 0.0  ;;  %v1455_v2 = vmax.f32 %v2743_v3, 0.0 }
 0x1ad   :  { %v1470_v17 = vand.u32 2147483647, %v1465_v63  ;;  %v1456_v10 = vadd.f32 %v1451_v5, %v1427_v40  ;;  %v1457_v18 = vadd.f32 %v1452_v44, %v1428_v46  ;;  %v1471_v26 = vand.u32 2147483647, %v1466_v0 }
 0x1ae   :  { %v1472_v14 = vand.u32 2147483647, %v1467_v43  ;;  %v1458_v19 = vadd.f32 %v1453_v45, %v1429_v49  ;;  %v1459_v4 = vadd.f32 %v1454_v9, %v1430_v52  ;;  %v1473_v27 = vand.u32 2147483647, %v1468_v47 }
 0x1af   :  { %v1474_v21 = vand.u32 2147483647, %v1469_v48  ;;  %v2744_v30 = vadd.f32 -0.2, %v1470_v17  ;;  %v2745_v15 = vadd.f32 -0.2, %v1471_v26  ;;  %v1494_v31 = vsub.f32 %v1492_v25, %v3268_v54  ;;  %v1550_v48 = vpop.permute.xlu1 %1549 }
 0x1b0   :  { %v2746_v22 = vadd.f32 -0.2, %v1472_v14  ;;  %v2747_v7 = vadd.f32 -0.2, %v1473_v27  ;;  %v1495_v16 = vsub.f32 %v1492_v25, %v3270_v56  ;;  %v1496_v20 = vsub.f32 %v1492_v25, %v3272_v57 }
 0x1b1   :  { %v2748_v8 = vadd.f32 -0.2, %v1474_v21  ;;  %v1480_v23 = vmax.f32 %v2744_v30, 0.0  ;;  %v1481_v11 = vmax.f32 %v2745_v15, 0.0  ;;  %v1497_v24 = vsub.f32 %v1492_v25, %v3274_v58 }
 0x1b2   :  { %v1482_v12 = vmax.f32 %v2746_v22, 0.0  ;;  %v1460_v13 = vadd.f32 %v1455_v2, %v1431_v6  ;;  %v1483_v28 = vmax.f32 %v2747_v7, 0.0  ;;  %v1498_v29 = vsub.f32 %v1492_v25, %v3277_v59 }
 0x1b3   :  { %v1499_v32 = vand.u32 2147483647, %v1494_v31  ;;  %v1484_v34 = vmax.f32 %v2748_v8, 0.0  ;;  %v1485_v35 = vadd.f32 %v1480_v23, %v1456_v10  ;;  %v1486_v36 = vadd.f32 %v1481_v11, %v1457_v18 }
 0x1b4   :  { %v1500_v37 = vand.u32 2147483647, %v1495_v16  ;;  %v1487_v38 = vadd.f32 %v1482_v12, %v1458_v19  ;;  %v1488_v39 = vadd.f32 %v1483_v28, %v1459_v4  ;;  %v1501_v40 = vand.u32 2147483647, %v1496_v20 }
 0x1b5   :  { %v1502_v41 = vand.u32 2147483647, %v1497_v24  ;;  %v1503_v42 = vand.u32 2147483647, %v1498_v29  ;;  %v2749_v46 = vadd.f32 -0.2, %v1499_v32  ;;  %v1523_v50 = vsub.f32 %v1521_v33, %v3268_v54  ;;  %v1579_v24 = vpop.permute.xlu0 %1578 }
 0x1b6   :  { %v2750_v49 = vadd.f32 -0.2, %v1500_v37  ;;  %v2751_v51 = vadd.f32 -0.2, %v1501_v40  ;;  %v1524_v53 = vsub.f32 %v1521_v33, %v3270_v56  ;;  %v1525_v55 = vsub.f32 %v1521_v33, %v3272_v57 }
 0x1b7   :  { %v2752_v52 = vadd.f32 -0.2, %v1502_v41  ;;  %v2753_v60 = vadd.f32 -0.2, %v1503_v42  ;;  %v1509_v61 = vmax.f32 %v2749_v46, 0.0  ;;  %v1526_v63 = vsub.f32 %v1521_v33, %v3274_v58 }
 0x1b8   :  { %v1510_v62 = vmax.f32 %v2750_v49, 0.0  ;;  %v1511_v0 = vmax.f32 %v2751_v51, 0.0  ;;  %v1527_v3 = vsub.f32 %v1521_v33, %v3277_v59  ;;  %v1528_v5 = vand.u32 2147483647, %v1523_v50 }
 0x1b9   :  { %v1512_v1 = vmax.f32 %v2752_v52, 0.0  ;;  %v1489_v43 = vadd.f32 %v1484_v34, %v1460_v13  ;;  %v1513_v44 = vmax.f32 %v2753_v60, 0.0  ;;  %v1514_v45 = vadd.f32 %v1509_v61, %v1485_v35 }
 0x1ba   :  { %v1529_v47 = vand.u32 2147483647, %v1524_v53  ;;  %v1515_v6 = vadd.f32 %v1510_v62, %v1486_v36  ;;  %v1516_v9 = vadd.f32 %v1511_v0, %v1487_v38  ;;  %v1530_v2 = vand.u32 2147483647, %v1525_v55 }
 0x1bb   :  { %v1531_v17 = vand.u32 2147483647, %v1526_v63  ;;  %v1517_v25 = vadd.f32 %v1512_v1, %v1488_v39  ;;  %v1532_v10 = vand.u32 2147483647, %v1527_v3  ;;  %v2754_v18 = vadd.f32 -0.2, %v1528_v5  ;;  %v1608_v63 = vpop.permute.xlu1 %1607 }
 0x1bc   :  { %v2755_v26 = vadd.f32 -0.2, %v1529_v47  ;;  %v2756_v14 = vadd.f32 -0.2, %v1530_v2  ;;  %v1552_v4 = vsub.f32 %v1550_v48, %v3268_v54  ;;  %v1553_v27 = vsub.f32 %v1550_v48, %v3270_v56 }
 0x1bd   :  { %v2757_v19 = vadd.f32 -0.2, %v1531_v17  ;;  %v2758_v21 = vadd.f32 -0.2, %v1532_v10  ;;  %v1538_v30 = vmax.f32 %v2754_v18, 0.0  ;;  %v1554_v22 = vsub.f32 %v1550_v48, %v3272_v57 }
 0x1be   :  { %v1539_v15 = vmax.f32 %v2755_v26, 0.0  ;;  %v1540_v31 = vmax.f32 %v2756_v14, 0.0  ;;  %v1555_v8 = vsub.f32 %v1550_v48, %v3274_v58  ;;  %v1556_v16 = vsub.f32 %v1550_v48, %v3277_v59 }
 0x1bf   :  { %v1541_v7 = vmax.f32 %v2757_v19, 0.0  ;;  %v1518_v20 = vadd.f32 %v1513_v44, %v1489_v43  ;;  %v1542_v23 = vmax.f32 %v2758_v21, 0.0  ;;  %v1543_v11 = vadd.f32 %v1538_v30, %v1514_v45 }
 0x1c0   :  { %v1557_v12 = vand.u32 2147483647, %v1552_v4  ;;  %v1544_v13 = vadd.f32 %v1539_v15, %v1515_v6  ;;  %v1545_v28 = vadd.f32 %v1540_v31, %v1516_v9  ;;  %v1558_v29 = vand.u32 2147483647, %v1553_v27 }
 0x1c1   :  { %v1559_v32 = vand.u32 2147483647, %v1554_v22  ;;  %v1546_v33 = vadd.f32 %v1541_v7, %v1517_v25  ;;  %v1560_v34 = vand.u32 2147483647, %v1555_v8  ;;  %v1561_v35 = vand.u32 2147483647, %v1556_v16  ;;  %v1637_v22 = vpop.permute.xlu1 %1636 }
 0x1c2   :  { %v2759_v36 = vadd.f32 -0.2, %v1557_v12  ;;  %v2760_v37 = vadd.f32 -0.2, %v1558_v29  ;;  %v1581_v39 = vsub.f32 %v1579_v24, %v3268_v54  ;;  %v1582_v40 = vsub.f32 %v1579_v24, %v3270_v56 }
 0x1c3   :  { %v2761_v38 = vadd.f32 -0.2, %v1559_v32  ;;  %v2762_v41 = vadd.f32 -0.2, %v1560_v34  ;;  %v2763_v42 = vadd.f32 -0.2, %v1561_v35  ;;  %v1583_v49 = vsub.f32 %v1579_v24, %v3272_v57 }
 0x1c4   :  { %v1567_v46 = vmax.f32 %v2759_v36, 0.0  ;;  %v1568_v50 = vmax.f32 %v2760_v37, 0.0  ;;  %v1584_v52 = vsub.f32 %v1579_v24, %v3274_v58  ;;  %v1585_v53 = vsub.f32 %v1579_v24, %v3277_v59 }
 0x1c5   :  { %v1569_v51 = vmax.f32 %v2761_v38, 0.0  ;;  %v1547_v55 = vadd.f32 %v1542_v23, %v1518_v20  ;;  %v1570_v60 = vmax.f32 %v2762_v41, 0.0  ;;  %v1571_v61 = vmax.f32 %v2763_v42, 0.0 }
 0x1c6   :  { %v1586_v62 = vand.u32 2147483647, %v1581_v39  ;;  %v1572_v0 = vadd.f32 %v1567_v46, %v1543_v11  ;;  %v1573_v1 = vadd.f32 %v1568_v50, %v1544_v13  ;;  %v1587_v3 = vand.u32 2147483647, %v1582_v40 }
 0x1c7   :  { %v1588_v5 = vand.u32 2147483647, %v1583_v49  ;;  %v1574_v43 = vadd.f32 %v1569_v51, %v1545_v28  ;;  %v1575_v44 = vadd.f32 %v1570_v60, %v1546_v33  ;;  %v1589_v45 = vand.u32 2147483647, %v1584_v52 }
 0x1c8   :  { %v1590_v47 = vand.u32 2147483647, %v1585_v53  ;;  %v2764_v48 = vadd.f32 -0.2, %v1586_v62  ;;  %v2765_v6 = vadd.f32 -0.2, %v1587_v3  ;;  %v1610_v2 = vsub.f32 %v1608_v63, %v3268_v54  ;;  %v1666_v53 = vpop.permute.xlu0 %1665 }
 0x1c9   :  { %v2766_v9 = vadd.f32 -0.2, %v1588_v5  ;;  %v2767_v17 = vadd.f32 -0.2, %v1589_v45  ;;  %v1611_v10 = vsub.f32 %v1608_v63, %v3270_v56  ;;  %v1612_v18 = vsub.f32 %v1608_v63, %v3272_v57 }
 0x1ca   :  { %v2768_v25 = vadd.f32 -0.2, %v1590_v47  ;;  %v1596_v26 = vmax.f32 %v2764_v48, 0.0  ;;  %v1597_v14 = vmax.f32 %v2765_v6, 0.0  ;;  %v1613_v4 = vsub.f32 %v1608_v63, %v3274_v58 }
 0x1cb   :  { %v1598_v19 = vmax.f32 %v2766_v9, 0.0  ;;  %v1576_v27 = vadd.f32 %v1571_v61, %v1547_v55  ;;  %v1599_v21 = vmax.f32 %v2767_v17, 0.0  ;;  %v1614_v30 = vsub.f32 %v1608_v63, %v3277_v59 }
 0x1cc   :  { %v1615_v15 = vand.u32 2147483647, %v1610_v2  ;;  %v1600_v31 = vmax.f32 %v2768_v25, 0.0  ;;  %v1601_v7 = vadd.f32 %v1596_v26, %v1572_v0  ;;  %v1602_v8 = vadd.f32 %v1597_v14, %v1573_v1 }
 0x1cd   :  { %v1616_v16 = vand.u32 2147483647, %v1611_v10  ;;  %v1603_v20 = vadd.f32 %v1598_v19, %v1574_v43  ;;  %v1604_v23 = vadd.f32 %v1599_v21, %v1575_v44  ;;  %v1617_v11 = vand.u32 2147483647, %v1612_v18 }
 0x1ce   :  { %v1618_v12 = vand.u32 2147483647, %v1613_v4  ;;  %v1619_v24 = vand.u32 2147483647, %v1614_v30  ;;  %v2769_v13 = vadd.f32 -0.2, %v1615_v15  ;;  %v1639_v29 = vsub.f32 %v1637_v22, %v3268_v54  ;;  %v1695_v4 = vpop.permute.xlu1 %1694 }
 0x1cf   :  { %v2770_v28 = vadd.f32 -0.2, %v1616_v16  ;;  %v2771_v32 = vadd.f32 -0.2, %v1617_v11  ;;  %v1640_v34 = vsub.f32 %v1637_v22, %v3270_v56  ;;  %v1641_v35 = vsub.f32 %v1637_v22, %v3272_v57 }
 0x1d0   :  { %v2772_v33 = vadd.f32 -0.2, %v1618_v12  ;;  %v2773_v36 = vadd.f32 -0.2, %v1619_v24  ;;  %v1625_v37 = vmax.f32 %v2769_v13, 0.0  ;;  %v1642_v39 = vsub.f32 %v1637_v22, %v3274_v58 }
 0x1d1   :  { %v1626_v38 = vmax.f32 %v2770_v28, 0.0  ;;  %v1627_v40 = vmax.f32 %v2771_v32, 0.0  ;;  %v1643_v42 = vsub.f32 %v1637_v22, %v3277_v59  ;;  %v1644_v46 = vand.u32 2147483647, %v1639_v29 }
 0x1d2   :  { %v1628_v41 = vmax.f32 %v2772_v33, 0.0  ;;  %v1605_v49 = vadd.f32 %v1600_v31, %v1576_v27  ;;  %v1629_v50 = vmax.f32 %v2773_v36, 0.0  ;;  %v1630_v51 = vadd.f32 %v1625_v37, %v1601_v7 }
 0x1d3   :  { %v1645_v52 = vand.u32 2147483647, %v1640_v34  ;;  %v1631_v55 = vadd.f32 %v1626_v38, %v1602_v8  ;;  %v1632_v60 = vadd.f32 %v1627_v40, %v1603_v20  ;;  %v1646_v61 = vand.u32 2147483647, %v1641_v35 }
 0x1d4   :  { %v1647_v62 = vand.u32 2147483647, %v1642_v39  ;;  %v1633_v63 = vadd.f32 %v1628_v41, %v1604_v23  ;;  %v1648_v0 = vand.u32 2147483647, %v1643_v42  ;;  %v2774_v1 = vadd.f32 -0.2, %v1644_v46  ;;  %v1724_v39 = vpop.permute.xlu1 %1723 }
 0x1d5   :  { %v2775_v3 = vadd.f32 -0.2, %v1645_v52  ;;  %v2776_v5 = vadd.f32 -0.2, %v1646_v61  ;;  %v1668_v44 = vsub.f32 %v1666_v53, %v3268_v54  ;;  %v1669_v45 = vsub.f32 %v1666_v53, %v3270_v56 }
 0x1d6   :  { %v2777_v43 = vadd.f32 -0.2, %v1647_v62  ;;  %v2778_v47 = vadd.f32 -0.2, %v1648_v0  ;;  %v1654_v48 = vmax.f32 %v2774_v1, 0.0  ;;  %v1670_v9 = vsub.f32 %v1666_v53, %v3272_v57 }
 0x1d7   :  { %v1655_v6 = vmax.f32 %v2775_v3, 0.0  ;;  %v1656_v2 = vmax.f32 %v2776_v5, 0.0  ;;  %v1671_v25 = vsub.f32 %v1666_v53, %v3274_v58  ;;  %v1672_v10 = vsub.f32 %v1666_v53, %v3277_v59 }
 0x1d8   :  { %v1657_v17 = vmax.f32 %v2777_v43, 0.0  ;;  %v1634_v18 = vadd.f32 %v1629_v50, %v1605_v49  ;;  %v1658_v26 = vmax.f32 %v2778_v47, 0.0  ;;  %v1659_v14 = vadd.f32 %v1654_v48, %v1630_v51 }
 0x1d9   :  { %v1673_v19 = vand.u32 2147483647, %v1668_v44  ;;  %v1660_v27 = vadd.f32 %v1655_v6, %v1631_v55  ;;  %v1661_v21 = vadd.f32 %v1656_v2, %v1632_v60  ;;  %v1674_v30 = vand.u32 2147483647, %v1669_v45 }
 0x1da   :  { %v1675_v15 = vand.u32 2147483647, %v1670_v9  ;;  %v1662_v22 = vadd.f32 %v1657_v17, %v1633_v63  ;;  %v1676_v31 = vand.u32 2147483647, %v1671_v25  ;;  %v1677_v7 = vand.u32 2147483647, %v1672_v10  ;;  %v1753_v9 = vpop.permute.xlu0 %1752 }
 0x1db   :  { %v2779_v8 = vadd.f32 -0.2, %v1673_v19  ;;  %v2780_v16 = vadd.f32 -0.2, %v1674_v30  ;;  %v1697_v23 = vsub.f32 %v1695_v4, %v3268_v54  ;;  %v1698_v11 = vsub.f32 %v1695_v4, %v3270_v56 }
 0x1dc   :  { %v2781_v20 = vadd.f32 -0.2, %v1675_v15  ;;  %v2782_v12 = vadd.f32 -0.2, %v1676_v31  ;;  %v2783_v24 = vadd.f32 -0.2, %v1677_v7  ;;  %v1699_v28 = vsub.f32 %v1695_v4, %v3272_v57 }
 0x1dd   :  { %v1683_v13 = vmax.f32 %v2779_v8, 0.0  ;;  %v1684_v29 = vmax.f32 %v2780_v16, 0.0  ;;  %v1700_v33 = vsub.f32 %v1695_v4, %v3274_v58  ;;  %v1701_v34 = vsub.f32 %v1695_v4, %v3277_v59 }
 0x1de   :  { %v1685_v32 = vmax.f32 %v2781_v20, 0.0  ;;  %v1663_v35 = vadd.f32 %v1658_v26, %v1634_v18  ;;  %v1686_v36 = vmax.f32 %v2782_v12, 0.0  ;;  %v1687_v37 = vmax.f32 %v2783_v24, 0.0 }
 0x1df   :  { %v1702_v38 = vand.u32 2147483647, %v1697_v23  ;;  %v1688_v40 = vadd.f32 %v1683_v13, %v1659_v14  ;;  %v1689_v41 = vadd.f32 %v1684_v29, %v1660_v27  ;;  %v1703_v42 = vand.u32 2147483647, %v1698_v11 }
 0x1e0   :  { %v1704_v46 = vand.u32 2147483647, %v1699_v28  ;;  %v1690_v49 = vadd.f32 %v1685_v32, %v1661_v21  ;;  %v1691_v50 = vadd.f32 %v1686_v36, %v1662_v22  ;;  %v1705_v51 = vand.u32 2147483647, %v1700_v33 }
 0x1e1   :  { %v1706_v52 = vand.u32 2147483647, %v1701_v34  ;;  %v2784_v53 = vadd.f32 -0.2, %v1702_v38  ;;  %v2785_v55 = vadd.f32 -0.2, %v1703_v42  ;;  %v1726_v61 = vsub.f32 %v1724_v39, %v3268_v54  ;;  %v1782_v34 = vpop.permute.xlu1 %1781 }
 0x1e2   :  { %v2786_v60 = vadd.f32 -0.2, %v1704_v46  ;;  %v2787_v62 = vadd.f32 -0.2, %v1705_v51  ;;  %v1727_v0 = vsub.f32 %v1724_v39, %v3270_v56  ;;  %v1728_v1 = vsub.f32 %v1724_v39, %v3272_v57 }
 0x1e3   :  { %v2788_v63 = vadd.f32 -0.2, %v1706_v52  ;;  %v1712_v3 = vmax.f32 %v2784_v53, 0.0  ;;  %v1713_v5 = vmax.f32 %v2785_v55, 0.0  ;;  %v1729_v44 = vsub.f32 %v1724_v39, %v3274_v58 }
 0x1e4   :  { %v1714_v43 = vmax.f32 %v2786_v60, 0.0  ;;  %v1692_v45 = vadd.f32 %v1687_v37, %v1663_v35  ;;  %v1715_v47 = vmax.f32 %v2787_v62, 0.0  ;;  %v1730_v48 = vsub.f32 %v1724_v39, %v3277_v59 }
 0x1e5   :  { %v1731_v6 = vand.u32 2147483647, %v1726_v61  ;;  %v1716_v2 = vmax.f32 %v2788_v63, 0.0  ;;  %v1717_v17 = vadd.f32 %v1712_v3, %v1688_v40  ;;  %v1718_v25 = vadd.f32 %v1713_v5, %v1689_v41 }
 0x1e6   :  { %v1732_v10 = vand.u32 2147483647, %v1727_v0  ;;  %v1719_v18 = vadd.f32 %v1714_v43, %v1690_v49  ;;  %v1720_v26 = vadd.f32 %v1715_v47, %v1691_v50  ;;  %v1733_v14 = vand.u32 2147483647, %v1728_v1 }
 0x1e7   :  { %v1734_v19 = vand.u32 2147483647, %v1729_v44  ;;  %v1735_v4 = vand.u32 2147483647, %v1730_v48  ;;  %v2789_v27 = vadd.f32 -0.2, %v1731_v6  ;;  %v1755_v30 = vsub.f32 %v1753_v9, %v3268_v54  ;;  %v1811_v44 = vpop.permute.xlu1 %1810 }
 0x1e8   :  { %v2790_v21 = vadd.f32 -0.2, %v1732_v10  ;;  %v2791_v15 = vadd.f32 -0.2, %v1733_v14  ;;  %v1756_v31 = vsub.f32 %v1753_v9, %v3270_v56  ;;  %v1757_v7 = vsub.f32 %v1753_v9, %v3272_v57 }
 0x1e9   :  { %v2792_v22 = vadd.f32 -0.2, %v1734_v19  ;;  %v2793_v8 = vadd.f32 -0.2, %v1735_v4  ;;  %v1741_v16 = vmax.f32 %v2789_v27, 0.0  ;;  %v1758_v23 = vsub.f32 %v1753_v9, %v3274_v58 }
 0x1ea   :  { %v1742_v20 = vmax.f32 %v2790_v21, 0.0  ;;  %v1743_v11 = vmax.f32 %v2791_v15, 0.0  ;;  %v1759_v24 = vsub.f32 %v1753_v9, %v3277_v59  ;;  %v1760_v13 = vand.u32 2147483647, %v1755_v30 }
 0x1eb   :  { %v1744_v12 = vmax.f32 %v2792_v22, 0.0  ;;  %v1721_v28 = vadd.f32 %v1716_v2, %v1692_v45  ;;  %v1745_v29 = vmax.f32 %v2793_v8, 0.0  ;;  %v1746_v32 = vadd.f32 %v1741_v16, %v1717_v17 }
 0x1ec   :  { %v1761_v33 = vand.u32 2147483647, %v1756_v31  ;;  %v1747_v35 = vadd.f32 %v1742_v20, %v1718_v25  ;;  %v1748_v36 = vadd.f32 %v1743_v11, %v1719_v18  ;;  %v1762_v37 = vand.u32 2147483647, %v1757_v7 }
 0x1ed   :  { %v1763_v38 = vand.u32 2147483647, %v1758_v23  ;;  %v1749_v39 = vadd.f32 %v1744_v12, %v1720_v26  ;;  %v1764_v40 = vand.u32 2147483647, %v1759_v24  ;;  %v2794_v41 = vadd.f32 -0.2, %v1760_v13  ;;  %v1840_v23 = vpop.permute.xlu0 %1839 }
 0x1ee   :  { %v2795_v42 = vadd.f32 -0.2, %v1761_v33  ;;  %v2796_v46 = vadd.f32 -0.2, %v1762_v37  ;;  %v1784_v50 = vsub.f32 %v1782_v34, %v3268_v54  ;;  %v1785_v51 = vsub.f32 %v1782_v34, %v3270_v56 }
 0x1ef   :  { %v2797_v49 = vadd.f32 -0.2, %v1763_v38  ;;  %v2798_v52 = vadd.f32 -0.2, %v1764_v40  ;;  %v1770_v53 = vmax.f32 %v2794_v41, 0.0  ;;  %v1786_v60 = vsub.f32 %v1782_v34, %v3272_v57 }
 0x1f0   :  { %v1771_v55 = vmax.f32 %v2795_v42, 0.0  ;;  %v1772_v61 = vmax.f32 %v2796_v46, 0.0  ;;  %v1787_v63 = vsub.f32 %v1782_v34, %v3274_v58  ;;  %v1788_v0 = vsub.f32 %v1782_v34, %v3277_v59 }
 0x1f1   :  { %v1773_v62 = vmax.f32 %v2797_v49, 0.0  ;;  %v1750_v1 = vadd.f32 %v1745_v29, %v1721_v28  ;;  %v1774_v3 = vmax.f32 %v2798_v52, 0.0  ;;  %v1775_v5 = vadd.f32 %v1770_v53, %v1746_v32 }
 0x1f2   :  { %v1789_v43 = vand.u32 2147483647, %v1784_v50  ;;  %v1776_v45 = vadd.f32 %v1771_v55, %v1747_v35  ;;  %v1777_v47 = vadd.f32 %v1772_v61, %v1748_v36  ;;  %v1790_v48 = vand.u32 2147483647, %v1785_v51 }
 0x1f3   :  { %v1791_v6 = vand.u32 2147483647, %v1786_v60  ;;  %v1778_v9 = vadd.f32 %v1773_v62, %v1749_v39  ;;  %v1792_v2 = vand.u32 2147483647, %v1787_v63  ;;  %v1793_v17 = vand.u32 2147483647, %v1788_v0  ;;  %v1869_v60 = vpop.permute.xlu1 %1868 }
 0x1f4   :  { %v2799_v25 = vadd.f32 -0.2, %v1789_v43  ;;  %v2800_v10 = vadd.f32 -0.2, %v1790_v48  ;;  %v1813_v26 = vsub.f32 %v1811_v44, %v3268_v54  ;;  %v1814_v14 = vsub.f32 %v1811_v44, %v3270_v56 }
 0x1f5   :  { %v2801_v18 = vadd.f32 -0.2, %v1791_v6  ;;  %v2802_v19 = vadd.f32 -0.2, %v1792_v2  ;;  %v2803_v4 = vadd.f32 -0.2, %v1793_v17  ;;  %v1815_v21 = vsub.f32 %v1811_v44, %v3272_v57 }
 0x1f6   :  { %v1799_v27 = vmax.f32 %v2799_v25, 0.0  ;;  %v1800_v30 = vmax.f32 %v2800_v10, 0.0  ;;  %v1816_v22 = vsub.f32 %v1811_v44, %v3274_v58  ;;  %v1817_v31 = vsub.f32 %v1811_v44, %v3277_v59 }
 0x1f7   :  { %v1801_v15 = vmax.f32 %v2801_v18, 0.0  ;;  %v1779_v7 = vadd.f32 %v1774_v3, %v1750_v1  ;;  %v1802_v8 = vmax.f32 %v2802_v19, 0.0  ;;  %v1803_v16 = vmax.f32 %v2803_v4, 0.0 }
 0x1f8   :  { %v1818_v20 = vand.u32 2147483647, %v1813_v26  ;;  %v1804_v11 = vadd.f32 %v1799_v27, %v1775_v5  ;;  %v1805_v12 = vadd.f32 %v1800_v30, %v1776_v45  ;;  %v1819_v24 = vand.u32 2147483647, %v1814_v14 }
 0x1f9   :  { %v1820_v13 = vand.u32 2147483647, %v1815_v21  ;;  %v1806_v28 = vadd.f32 %v1801_v15, %v1777_v47  ;;  %v1807_v29 = vadd.f32 %v1802_v8, %v1778_v9  ;;  %v1821_v32 = vand.u32 2147483647, %v1816_v22 }
 0x1fa   :  { %v1822_v33 = vand.u32 2147483647, %v1817_v31  ;;  %v2804_v34 = vadd.f32 -0.2, %v1818_v20  ;;  %v2805_v35 = vadd.f32 -0.2, %v1819_v24  ;;  %v1842_v37 = vsub.f32 %v1840_v23, %v3268_v54  ;;  %v1898_v31 = vpop.permute.xlu1 %1897 }
 0x1fb   :  { %v2806_v36 = vadd.f32 -0.2, %v1820_v13  ;;  %v2807_v38 = vadd.f32 -0.2, %v1821_v32  ;;  %v1843_v40 = vsub.f32 %v1840_v23, %v3270_v56  ;;  %v1844_v41 = vsub.f32 %v1840_v23, %v3272_v57 }
 0x1fc   :  { %v2808_v39 = vadd.f32 -0.2, %v1822_v33  ;;  %v1828_v42 = vmax.f32 %v2804_v34, 0.0  ;;  %v1829_v46 = vmax.f32 %v2805_v35, 0.0  ;;  %v1845_v50 = vsub.f32 %v1840_v23, %v3274_v58 }
 0x1fd   :  { %v1830_v49 = vmax.f32 %v2806_v36, 0.0  ;;  %v1808_v51 = vadd.f32 %v1803_v16, %v1779_v7  ;;  %v1831_v52 = vmax.f32 %v2807_v38, 0.0  ;;  %v1846_v53 = vsub.f32 %v1840_v23, %v3277_v59 }
 0x1fe   :  { %v1847_v55 = vand.u32 2147483647, %v1842_v37  ;;  %v1832_v61 = vmax.f32 %v2808_v39, 0.0  ;;  %v1833_v62 = vadd.f32 %v1828_v42, %v1804_v11  ;;  %v1834_v63 = vadd.f32 %v1829_v46, %v1805_v12 }
 0x1ff   :  { %v1848_v0 = vand.u32 2147483647, %v1843_v40  ;;  %v1835_v1 = vadd.f32 %v1830_v49, %v1806_v28  ;;  %v1836_v3 = vadd.f32 %v1831_v52, %v1807_v29  ;;  %v1849_v5 = vand.u32 2147483647, %v1844_v41 }
 0x200   :  { %v1850_v43 = vand.u32 2147483647, %v1845_v50  ;;  %v1851_v44 = vand.u32 2147483647, %v1846_v53  ;;  %v2809_v45 = vadd.f32 -0.2, %v1847_v55  ;;  %v1871_v48 = vsub.f32 %v1869_v60, %v3268_v54  ;;  %v1927_v50 = vpop.permute.xlu0 %1926 }
 0x201   :  { %v2810_v47 = vadd.f32 -0.2, %v1848_v0  ;;  %v2811_v6 = vadd.f32 -0.2, %v1849_v5  ;;  %v1872_v2 = vsub.f32 %v1869_v60, %v3270_v56  ;;  %v1873_v17 = vsub.f32 %v1869_v60, %v3272_v57 }
 0x202   :  { %v2812_v9 = vadd.f32 -0.2, %v1850_v43  ;;  %v2813_v25 = vadd.f32 -0.2, %v1851_v44  ;;  %v1857_v10 = vmax.f32 %v2809_v45, 0.0  ;;  %v1874_v26 = vsub.f32 %v1869_v60, %v3274_v58 }
 0x203   :  { %v1858_v18 = vmax.f32 %v2810_v47, 0.0  ;;  %v1859_v14 = vmax.f32 %v2811_v6, 0.0  ;;  %v1875_v4 = vsub.f32 %v1869_v60, %v3277_v59  ;;  %v1876_v27 = vand.u32 2147483647, %v1871_v48 }
 0x204   :  { %v1860_v19 = vmax.f32 %v2812_v9, 0.0  ;;  %v1837_v21 = vadd.f32 %v1832_v61, %v1808_v51  ;;  %v1861_v30 = vmax.f32 %v2813_v25, 0.0  ;;  %v1862_v15 = vadd.f32 %v1857_v10, %v1833_v62 }
 0x205   :  { %v1877_v22 = vand.u32 2147483647, %v1872_v2  ;;  %v1863_v7 = vadd.f32 %v1858_v18, %v1834_v63  ;;  %v1864_v8 = vadd.f32 %v1859_v14, %v1835_v1  ;;  %v1878_v16 = vand.u32 2147483647, %v1873_v17 }
 0x206   :  { %v1879_v20 = vand.u32 2147483647, %v1874_v26  ;;  %v1865_v23 = vadd.f32 %v1860_v19, %v1836_v3  ;;  %v1880_v11 = vand.u32 2147483647, %v1875_v4  ;;  %v2814_v12 = vadd.f32 -0.2, %v1876_v27  ;;  %v1956_v26 = vpop.permute.xlu1 %1955 }
 0x207   :  { %v2815_v24 = vadd.f32 -0.2, %v1877_v22  ;;  %v2816_v13 = vadd.f32 -0.2, %v1878_v16  ;;  %v1900_v29 = vsub.f32 %v1898_v31, %v3268_v54  ;;  %v1901_v32 = vsub.f32 %v1898_v31, %v3270_v56 }
 0x208   :  { %v2817_v28 = vadd.f32 -0.2, %v1879_v20  ;;  %v2818_v33 = vadd.f32 -0.2, %v1880_v11  ;;  %v1886_v34 = vmax.f32 %v2814_v12, 0.0  ;;  %v1902_v36 = vsub.f32 %v1898_v31, %v3272_v57 }
 0x209   :  { %v1887_v35 = vmax.f32 %v2815_v24, 0.0  ;;  %v1888_v37 = vmax.f32 %v2816_v13, 0.0  ;;  %v1903_v39 = vsub.f32 %v1898_v31, %v3274_v58  ;;  %v1904_v40 = vsub.f32 %v1898_v31, %v3277_v59 }
 0x20a   :  { %v1889_v38 = vmax.f32 %v2817_v28, 0.0  ;;  %v1866_v41 = vadd.f32 %v1861_v30, %v1837_v21  ;;  %v1890_v42 = vmax.f32 %v2818_v33, 0.0  ;;  %v1891_v46 = vadd.f32 %v1886_v34, %v1862_v15 }
 0x20b   :  { %v1905_v49 = vand.u32 2147483647, %v1900_v29  ;;  %v1892_v51 = vadd.f32 %v1887_v35, %v1863_v7  ;;  %v1893_v52 = vadd.f32 %v1888_v37, %v1864_v8  ;;  %v1906_v53 = vand.u32 2147483647, %v1901_v32 }
 0x20c   :  { %v1907_v55 = vand.u32 2147483647, %v1902_v36  ;;  %v1894_v60 = vadd.f32 %v1889_v38, %v1865_v23  ;;  %v1908_v61 = vand.u32 2147483647, %v1903_v39  ;;  %v1909_v62 = vand.u32 2147483647, %v1904_v40  ;;  %v1985_v36 = vpop.permute.xlu1 %1984 }
 0x20d   :  { %v2819_v63 = vadd.f32 -0.2, %v1905_v49  ;;  %v2820_v0 = vadd.f32 -0.2, %v1906_v53  ;;  %v1929_v3 = vsub.f32 %v1927_v50, %v3268_v54  ;;  %v1930_v5 = vsub.f32 %v1927_v50, %v3270_v56 }
 0x20e   :  { %v2821_v1 = vadd.f32 -0.2, %v1907_v55  ;;  %v2822_v43 = vadd.f32 -0.2, %v1908_v61  ;;  %v2823_v44 = vadd.f32 -0.2, %v1909_v62  ;;  %v1931_v47 = vsub.f32 %v1927_v50, %v3272_v57 }
 0x20f   :  { %v1915_v45 = vmax.f32 %v2819_v63, 0.0  ;;  %v1916_v48 = vmax.f32 %v2820_v0, 0.0  ;;  %v1932_v9 = vsub.f32 %v1927_v50, %v3274_v58  ;;  %v1933_v2 = vsub.f32 %v1927_v50, %v3277_v59 }
 0x210   :  { %v1917_v6 = vmax.f32 %v2821_v1, 0.0  ;;  %v1895_v17 = vadd.f32 %v1890_v42, %v1866_v41  ;;  %v1918_v25 = vmax.f32 %v2822_v43, 0.0  ;;  %v1919_v10 = vmax.f32 %v2823_v44, 0.0 }
 0x211   :  { %v1934_v18 = vand.u32 2147483647, %v1929_v3  ;;  %v1920_v14 = vadd.f32 %v1915_v45, %v1891_v46  ;;  %v1921_v19 = vadd.f32 %v1916_v48, %v1892_v51  ;;  %v1935_v4 = vand.u32 2147483647, %v1930_v5 }
 0x212   :  { %v1936_v27 = vand.u32 2147483647, %v1931_v47  ;;  %v1922_v21 = vadd.f32 %v1917_v6, %v1893_v52  ;;  %v1923_v30 = vadd.f32 %v1918_v25, %v1894_v60  ;;  %v1937_v15 = vand.u32 2147483647, %v1932_v9 }
 0x213   :  { %v1938_v22 = vand.u32 2147483647, %v1933_v2  ;;  %v2824_v31 = vadd.f32 -0.2, %v1934_v18  ;;  %v2825_v7 = vadd.f32 -0.2, %v1935_v4  ;;  %v1958_v16 = vsub.f32 %v1956_v26, %v3268_v54  ;;  %v2014_v2 = vpop.permute.xlu0 %2013 }
 0x214   :  { %v2826_v8 = vadd.f32 -0.2, %v1936_v27  ;;  %v2827_v20 = vadd.f32 -0.2, %v1937_v15  ;;  %v1959_v11 = vsub.f32 %v1956_v26, %v3270_v56  ;;  %v1960_v12 = vsub.f32 %v1956_v26, %v3272_v57 }
 0x215   :  { %v2828_v23 = vadd.f32 -0.2, %v1938_v22  ;;  %v1944_v24 = vmax.f32 %v2824_v31, 0.0  ;;  %v1945_v13 = vmax.f32 %v2825_v7, 0.0  ;;  %v1961_v29 = vsub.f32 %v1956_v26, %v3274_v58 }
 0x216   :  { %v1946_v28 = vmax.f32 %v2826_v8, 0.0  ;;  %v1924_v32 = vadd.f32 %v1919_v10, %v1895_v17  ;;  %v1947_v33 = vmax.f32 %v2827_v20, 0.0  ;;  %v1962_v34 = vsub.f32 %v1956_v26, %v3277_v59 }
 0x217   :  { %v1963_v35 = vand.u32 2147483647, %v1958_v16  ;;  %v1948_v37 = vmax.f32 %v2828_v23, 0.0  ;;  %v1949_v38 = vadd.f32 %v1944_v24, %v1920_v14  ;;  %v1950_v39 = vadd.f32 %v1945_v13, %v1921_v19 }
 0x218   :  { %v1964_v40 = vand.u32 2147483647, %v1959_v11  ;;  %v1951_v41 = vadd.f32 %v1946_v28, %v1922_v21  ;;  %v1952_v42 = vadd.f32 %v1947_v33, %v1923_v30  ;;  %v1965_v46 = vand.u32 2147483647, %v1960_v12 }
 0x219   :  { %v1966_v49 = vand.u32 2147483647, %v1961_v29  ;;  %v1967_v50 = vand.u32 2147483647, %v1962_v34  ;;  %v2829_v51 = vadd.f32 -0.2, %v1963_v35  ;;  %v1987_v53 = vsub.f32 %v1985_v36, %v3268_v54  ;;  %v2043_v29 = vpop.permute.xlu1 %2042 }
 0x21a   :  { %v2830_v52 = vadd.f32 -0.2, %v1964_v40  ;;  %v2831_v55 = vadd.f32 -0.2, %v1965_v46  ;;  %v1988_v61 = vsub.f32 %v1985_v36, %v3270_v56  ;;  %v1989_v62 = vsub.f32 %v1985_v36, %v3272_v57 }
 0x21b   :  { %v2832_v60 = vadd.f32 -0.2, %v1966_v49  ;;  %v2833_v63 = vadd.f32 -0.2, %v1967_v50  ;;  %v1973_v0 = vmax.f32 %v2829_v51, 0.0  ;;  %v1990_v3 = vsub.f32 %v1985_v36, %v3274_v58 }
 0x21c   :  { %v1974_v1 = vmax.f32 %v2830_v52, 0.0  ;;  %v1975_v5 = vmax.f32 %v2831_v55, 0.0  ;;  %v1991_v44 = vsub.f32 %v1985_v36, %v3277_v59  ;;  %v1992_v45 = vand.u32 2147483647, %v1987_v53 }
 0x21d   :  { %v1976_v43 = vmax.f32 %v2832_v60, 0.0  ;;  %v1953_v47 = vadd.f32 %v1948_v37, %v1924_v32  ;;  %v1977_v48 = vmax.f32 %v2833_v63, 0.0  ;;  %v1978_v6 = vadd.f32 %v1973_v0, %v1949_v38 }
 0x21e   :  { %v1993_v9 = vand.u32 2147483647, %v1988_v61  ;;  %v1979_v17 = vadd.f32 %v1974_v1, %v1950_v39  ;;  %v1980_v25 = vadd.f32 %v1975_v5, %v1951_v41  ;;  %v1994_v10 = vand.u32 2147483647, %v1989_v62 }
 0x21f   :  { %v1995_v18 = vand.u32 2147483647, %v1990_v3  ;;  %v1981_v26 = vadd.f32 %v1976_v43, %v1952_v42  ;;  %v1996_v14 = vand.u32 2147483647, %v1991_v44  ;;  %v2834_v19 = vadd.f32 -0.2, %v1992_v45  ;;  %v2072_v3 = vpop.permute.xlu1 %2071 }
 0x220   :  { %v2835_v4 = vadd.f32 -0.2, %v1993_v9  ;;  %v2836_v27 = vadd.f32 -0.2, %v1994_v10  ;;  %v2016_v30 = vsub.f32 %v2014_v2, %v3268_v54  ;;  %v2017_v15 = vsub.f32 %v2014_v2, %v3270_v56 }
 0x221   :  { %v2837_v21 = vadd.f32 -0.2, %v1995_v18  ;;  %v2838_v22 = vadd.f32 -0.2, %v1996_v14  ;;  %v2002_v31 = vmax.f32 %v2834_v19, 0.0  ;;  %v2018_v8 = vsub.f32 %v2014_v2, %v3272_v57 }
 0x222   :  { %v2003_v7 = vmax.f32 %v2835_v4, 0.0  ;;  %v2004_v16 = vmax.f32 %v2836_v27, 0.0  ;;  %v2019_v23 = vsub.f32 %v2014_v2, %v3274_v58  ;;  %v2020_v11 = vsub.f32 %v2014_v2, %v3277_v59 }
 0x223   :  { %v2005_v20 = vmax.f32 %v2837_v21, 0.0  ;;  %v1982_v12 = vadd.f32 %v1977_v48, %v1953_v47  ;;  %v2006_v24 = vmax.f32 %v2838_v22, 0.0  ;;  %v2007_v13 = vadd.f32 %v2002_v31, %v1978_v6 }
 0x224   :  { %v2021_v28 = vand.u32 2147483647, %v2016_v30  ;;  %v2008_v32 = vadd.f32 %v2003_v7, %v1979_v17  ;;  %v2009_v33 = vadd.f32 %v2004_v16, %v1980_v25  ;;  %v2022_v34 = vand.u32 2147483647, %v2017_v15 }
 0x225   :  { %v2023_v35 = vand.u32 2147483647, %v2018_v8  ;;  %v2010_v36 = vadd.f32 %v2005_v20, %v1981_v26  ;;  %v2024_v37 = vand.u32 2147483647, %v2019_v23  ;;  %v2025_v38 = vand.u32 2147483647, %v2020_v11  ;;  %v2101_v8 = vpop.permute.xlu0 %2100 }
 0x226   :  { %v2839_v39 = vadd.f32 -0.2, %v2021_v28  ;;  %v2840_v40 = vadd.f32 -0.2, %v2022_v34  ;;  %v2045_v42 = vsub.f32 %v2043_v29, %v3268_v54  ;;  %v2046_v46 = vsub.f32 %v2043_v29, %v3270_v56 }
 0x227   :  { %v2841_v41 = vadd.f32 -0.2, %v2023_v35  ;;  %v2842_v49 = vadd.f32 -0.2, %v2024_v37  ;;  %v2843_v50 = vadd.f32 -0.2, %v2025_v38  ;;  %v2047_v52 = vsub.f32 %v2043_v29, %v3272_v57 }
 0x228   :  { %v2031_v51 = vmax.f32 %v2839_v39, 0.0  ;;  %v2032_v53 = vmax.f32 %v2840_v40, 0.0  ;;  %v2048_v60 = vsub.f32 %v2043_v29, %v3274_v58  ;;  %v2049_v61 = vsub.f32 %v2043_v29, %v3277_v59 }
 0x229   :  { %v2033_v55 = vmax.f32 %v2841_v41, 0.0  ;;  %v2011_v62 = vadd.f32 %v2006_v24, %v1982_v12  ;;  %v2034_v63 = vmax.f32 %v2842_v49, 0.0  ;;  %v2035_v0 = vmax.f32 %v2843_v50, 0.0 }
 0x22a   :  { %v2050_v1 = vand.u32 2147483647, %v2045_v42  ;;  %v2036_v5 = vadd.f32 %v2031_v51, %v2007_v13  ;;  %v2037_v43 = vadd.f32 %v2032_v53, %v2008_v32  ;;  %v2051_v44 = vand.u32 2147483647, %v2046_v46 }
 0x22b   :  { %v2052_v45 = vand.u32 2147483647, %v2047_v52  ;;  %v2038_v47 = vadd.f32 %v2033_v55, %v2009_v33  ;;  %v2039_v48 = vadd.f32 %v2034_v63, %v2010_v36  ;;  %v2053_v6 = vand.u32 2147483647, %v2048_v60 }
 0x22c   :  { %v2054_v9 = vand.u32 2147483647, %v2049_v61  ;;  %v2844_v2 = vadd.f32 -0.2, %v2050_v1  ;;  %v2845_v17 = vadd.f32 -0.2, %v2051_v44  ;;  %v2074_v10 = vsub.f32 %v2072_v3, %v3268_v54  ;;  %v2130_v61 = vpop.permute.xlu1 %2129 }
 0x22d   :  { %v2846_v25 = vadd.f32 -0.2, %v2052_v45  ;;  %v2847_v18 = vadd.f32 -0.2, %v2053_v6  ;;  %v2075_v14 = vsub.f32 %v2072_v3, %v3270_v56  ;;  %v2076_v19 = vsub.f32 %v2072_v3, %v3272_v57 }
 0x22e   :  { %v2848_v26 = vadd.f32 -0.2, %v2054_v9  ;;  %v2060_v4 = vmax.f32 %v2844_v2, 0.0  ;;  %v2061_v27 = vmax.f32 %v2845_v17, 0.0  ;;  %v2077_v30 = vsub.f32 %v2072_v3, %v3274_v58 }
 0x22f   :  { %v2062_v21 = vmax.f32 %v2846_v25, 0.0  ;;  %v2040_v15 = vadd.f32 %v2035_v0, %v2011_v62  ;;  %v2063_v22 = vmax.f32 %v2847_v18, 0.0  ;;  %v2078_v31 = vsub.f32 %v2072_v3, %v3277_v59 }
 0x230   :  { %v2079_v7 = vand.u32 2147483647, %v2074_v10  ;;  %v2064_v16 = vmax.f32 %v2848_v26, 0.0  ;;  %v2065_v20 = vadd.f32 %v2060_v4, %v2036_v5  ;;  %v2066_v23 = vadd.f32 %v2061_v27, %v2037_v43 }
 0x231   :  { %v2080_v11 = vand.u32 2147483647, %v2075_v14  ;;  %v2067_v12 = vadd.f32 %v2062_v21, %v2038_v47  ;;  %v2068_v24 = vadd.f32 %v2063_v22, %v2039_v48  ;;  %v2081_v13 = vand.u32 2147483647, %v2076_v19 }
 0x232   :  { %v2082_v28 = vand.u32 2147483647, %v2077_v30  ;;  %v2083_v29 = vand.u32 2147483647, %v2078_v31  ;;  %v2849_v32 = vadd.f32 -0.2, %v2079_v7  ;;  %v2103_v34 = vsub.f32 %v2101_v8, %v3268_v54  ;;  %v2159_v30 = vpop.permute.xlu1 %2158 }
 0x233   :  { %v2850_v33 = vadd.f32 -0.2, %v2080_v11  ;;  %v2851_v35 = vadd.f32 -0.2, %v2081_v13  ;;  %v2104_v37 = vsub.f32 %v2101_v8, %v3270_v56  ;;  %v2105_v38 = vsub.f32 %v2101_v8, %v3272_v57 }
 0x234   :  { %v2852_v36 = vadd.f32 -0.2, %v2082_v28  ;;  %v2853_v39 = vadd.f32 -0.2, %v2083_v29  ;;  %v2089_v40 = vmax.f32 %v2849_v32, 0.0  ;;  %v2106_v42 = vsub.f32 %v2101_v8, %v3274_v58 }
 0x235   :  { %v2090_v41 = vmax.f32 %v2850_v33, 0.0  ;;  %v2091_v46 = vmax.f32 %v2851_v35, 0.0  ;;  %v2107_v50 = vsub.f32 %v2101_v8, %v3277_v59  ;;  %v2108_v51 = vand.u32 2147483647, %v2103_v34 }
 0x236   :  { %v2092_v49 = vmax.f32 %v2852_v36, 0.0  ;;  %v2069_v52 = vadd.f32 %v2064_v16, %v2040_v15  ;;  %v2093_v53 = vmax.f32 %v2853_v39, 0.0  ;;  %v2094_v55 = vadd.f32 %v2089_v40, %v2065_v20 }
 0x237   :  { %v2109_v60 = vand.u32 2147483647, %v2104_v37  ;;  %v2095_v62 = vadd.f32 %v2090_v41, %v2066_v23  ;;  %v2096_v63 = vadd.f32 %v2091_v46, %v2067_v12  ;;  %v2110_v0 = vand.u32 2147483647, %v2105_v38 }
 0x238   :  { %v2111_v1 = vand.u32 2147483647, %v2106_v42  ;;  %v2097_v3 = vadd.f32 %v2092_v49, %v2068_v24  ;;  %v2112_v5 = vand.u32 2147483647, %v2107_v50  ;;  %v2854_v43 = vadd.f32 -0.2, %v2108_v51  ;;  %v2188_v42 = vpop.permute.xlu0 %2187 }
 0x239   :  { %v2855_v44 = vadd.f32 -0.2, %v2109_v60  ;;  %v2856_v45 = vadd.f32 -0.2, %v2110_v0  ;;  %v2132_v48 = vsub.f32 %v2130_v61, %v3268_v54  ;;  %v2133_v6 = vsub.f32 %v2130_v61, %v3270_v56 }
 0x23a   :  { %v2857_v47 = vadd.f32 -0.2, %v2111_v1  ;;  %v2858_v9 = vadd.f32 -0.2, %v2112_v5  ;;  %v2118_v2 = vmax.f32 %v2854_v43, 0.0  ;;  %v2134_v25 = vsub.f32 %v2130_v61, %v3272_v57 }
 0x23b   :  { %v2119_v17 = vmax.f32 %v2855_v44, 0.0  ;;  %v2120_v10 = vmax.f32 %v2856_v45, 0.0  ;;  %v2135_v26 = vsub.f32 %v2130_v61, %v3274_v58  ;;  %v2136_v14 = vsub.f32 %v2130_v61, %v3277_v59 }
 0x23c   :  { %v2121_v18 = vmax.f32 %v2857_v47, 0.0  ;;  %v2098_v19 = vadd.f32 %v2093_v53, %v2069_v52  ;;  %v2122_v4 = vmax.f32 %v2858_v9, 0.0  ;;  %v2123_v27 = vadd.f32 %v2118_v2, %v2094_v55 }
 0x23d   :  { %v2137_v21 = vand.u32 2147483647, %v2132_v48  ;;  %v2124_v15 = vadd.f32 %v2119_v17, %v2095_v62  ;;  %v2125_v22 = vadd.f32 %v2120_v10, %v2096_v63  ;;  %v2138_v31 = vand.u32 2147483647, %v2133_v6 }
 0x23e   :  { %v2139_v7 = vand.u32 2147483647, %v2134_v25  ;;  %v2126_v8 = vadd.f32 %v2121_v18, %v2097_v3  ;;  %v2140_v16 = vand.u32 2147483647, %v2135_v26  ;;  %v2141_v20 = vand.u32 2147483647, %v2136_v14  ;;  %v2217_v25 = vpop.permute.xlu1 %2216 }
 0x23f   :  { %v2859_v23 = vadd.f32 -0.2, %v2137_v21  ;;  %v2860_v11 = vadd.f32 -0.2, %v2138_v31  ;;  %v2161_v24 = vsub.f32 %v2159_v30, %v3268_v54  ;;  %v2162_v13 = vsub.f32 %v2159_v30, %v3270_v56 }
 0x240   :  { %v2861_v12 = vadd.f32 -0.2, %v2139_v7  ;;  %v2862_v28 = vadd.f32 -0.2, %v2140_v16  ;;  %v2863_v29 = vadd.f32 -0.2, %v2141_v20  ;;  %v2163_v33 = vsub.f32 %v2159_v30, %v3272_v57 }
 0x241   :  { %v2147_v32 = vmax.f32 %v2859_v23, 0.0  ;;  %v2148_v34 = vmax.f32 %v2860_v11, 0.0  ;;  %v2164_v36 = vsub.f32 %v2159_v30, %v3274_v58  ;;  %v2165_v37 = vsub.f32 %v2159_v30, %v3277_v59 }
 0x242   :  { %v2149_v35 = vmax.f32 %v2861_v12, 0.0  ;;  %v2127_v38 = vadd.f32 %v2122_v4, %v2098_v19  ;;  %v2150_v39 = vmax.f32 %v2862_v28, 0.0  ;;  %v2151_v40 = vmax.f32 %v2863_v29, 0.0 }
 0x243   :  { %v2166_v41 = vand.u32 2147483647, %v2161_v24  ;;  %v2152_v46 = vadd.f32 %v2147_v32, %v2123_v27  ;;  %v2153_v49 = vadd.f32 %v2148_v34, %v2124_v15  ;;  %v2167_v50 = vand.u32 2147483647, %v2162_v13 }
 0x244   :  { %v2168_v51 = vand.u32 2147483647, %v2163_v33  ;;  %v2154_v52 = vadd.f32 %v2149_v35, %v2125_v22  ;;  %v2155_v53 = vadd.f32 %v2150_v39, %v2126_v8  ;;  %v2169_v55 = vand.u32 2147483647, %v2164_v36 }
 0x245   :  { %v2170_v60 = vand.u32 2147483647, %v2165_v37  ;;  %v2864_v61 = vadd.f32 -0.2, %v2166_v41  ;;  %v2865_v62 = vadd.f32 -0.2, %v2167_v50  ;;  %v2190_v0 = vsub.f32 %v2188_v42, %v3268_v54  ;;  %v2246_v37 = vpop.permute.xlu1 %2245 }
 0x246   :  { %v2866_v63 = vadd.f32 -0.2, %v2168_v51  ;;  %v2867_v1 = vadd.f32 -0.2, %v2169_v55  ;;  %v2191_v5 = vsub.f32 %v2188_v42, %v3270_v56  ;;  %v2192_v43 = vsub.f32 %v2188_v42, %v3272_v57 }
 0x247   :  { %v2868_v3 = vadd.f32 -0.2, %v2170_v60  ;;  %v2176_v44 = vmax.f32 %v2864_v61, 0.0  ;;  %v2177_v45 = vmax.f32 %v2865_v62, 0.0  ;;  %v2193_v48 = vsub.f32 %v2188_v42, %v3274_v58 }
 0x248   :  { %v2178_v47 = vmax.f32 %v2866_v63, 0.0  ;;  %v2156_v6 = vadd.f32 %v2151_v40, %v2127_v38  ;;  %v2179_v9 = vmax.f32 %v2867_v1, 0.0  ;;  %v2194_v2 = vsub.f32 %v2188_v42, %v3277_v59 }
 0x249   :  { %v2195_v17 = vand.u32 2147483647, %v2190_v0  ;;  %v2180_v10 = vmax.f32 %v2868_v3, 0.0  ;;  %v2181_v18 = vadd.f32 %v2176_v44, %v2152_v46  ;;  %v2182_v26 = vadd.f32 %v2177_v45, %v2153_v49 }
 0x24a   :  { %v2196_v14 = vand.u32 2147483647, %v2191_v5  ;;  %v2183_v19 = vadd.f32 %v2178_v47, %v2154_v52  ;;  %v2184_v4 = vadd.f32 %v2179_v9, %v2155_v53  ;;  %v2197_v27 = vand.u32 2147483647, %v2192_v43 }
 0x24b   :  { %v2198_v21 = vand.u32 2147483647, %v2193_v48  ;;  %v2199_v30 = vand.u32 2147483647, %v2194_v2  ;;  %v2869_v15 = vadd.f32 -0.2, %v2195_v17  ;;  %v2219_v31 = vsub.f32 %v2217_v25, %v3268_v54  ;;  %v2275_v48 = vpop.permute.xlu0 %2274 }
 0x24c   :  { %v2870_v22 = vadd.f32 -0.2, %v2196_v14  ;;  %v2871_v7 = vadd.f32 -0.2, %v2197_v27  ;;  %v2220_v16 = vsub.f32 %v2217_v25, %v3270_v56  ;;  %v2221_v20 = vsub.f32 %v2217_v25, %v3272_v57 }
 0x24d   :  { %v2872_v8 = vadd.f32 -0.2, %v2198_v21  ;;  %v2873_v23 = vadd.f32 -0.2, %v2199_v30  ;;  %v2205_v11 = vmax.f32 %v2869_v15, 0.0  ;;  %v2222_v24 = vsub.f32 %v2217_v25, %v3274_v58 }
 0x24e   :  { %v2206_v12 = vmax.f32 %v2870_v22, 0.0  ;;  %v2207_v13 = vmax.f32 %v2871_v7, 0.0  ;;  %v2223_v29 = vsub.f32 %v2217_v25, %v3277_v59  ;;  %v2224_v32 = vand.u32 2147483647, %v2219_v31 }
 0x24f   :  { %v2208_v28 = vmax.f32 %v2872_v8, 0.0  ;;  %v2185_v33 = vadd.f32 %v2180_v10, %v2156_v6  ;;  %v2209_v34 = vmax.f32 %v2873_v23, 0.0  ;;  %v2210_v35 = vadd.f32 %v2205_v11, %v2181_v18 }
 0x250   :  { %v2225_v36 = vand.u32 2147483647, %v2220_v16  ;;  %v2211_v38 = vadd.f32 %v2206_v12, %v2182_v26  ;;  %v2212_v39 = vadd.f32 %v2207_v13, %v2183_v19  ;;  %v2226_v40 = vand.u32 2147483647, %v2221_v20 }
 0x251   :  { %v2227_v41 = vand.u32 2147483647, %v2222_v24  ;;  %v2213_v42 = vadd.f32 %v2208_v28, %v2184_v4  ;;  %v2228_v46 = vand.u32 2147483647, %v2223_v29  ;;  %v2874_v49 = vadd.f32 -0.2, %v2224_v32  ;;  %v2304_v24 = vpop.permute.xlu1 %2303 }
 0x252   :  { %v2875_v50 = vadd.f32 -0.2, %v2225_v36  ;;  %v2876_v51 = vadd.f32 -0.2, %v2226_v40  ;;  %v2248_v53 = vsub.f32 %v2246_v37, %v3268_v54  ;;  %v2249_v55 = vsub.f32 %v2246_v37, %v3270_v56 }
 0x253   :  { %v2877_v52 = vadd.f32 -0.2, %v2227_v41  ;;  %v2878_v60 = vadd.f32 -0.2, %v2228_v46  ;;  %v2234_v61 = vmax.f32 %v2874_v49, 0.0  ;;  %v2250_v63 = vsub.f32 %v2246_v37, %v3272_v57 }
 0x254   :  { %v2235_v62 = vmax.f32 %v2875_v50, 0.0  ;;  %v2236_v0 = vmax.f32 %v2876_v51, 0.0  ;;  %v2251_v3 = vsub.f32 %v2246_v37, %v3274_v58  ;;  %v2252_v5 = vsub.f32 %v2246_v37, %v3277_v59 }
 0x255   :  { %v2237_v1 = vmax.f32 %v2877_v52, 0.0  ;;  %v2214_v43 = vadd.f32 %v2209_v34, %v2185_v33  ;;  %v2238_v44 = vmax.f32 %v2878_v60, 0.0  ;;  %v2239_v45 = vadd.f32 %v2234_v61, %v2210_v35 }
 0x256   :  { %v2253_v47 = vand.u32 2147483647, %v2248_v53  ;;  %v2240_v6 = vadd.f32 %v2235_v62, %v2211_v38  ;;  %v2241_v9 = vadd.f32 %v2236_v0, %v2212_v39  ;;  %v2254_v2 = vand.u32 2147483647, %v2249_v55 }
 0x257   :  { %v2255_v17 = vand.u32 2147483647, %v2250_v63  ;;  %v2242_v25 = vadd.f32 %v2237_v1, %v2213_v42  ;;  %v2256_v10 = vand.u32 2147483647, %v2251_v3  ;;  %v2257_v18 = vand.u32 2147483647, %v2252_v5  ;;  %v2333_v63 = vpop.permute.xlu1 %2332 }
 0x258   :  { %v2879_v26 = vadd.f32 -0.2, %v2253_v47  ;;  %v2880_v14 = vadd.f32 -0.2, %v2254_v2  ;;  %v2277_v4 = vsub.f32 %v2275_v48, %v3268_v54  ;;  %v2278_v27 = vsub.f32 %v2275_v48, %v3270_v56 }
 0x259   :  { %v2881_v19 = vadd.f32 -0.2, %v2255_v17  ;;  %v2882_v21 = vadd.f32 -0.2, %v2256_v10  ;;  %v2883_v30 = vadd.f32 -0.2, %v2257_v18  ;;  %v2279_v22 = vsub.f32 %v2275_v48, %v3272_v57 }
 0x25a   :  { %v2263_v15 = vmax.f32 %v2879_v26, 0.0  ;;  %v2264_v31 = vmax.f32 %v2880_v14, 0.0  ;;  %v2280_v8 = vsub.f32 %v2275_v48, %v3274_v58  ;;  %v2281_v16 = vsub.f32 %v2275_v48, %v3277_v59 }
 0x25b   :  { %v2265_v7 = vmax.f32 %v2881_v19, 0.0  ;;  %v2243_v20 = vadd.f32 %v2238_v44, %v2214_v43  ;;  %v2266_v23 = vmax.f32 %v2882_v21, 0.0  ;;  %v2267_v11 = vmax.f32 %v2883_v30, 0.0 }
 0x25c   :  { %v2282_v12 = vand.u32 2147483647, %v2277_v4  ;;  %v2268_v13 = vadd.f32 %v2263_v15, %v2239_v45  ;;  %v2269_v28 = vadd.f32 %v2264_v31, %v2240_v6  ;;  %v2283_v29 = vand.u32 2147483647, %v2278_v27 }
 0x25d   :  { %v2284_v32 = vand.u32 2147483647, %v2279_v22  ;;  %v2270_v33 = vadd.f32 %v2265_v7, %v2241_v9  ;;  %v2271_v34 = vadd.f32 %v2266_v23, %v2242_v25  ;;  %v2285_v35 = vand.u32 2147483647, %v2280_v8 }
 0x25e   :  { %v2286_v36 = vand.u32 2147483647, %v2281_v16  ;;  %v2884_v37 = vadd.f32 -0.2, %v2282_v12  ;;  %v2885_v38 = vadd.f32 -0.2, %v2283_v29  ;;  %v2306_v40 = vsub.f32 %v2304_v24, %v3268_v54  ;;  %v2362_v16 = vpop.permute.xlu0 %2361 }
 0x25f   :  { %v2886_v39 = vadd.f32 -0.2, %v2284_v32  ;;  %v2887_v41 = vadd.f32 -0.2, %v2285_v35  ;;  %v2307_v46 = vsub.f32 %v2304_v24, %v3270_v56  ;;  %v2308_v49 = vsub.f32 %v2304_v24, %v3272_v57 }
 0x260   :  { %v2888_v42 = vadd.f32 -0.2, %v2286_v36  ;;  %v2292_v50 = vmax.f32 %v2884_v37, 0.0  ;;  %v2293_v51 = vmax.f32 %v2885_v38, 0.0  ;;  %v2309_v53 = vsub.f32 %v2304_v24, %v3274_v58 }
 0x261   :  { %v2294_v52 = vmax.f32 %v2886_v39, 0.0  ;;  %v2272_v55 = vadd.f32 %v2267_v11, %v2243_v20  ;;  %v2295_v60 = vmax.f32 %v2887_v41, 0.0  ;;  %v2310_v61 = vsub.f32 %v2304_v24, %v3277_v59 }
 0x262   :  { %v2311_v62 = vand.u32 2147483647, %v2306_v40  ;;  %v2296_v0 = vmax.f32 %v2888_v42, 0.0  ;;  %v2297_v1 = vadd.f32 %v2292_v50, %v2268_v13  ;;  %v2298_v3 = vadd.f32 %v2293_v51, %v2269_v28 }
 0x263   :  { %v2312_v5 = vand.u32 2147483647, %v2307_v46  ;;  %v2299_v43 = vadd.f32 %v2294_v52, %v2270_v33  ;;  %v2300_v44 = vadd.f32 %v2295_v60, %v2271_v34  ;;  %v2313_v45 = vand.u32 2147483647, %v2308_v49  ;;  %v2391_v49 = vpop.permute.xlu1 %2390 }
 0x264   :  { %v2314_v47 = vand.u32 2147483647, %v2309_v53  ;;  %v2315_v48 = vand.u32 2147483647, %v2310_v61  ;;  %v2889_v6 = vadd.f32 -0.2, %v2311_v62  ;;  %v2335_v2 = vsub.f32 %v2333_v63, %v3268_v54 }
 0x265   :  { %v2890_v9 = vadd.f32 -0.2, %v2312_v5  ;;  %v2891_v17 = vadd.f32 -0.2, %v2313_v45  ;;  %v2336_v10 = vsub.f32 %v2333_v63, %v3270_v56  ;;  %v2337_v18 = vsub.f32 %v2333_v63, %v3272_v57 }
 0x266   :  { %v2892_v25 = vadd.f32 -0.2, %v2314_v47  ;;  %v2893_v26 = vadd.f32 -0.2, %v2315_v48  ;;  %v2321_v14 = vmax.f32 %v2889_v6, 0.0  ;;  %v2338_v4 = vsub.f32 %v2333_v63, %v3274_v58 }
 0x267   :  { %v2322_v19 = vmax.f32 %v2890_v9, 0.0  ;;  %v2323_v27 = vmax.f32 %v2891_v17, 0.0  ;;  %v2339_v30 = vsub.f32 %v2333_v63, %v3277_v59  ;;  %v2340_v15 = vand.u32 2147483647, %v2335_v2 }
 0x268   :  { %v2324_v21 = vmax.f32 %v2892_v25, 0.0  ;;  %v2301_v22 = vadd.f32 %v2296_v0, %v2272_v55  ;;  %v2325_v31 = vmax.f32 %v2893_v26, 0.0  ;;  %v2326_v7 = vadd.f32 %v2321_v14, %v2297_v1 }
 0x269   :  { %v2341_v8 = vand.u32 2147483647, %v2336_v10  ;;  %v2327_v20 = vadd.f32 %v2322_v19, %v2298_v3  ;;  %v2328_v23 = vadd.f32 %v2323_v27, %v2299_v43  ;;  %v2342_v11 = vand.u32 2147483647, %v2337_v18  ;;  %v2420_v18 = vpop.permute.xlu1 %2419 }
 0x26a   :  { %v2343_v12 = vand.u32 2147483647, %v2338_v4  ;;  %v2329_v24 = vadd.f32 %v2324_v21, %v2300_v44  ;;  %v2344_v13 = vand.u32 2147483647, %v2339_v30  ;;  %v2894_v28 = vadd.f32 -0.2, %v2340_v15 }
 0x26b   :  { %v2895_v29 = vadd.f32 -0.2, %v2341_v8  ;;  %v2896_v32 = vadd.f32 -0.2, %v2342_v11  ;;  %v2364_v34 = vsub.f32 %v2362_v16, %v3268_v54  ;;  %v2365_v35 = vsub.f32 %v2362_v16, %v3270_v56 }
 0x26c   :  { %v2897_v33 = vadd.f32 -0.2, %v2343_v12  ;;  %v3751_v36 = vadd.f32 -0.2, %v2344_v13  ;;  %v2350_v37 = vmax.f32 %v2894_v28, 0.0  ;;  %v2366_v39 = vsub.f32 %v2362_v16, %v3272_v57 }
 0x26d   :  { %v2351_v38 = vmax.f32 %v2895_v29, 0.0  ;;  %v3754_v40 = vadd.f32 %v2325_v31, %v2301_v22  ;;  %v2352_v41 = vmax.f32 %v2896_v32, 0.0  ;;  %v2367_v42 = vsub.f32 %v2362_v16, %v3274_v58 }
 0x26e   :  { %v2368_v46 = vsub.f32 %v2362_v16, %v3277_v59  ;;  %v2353_v50 = vmax.f32 %v2897_v33, 0.0  ;;  %v2354_v51 = vmax.f32 %v3751_v36, 0.0  ;;  %v2355_v52 = vadd.f32 %v2350_v37, %v2326_v7 }
 0x26f   :  { %v2369_v53 = vand.u32 2147483647, %v2364_v34  ;;  %v2356_v55 = vadd.f32 %v2351_v38, %v2327_v20  ;;  %v2357_v60 = vadd.f32 %v2352_v41, %v2328_v23  ;;  %v2370_v61 = vand.u32 2147483647, %v2365_v35 }
 0x270   :  { %v2371_v62 = vand.u32 2147483647, %v2366_v39  ;;  %v2372_v63 = vand.u32 2147483647, %v2367_v42  ;;  %v2373_v0 = vand.u32 2147483647, %v2368_v46  ;;  %v2393_v3 = vsub.f32 %v2391_v49, %v3268_v54 }
 0x271   :  { %v2899_v1 = vadd.f32 -0.2, %v2369_v53  ;;  %v2900_v5 = vadd.f32 -0.2, %v2370_v61  ;;  %v2394_v44 = vsub.f32 %v2391_v49, %v3270_v56  ;;  %v2395_v45 = vsub.f32 %v2391_v49, %v3272_v57 }
 0x272   :  { %v2901_v43 = vadd.f32 -0.2, %v2371_v62  ;;  %v2902_v47 = vadd.f32 -0.2, %v2372_v63  ;;  %v2903_v48 = vadd.f32 -0.2, %v2373_v0  ;;  %v2396_v9 = vsub.f32 %v2391_v49, %v3274_v58 }
 0x273   :  { %v2379_v6 = vmax.f32 %v2899_v1, 0.0  ;;  %v2358_v2 = vadd.f32 %v2353_v50, %v2329_v24  ;;  %v2380_v17 = vmax.f32 %v2900_v5, 0.0  ;;  %v2397_v25 = vsub.f32 %v2391_v49, %v3277_v59 }
 0x274   :  { %v2398_v10 = vand.u32 2147483647, %v2393_v3  ;;  %v2381_v26 = vmax.f32 %v2901_v43, 0.0  ;;  %v2382_v14 = vmax.f32 %v2902_v47, 0.0  ;;  %v2383_v19 = vmax.f32 %v2903_v48, 0.0 }
 0x275   :  { %v2399_v4 = vand.u32 2147483647, %v2394_v44  ;;  %v2384_v27 = vadd.f32 %v2379_v6, %v2355_v52  ;;  %v2385_v21 = vadd.f32 %v2380_v17, %v2356_v55  ;;  %v2400_v30 = vand.u32 2147483647, %v2395_v45 }
 0x276   :  { %v2401_v15 = vand.u32 2147483647, %v2396_v9  ;;  %v2402_v22 = vand.u32 2147483647, %v2397_v25  ;;  %v2904_v31 = vadd.f32 -0.2, %v2398_v10  ;;  %v2422_v8 = vsub.f32 %v2420_v18, %v3268_v54 }
 0x277   :  { %v2905_v7 = vadd.f32 -0.2, %v2399_v4  ;;  %v2906_v16 = vadd.f32 -0.2, %v2400_v30  ;;  %v2423_v23 = vsub.f32 %v2420_v18, %v3270_v56  ;;  %v2424_v11 = vsub.f32 %v2420_v18, %v3272_v57 }
 0x278   :  { %v2907_v20 = vadd.f32 -0.2, %v2401_v15  ;;  %v2386_v12 = vadd.f32 %v2381_v26, %v2357_v60  ;;  %v2408_v24 = vmax.f32 %v2904_v31, 0.0  ;;  %v2425_v28 = vsub.f32 %v2420_v18, %v3274_v58 }
 0x279   :  { %v2409_v13 = vmax.f32 %v2905_v7, 0.0  ;;  %v2908_v29 = vadd.f32 -0.2, %v2402_v22  ;;  %v2410_v32 = vmax.f32 %v2906_v16, 0.0  ;;  %v2426_v33 = vsub.f32 %v2420_v18, %v3277_v59 }
 0x27a   :  { %v2427_v34 = vand.u32 2147483647, %v2422_v8  ;;  %v2411_v35 = vmax.f32 %v2907_v20, 0.0  ;;  %v2413_v36 = vadd.f32 %v2408_v24, %v2384_v27  ;;  %v2428_v37 = vand.u32 2147483647, %v2423_v23 }
 0x27b   :  { %v2429_v54 = vand.u32 2147483647, %v2424_v11  ;;  %v2414_v38 = vadd.f32 %v2409_v13, %v2385_v21  ;;  %v2430_v39 = vand.u32 2147483647, %v2425_v28  ;;  %v2431_v41 = vand.u32 2147483647, %v2426_v33 }
 0x27c   :  { %v2909_v56 = vadd.f32 -0.2, %v2427_v34  ;;  %v2910_v57 = vadd.f32 -0.2, %v2428_v37  ;;  %v2359_v58 = vadd.f32 %v2354_v51, %v3754_v40  ;;  %v2387_v46 = vadd.f32 %v2382_v14, %v2358_v2 }
 0x27d   :  { %v2911_v42 = vadd.f32 -0.2, %v2429_v54  ;;  %v2415_v49 = vadd.f32 %v2410_v32, %v2386_v12  ;;  %v2912_v59 = vadd.f32 -0.2, %v2430_v39  ;;  %v2913_v50 = vadd.f32 -0.2, %v2431_v41 }
 0x27e   :  { %v2437_v52 = vmax.f32 %v2909_v56, 0.0  ;;  %v2438_v53 = vmax.f32 %v2910_v57, 0.0  ;;  %v2388_v60 = vadd.f32 %v2383_v19, %v2359_v58  ;;  %v2412_v61 = vmax.f32 %v2908_v29, 0.0 }
 0x27f   :  { %v2439_v55 = vmax.f32 %v2911_v42, 0.0  ;;  %v2440_v62 = vmax.f32 %v2912_v59, 0.0  ;;  %v2452_v0 = vstv %s97_s30  ;;  %v2441_v1 = vmax.f32 %v2913_v50, 0.0 }
 0x280   :  { %v2442_v63 = vadd.f32 %v2437_v52, %v2413_v36  ;;  %v2443_v3 = vadd.f32 %v2438_v53, %v2414_v38  ;;  %v2416_v43 = vadd.f32 %v2411_v35, %v2387_v46  ;;  %v2417_v45 = vadd.f32 %v2412_v61, %v2388_v60 }
 0x281   :  { %v2444_v5 = vadd.f32 %v2439_v55, %v2415_v49 }
 0x282   :  { %v2453_v44 = vmul.f32 %v2452_v0, %v2442_v63  ;;  %v2445_v47 = vadd.f32 %v2440_v62, %v2416_v43  ;;  %v2454_v40 = vmul.f32 %v2452_v0, %v2443_v3  ;;  %v2446_v51 = vadd.f32 %v2441_v1, %v2417_v45 }
 0x283   :  { %v2455_v48 = vmul.f32 %v2452_v0, %v2444_v5 }
 0x284   :  { %v2476_v6 = vadd.f32 %v2454_v40, %v2453_v44  ;;  %v2456_v9 = vmul.f32 %v2452_v0, %v2445_v47  ;;  %v2457_v17 = vmul.f32 %v2452_v0, %v2446_v51 }
 0x286   :  { %v2477_v2 = vadd.f32 %v2476_v6, %v2455_v48 }
 0x288   :  { %v2478_v25 = vadd.f32 %v2477_v2, %v2456_v9 }
 0x28a   :  { %v2479_v10 = vadd.f32 %v2478_v25, %v2457_v17 }
 0x28c   :  { %2480 = vadd.xlane.f32.xlu0 %v2479_v10 }
 0x319   :  { %v2481_v18 = vpop.xlane.xlu0 %2480 }
 0x31a   :  { %v2482_v26 = vrot.slane %v2481_v18, 4 }
 0x31c   :  { %v2483_v14 = vadd.f32 %v2482_v26, %v2481_v18 }
 0x31e   :  { %v2484_v19 = vrot.slane %v2483_v14, 2 }
 0x320   :  { %v2485_v4 = vadd.f32 %v2484_v19, %v2483_v14 }
 0x322   :  { %v2486_v27 = vrot.slane %v2485_v4, 1 }
 0x324   :  { %v2487_v21 = vadd.f32 %v2486_v27, %v2485_v4 }
 0x326   :  { %2914 = vpush %v2487_v21 }
 0x357   :  { %s2915_s2 = spop %2914 }
 0x358   :  { %2490 = sst [smem:[#allocation7]] %s2915_s2 }
 0x359   :  { %3089 = shalt.err (!%p3086_p4)
}
 0x35a   :  { %s3172_s13 = smov [#allocation7]  }
 0x35b   :  { %2498 = dma.smem_to_hbm %s3172_s13, 16, %s3790_s5, [#allocation8]  }
 0x35c   :  { %3090 = dma.done.wait [#allocation8], 16  }
 0x35d   :  { %3091 = vsyncadd [#allocation8], 4294967280 }
 0x35e   :  { %2502 = sfence }
 0x35f   :  { %2503 = vsyncpa [#allocation8], 1 }

</bundles_post_ra>
